<compile_context>
chip_gen: v6e
topology: v6e:2x2x1
jax: 0.10.0
libtpu: 0.0.40
codegen_flags: <defaults>
</compile_context>

<pallas_src>
import functools

import jax
import jax.numpy as jnp
from jax.experimental import pallas as pl
from jax.experimental.pallas import tpu as pltpu


# ----------------------------------------------------------------------------
# Pallas kernels
# ----------------------------------------------------------------------------
def _mm_stats_kernel(a_ref, b_ref, y_ref, st_ref):
    """Full-K matmul tile + fused per-tile BN partial statistics.

    st_ref block is (1, 8, N): row 0 = sum over rows, row 1 = sum of squares,
    rows 2..7 = 0.  Single lane-dense (8, N) store, no 8x broadcast.
    """
    acc = jnp.dot(a_ref[...], b_ref[...], preferred_element_type=jnp.float32)
    y_ref[...] = acc.astype(y_ref.dtype)
    s = jnp.sum(acc, axis=0, keepdims=True)            # (1, N)
    q = jnp.sum(acc * acc, axis=0, keepdims=True)      # (1, N)
    rows = jax.lax.broadcasted_iota(jnp.int32, st_ref.shape[1:], 0)   # (8, N)
    st_ref[0] = jnp.where(rows == 0, s, jnp.where(rows == 1, q, 0.0))


def _mm_acc_kernel(a_ref, b_ref, y_ref, acc_ref, *, relu):
    """K-pipelined matmul: grid (N tiles, K tiles), f32 VMEM accumulator."""
    k = pl.program_id(1)

    @pl.when(k == 0)
    def _():
        acc_ref[...] = jnp.zeros_like(acc_ref)

    acc_ref[...] += jnp.dot(a_ref[...], b_ref[...],
                            preferred_element_type=jnp.float32)

    @pl.when(k == pl.num_programs(1) - 1)
    def _():
        y = acc_ref[...]
        if relu:
            y = jnp.maximum(y, 0.0)
        y_ref[...] = y.astype(y_ref.dtype)


def _avgpool_fc_kernel(x_ref, wt_ref, b_ref, o_ref):
    """Global average pool over the spatial axis fused with the final FC."""
    feat = jnp.mean(x_ref[...], axis=1)                      # (N, C) f32
    prod = feat[:, None, :] * wt_ref[...][None, :, :]        # (N, cls, C)
    o_ref[...] = jnp.sum(prod, axis=-1) + b_ref[...]         # (N, cls)


# ----------------------------------------------------------------------------
# Pallas wrappers
# ----------------------------------------------------------------------------
def _round_up(x, m):
    return (x + m - 1) // m * m


def _pick_tm(M, max_rows=512):
    """>=2 M tiles (v7x megacore), tile rows multiple of 16 (bf16), minimal pad."""
    tiles = max(2, (M + max_rows - 1) // max_rows)
    return max(16, _round_up((M + tiles - 1) // tiles, 16))


def mm_stats(a, b, tm):
    """a: [Mp, K] bf16, b: [K, N] bf16 -> (y [Mp, N] bf16, stats [T, 8, N] f32)."""
    Mp, K = a.shape
    N = b.shape[1]
    T = Mp // tm
    return pl.pallas_call(
        _mm_stats_kernel,
        out_shape=(jax.ShapeDtypeStruct((Mp, N), jnp.bfloat16),
                   jax.ShapeDtypeStruct((T, 8, N), jnp.float32)),
        grid_spec=pltpu.PrefetchScalarGridSpec(
            num_scalar_prefetch=0,
            grid=(T,),
            in_specs=[pl.BlockSpec((tm, K), lambda i: (i, 0)),
                      pl.BlockSpec((K, N), lambda i: (0, 0))],
            out_specs=(pl.BlockSpec((tm, N), lambda i: (i, 0)),
                       pl.BlockSpec((1, 8, N), lambda i: (i, 0, 0)))),
        compiler_params=pltpu.CompilerParams(
            dimension_semantics=("parallel",)),
    )(a, b)


def mm_kpipe(a, b, *, relu, tn=128, k_splits=2):
    """a: [M, Ka] bf16, b: [Kb, N] bf16 with Kb % (k_splits*128) == 0, Kb >= Ka.

    Grid (N tiles, K tiles): N is 'parallel' (2 tiles -> both v7x cores busy),
    K is 'arbitrary' with an f32 accumulator so the large weight streams in
    chunks and the DMA overlaps MXU work instead of landing as one block.
    """
    M, Ka = a.shape
    Kb, N = b.shape
    if Kb != Ka:
        a = jnp.pad(a, ((0, 0), (0, Kb - Ka)))
    Mp = _round_up(M, 8)
    if Mp != M:
        a = jnp.pad(a, ((0, Mp - M), (0, 0)))
    tk = Kb // k_splits
    Tn = N // tn
    return pl.pallas_call(
        functools.partial(_mm_acc_kernel, relu=relu),
        out_shape=jax.ShapeDtypeStruct((Mp, N), jnp.float32),
        grid_spec=pltpu.PrefetchScalarGridSpec(
            num_scalar_prefetch=0,
            grid=(Tn, k_splits),
            in_specs=[pl.BlockSpec((Mp, tk), lambda j, k: (0, k)),
                      pl.BlockSpec((tk, tn), lambda j, k: (k, j))],
            out_specs=pl.BlockSpec((Mp, tn), lambda j, k: (0, j)),
            scratch_shapes=[pltpu.VMEM((Mp, tn), jnp.float32)]),
        compiler_params=pltpu.CompilerParams(
            dimension_semantics=("parallel", "arbitrary")),
    )(a, b)


# ----------------------------------------------------------------------------
# Conv / pooling glue (patch extraction + BN affine in XLA under the jit)
# ----------------------------------------------------------------------------
# TODO(synk): longer term, convert im2col+GEMM to implicit GEMM (kh,kw grid
# axes walking the input window) so patch tensors are never materialized.
def _im2col(x, kh, kw, stride, pad):
    """x: [N,H,W,C] -> bf16 patches [N*OH*OW, KH*KW*C] (channel-minor), dims."""
    N, H, W, C = x.shape
    xp = jnp.pad(x, ((0, 0), (pad, pad), (pad, pad), (0, 0)))
    OH = (H + 2 * pad - kh) // stride + 1
    OW = (W + 2 * pad - kw) // stride + 1
    cols = [xp[:, i:i + stride * OH:stride, j:j + stride * OW:stride, :]
            for i in range(kh) for j in range(kw)]
    patches = jnp.stack(cols, axis=3)                  # [N,OH,OW,KH*KW,C]
    patches = patches.reshape(N * OH * OW, kh * kw * C).astype(jnp.bfloat16)
    return patches, (N, OH, OW)


def conv_stats(x, w, kh, kw, stride, pad):
    """Conv as one Pallas matmul launch with the fused BN-stat epilogue."""
    patches, dims = _im2col(x, kh, kw, stride, pad)
    M, Kp = patches.shape
    Kw = w.shape[0]
    if Kw != Kp:                              # weight K was padded at init (conv1)
        patches = jnp.pad(patches, ((0, 0), (0, Kw - Kp)))
    tm = _pick_tm(M)
    Mp = _round_up(M, tm)
    if Mp != M:
        patches = jnp.pad(patches, ((0, Mp - M), (0, 0)))
    y, stats = mm_stats(patches, w, tm)
    return y, stats, M, dims


def bn_fold(stats, M, gamma, beta, eps=1e-5):
    """Training-mode batch stats -> per-channel scale/shift (pad rows are zero)."""
    s = jnp.sum(stats[:, 0, :], axis=0)                # (N,)
    q = jnp.sum(stats[:, 1, :], axis=0)
    mean = s / M
    var = jnp.maximum(q / M - mean * mean, 0.0)        # biased var (torch fwd)
    scale = gamma * jax.lax.rsqrt(var + eps)
    shift = beta - mean * scale
    return scale, shift


def maxpool2d(x, k=3, stride=2, pad=1):
    # TODO(synk): intentionally XLA (fuses under the jit) per perf review,
    # instead of a Pallas kernel fed by 9 HBM-materialized strided views.
    return jax.lax.reduce_window(
        x, jnp.array(-jnp.inf, x.dtype), jax.lax.max,
        window_dimensions=(1, k, k, 1),
        window_strides=(1, stride, stride, 1),
        padding=((0, 0), (pad, pad), (pad, pad), (0, 0)))


# ----------------------------------------------------------------------------
# Parameter initialization (deterministic, synthetic; weights pre-cast to bf16)
# ----------------------------------------------------------------------------
def _conv_w(key, kh, kw, cin, cout, cin_pad=None, cout_pad=None, k_pad=None):
    """Conv weight as a GEMM matrix [K(_pad), cout_pad] bf16.

    Real values live in [:, :, :cin, :cout]; all padding rows/cols are zero so
    padded channels stay exactly zero through conv / BN / ReLU.
    """
    cin_pad = cin if cin_pad is None else cin_pad
    cout_pad = cout if cout_pad is None else cout_pad
    fan_in = kh * kw * cin
    w = jax.random.normal(key, (kh, kw, cin, cout), jnp.float32) / jnp.sqrt(fan_in)
    wp = jnp.zeros((kh, kw, cin_pad, cout_pad), jnp.float32)
    wp = wp.at[:, :, :cin, :cout].set(w)
    wp = wp.reshape(kh * kw * cin_pad, cout_pad)
    if k_pad is not None and k_pad > wp.shape[0]:
        wp = jnp.pad(wp, ((0, k_pad - wp.shape[0]), (0, 0)))
    return wp.astype(jnp.bfloat16)


def _bn_params(c):
    return jnp.ones((c,), jnp.float32), jnp.zeros((c,), jnp.float32)


def _init_block(key, cin, cin_pad, cout, cout_pad, stride):
    k1, k2, k3 = jax.random.split(key, 3)
    g1, b1 = _bn_params(cout_pad)
    g2, b2 = _bn_params(cout_pad)
    p = {"w1": _conv_w(k1, 3, 3, cin, cout, cin_pad, cout_pad),
         "g1": g1, "b1": b1,
         "w2": _conv_w(k2, 3, 3, cout, cout, cout_pad, cout_pad),
         "g2": g2, "b2": b2}
    if stride != 1 or cin != cout:
        gs, bs = _bn_params(cout_pad)
        p["wsc"] = _conv_w(k3, 1, 1, cin, cout, cin_pad, cout_pad)
        p["gsc"] = gs
        p["bsc"] = bs
    return p


def init_params(key, num_classes=2):
    keys = jax.random.split(key, 8)
    CP = 128   # 64-channel layers padded to 128 for lane-dense stores
    g1, b1 = _bn_params(CP)
    return {
        "conv1_w": _conv_w(keys[0], 7, 7, 3, 64, 3, CP, k_pad=256),
        "bn1_g": g1, "bn1_b": b1,
        "layer1": [_init_block(keys[1], 64, CP, 64, CP, 1),
                   _init_block(keys[2], 64, CP, 64, CP, 1)],
        "layer2": [_init_block(keys[3], 64, CP, 128, 128, 2),
                   _init_block(keys[4], 128, 128, 128, 128, 1)],
        "conv2_w": _conv_w(keys[5], 7, 7, 128, 256, 128, 256,
                           k_pad=_round_up(7 * 7 * 128, 256)),
        # torch-style Linear layout: (out_features, in_features), kept f32.
        "fc_wt": jax.random.normal(keys[6], (num_classes, 256), jnp.float32)
                 * (1.0 / jnp.sqrt(256.0)),
        "fc_b": jnp.zeros((1, num_classes), jnp.float32),
    }


# ----------------------------------------------------------------------------
# Forward pass
# ----------------------------------------------------------------------------
def residual_block(x, p, stride):
    n, H, W, C = x.shape

    # conv1 -> bn1 -> relu   (affine + relu in jnp: XLA fuses with next im2col)
    y1, st1, M, (n1, oh, ow) = conv_stats(x, p["w1"], 3, 3, stride, 1)
    sc1, sh1 = bn_fold(st1, M, p["g1"], p["b1"])
    h = jnp.maximum(y1[:M].astype(jnp.float32) * sc1 + sh1, 0.0)
    h = h.astype(jnp.bfloat16).reshape(n1, oh, ow, -1)

    # conv2 -> bn2
    y2, st2, M2, _ = conv_stats(h, p["w2"], 3, 3, 1, 1)
    sc2, sh2 = bn_fold(st2, M2, p["g2"], p["b2"])
    main = y2[:M2].astype(jnp.float32) * sc2 + sh2

    # shortcut (conv+bn when downsampling, identity otherwise) + add + relu
    if "wsc" in p:
        ysc, sts, Ms, _ = conv_stats(x, p["wsc"], 1, 1, stride, 0)
        scs, shs = bn_fold(sts, Ms, p["gsc"], p["bsc"])
        short = ysc[:Ms].astype(jnp.float32) * scs + shs
    else:
        short = x.reshape(n * H * W, C).astype(jnp.float32)
    out = jnp.maximum(main + short, 0.0).astype(jnp.bfloat16)
    return out.reshape(n1, oh, ow, -1)


def resnet18_forward(params, x_nchw):
    x = jnp.transpose(x_nchw, (0, 2, 3, 1)).astype(jnp.float32)   # NCHW -> NHWC

    # conv1 (7x7 / s2 / p3) -> bn1 -> relu
    y, st, M, (n, oh, ow) = conv_stats(x, params["conv1_w"], 7, 7, 2, 3)
    sc, sh = bn_fold(st, M, params["bn1_g"], params["bn1_b"])
    x = jnp.maximum(y[:M].astype(jnp.float32) * sc + sh, 0.0)
    x = x.astype(jnp.bfloat16).reshape(n, oh, ow, -1)

    # maxpool 3x3 / s2 / p1
    x = maxpool2d(x, 3, 2, 1)

    # layer1 (strides 1,1), layer2 (strides 2,1)
    for blk, s in zip(params["layer1"], (1, 1)):
        x = residual_block(x, blk, s)
    for blk, s in zip(params["layer2"], (2, 1)):
        x = residual_block(x, blk, s)

    # conv2 (7x7, s1, p1, no BN) -> relu; N-parallel / K-pipelined matmul
    patches, (n, oh, ow) = _im2col(x, 7, 7, 1, 1)
    M = n * oh * ow
    y = mm_kpipe(patches, params["conv2_w"], relu=True)           # (Mp, 256) f32
    x = y[:M].reshape(n, oh * ow, 256)

    # adaptive avgpool (1,1) + flatten + fc, one tiny full-block Pallas kernel
    num_classes = params["fc_b"].shape[-1]
    logits = pl.pallas_call(
        _avgpool_fc_kernel,
        out_shape=jax.ShapeDtypeStruct((n, num_classes), jnp.float32),
    )(x, params["fc_wt"], params["fc_b"])
    return logits


# ----------------------------------------------------------------------------
if __name__ == "__main__":
    key = jax.random.PRNGKey(0)
    kx, kp = jax.random.split(key)
    # NCHW input, 3 channels. 48x48 keeps the final 7x7/pad-1 conv positive:
    # 48 -> 24 -> 12 -> 6 -> 2.
    x = jax.random.normal(kx, (2, 3, 48, 48), jnp.float32)
    params = init_params(kp, num_classes=2)

    forward = jax.jit(resnet18_forward)
    out = jax.block_until_ready(forward(params, x))
    assert out.shape == (2, 2) and out.dtype == jnp.float32
    print("KERNEL_OK")
</pallas_src>

<mosaic_0001>
module attributes {stable_mosaic.version = 11 : i64} {
  func.func @_mm_stats_kernel(%arg0: i32, %arg1: memref<384x256xbf16, #tpu.memory_space<vmem>>, %arg2: memref<256x128xbf16, #tpu.memory_space<vmem>>, %arg3: memref<384x128xbf16, #tpu.memory_space<vmem>>, %arg4: memref<1x8x128xf32, #tpu.memory_space<vmem>>) attributes {dimension_semantics = [#tpu.dimension_semantics<parallel>], iteration_bounds = array<i64: 3>, scalar_prefetch = 0 : i64, scratch_operands = 0 : i64, tpu.core_type = #tpu.core_type<tc>, window_params = [{transform_indices = @transform_0, window_bounds = array<i64: 384, 256>}, {pipeline_mode = #tpu.pipeline_mode<synchronous>, transform_indices = @transform_1, window_bounds = array<i64: 256, 128>}, {transform_indices = @transform_2, window_bounds = array<i64: 384, 128>}, {transform_indices = @transform_3, window_bounds = array<i64: 1, 8, 128>}]} {
    %c0 = arith.constant 0 : index
    %c0_0 = arith.constant 0 : index
    %0 = vector.load %arg1[%c0, %c0_0] : memref<384x256xbf16, #tpu.memory_space<vmem>>, vector<384x256xbf16>
    %c0_1 = arith.constant 0 : index
    %c0_2 = arith.constant 0 : index
    %1 = vector.load %arg2[%c0_1, %c0_2] : memref<256x128xbf16, #tpu.memory_space<vmem>>, vector<256x128xbf16>
    %cst = arith.constant dense<0.000000e+00> : vector<384x128xf32>
    %2 = tpu.matmul %0, %1, %cst {dimension_numbers = #tpu.dot_dimension_numbers<[1], [0], [0], [1], [0, 0, 1, 1], [], []>} : vector<384x256xbf16>, vector<256x128xbf16>, vector<384x128xf32> -> vector<384x128xf32>
    %3 = arith.truncf %2 : vector<384x128xf32> to vector<384x128xbf16>
    %c0_3 = arith.constant 0 : index
    %c0_4 = arith.constant 0 : index
    %4 = vector.load %arg3[%c0_3, %c0_4] : memref<384x128xbf16, #tpu.memory_space<vmem>>, vector<384x128xbf16>
    tpu.vector_store %arg3[%c0_3, %c0_4], %3 {strides = array<i32>} : memref<384x128xbf16, #tpu.memory_space<vmem>>, vector<384x128xbf16>,
    %cst_5 = arith.constant dense<0.000000e+00> : vector<128xf32>
    %5 = vector.multi_reduction <add>, %2, %cst_5 [0] : vector<384x128xf32> to vector<128xf32>
    %6 = vector.shape_cast %5 : vector<128xf32> to vector<1x128xf32>
    %7 = arith.mulf %2, %2 : vector<384x128xf32>
    %cst_6 = arith.constant dense<0.000000e+00> : vector<128xf32>
    %8 = vector.multi_reduction <add>, %7, %cst_6 [0] : vector<384x128xf32> to vector<128xf32>
    %9 = vector.shape_cast %8 : vector<128xf32> to vector<1x128xf32>
    %10 = tpu.iota {dimensions = array<i32: 0>} : vector<8x128xi32>
    %c0_i32 = arith.constant 0 : i32
    %11 = vector.broadcast %c0_i32 : i32 to vector<8x128xi32>
    %12 = arith.cmpi eq, %10, %11 : vector<8x128xi32>
    %c1_i32 = arith.constant 1 : i32
    %13 = vector.broadcast %c1_i32 : i32 to vector<8x128xi32>
    %14 = arith.cmpi eq, %10, %13 : vector<8x128xi32>
    %cst_7 = arith.constant 0.000000e+00 : f32
    %15 = vector.shape_cast %9 : vector<1x128xf32> to vector<1x128xf32>
    %16 = vector.broadcast %15 : vector<1x128xf32> to vector<8x128xf32>
    %17 = vector.broadcast %cst_7 : f32 to vector<8x128xf32>
    %18 = arith.select %14, %16, %17 : vector<8x128xi1>, vector<8x128xf32>
    %19 = vector.shape_cast %6 : vector<1x128xf32> to vector<1x128xf32>
    %20 = vector.broadcast %19 : vector<1x128xf32> to vector<8x128xf32>
    %21 = arith.select %12, %20, %18 : vector<8x128xi1>, vector<8x128xf32>
    %c0_8 = arith.constant 0 : index
    %c0_9 = arith.constant 0 : index
    %c0_10 = arith.constant 0 : index
    %22 = vector.load %arg4[%c0_8, %c0_9, %c0_10] : memref<1x8x128xf32, #tpu.memory_space<vmem>>, vector<1x8x128xf32>
    %23 = vector.shape_cast %22 : vector<1x8x128xf32> to vector<8x128xf32>
    %24 = vector.shape_cast %21 : vector<8x128xf32> to vector<1x8x128xf32>
    tpu.vector_store %arg4[%c0_8, %c0_9, %c0_10], %24 {strides = array<i32>} : memref<1x8x128xf32, #tpu.memory_space<vmem>>, vector<1x8x128xf32>,
    return
  }
  func.func @transform_0(%arg0: i32) -> (i32, i32) {
    %c0_i32 = arith.constant 0 : i32
    %c0_i32_0 = arith.constant 0 : i32
    return %arg0, %c0_i32 : i32, i32
  }
  func.func @transform_1(%arg0: i32) -> (i32, i32) {
    %c0_i32 = arith.constant 0 : i32
    %c0_i32_0 = arith.constant 0 : i32
    %c0_i32_1 = arith.constant 0 : i32
    return %c0_i32, %c0_i32_0 : i32, i32
  }
  func.func @transform_2(%arg0: i32) -> (i32, i32) {
    %c0_i32 = arith.constant 0 : i32
    %c0_i32_0 = arith.constant 0 : i32
    return %arg0, %c0_i32 : i32, i32
  }
  func.func @transform_3(%arg0: i32) -> (i32, i32, i32) {
    %c0_i32 = arith.constant 0 : i32
    %c0_i32_0 = arith.constant 0 : i32
    %c0_i32_1 = arith.constant 0 : i32
    return %arg0, %c0_i32, %c0_i32_0 : i32, i32, i32
  }
}

module attributes {stable_mosaic.version = 11 : i64} {
  func.func @_mm_stats_kernel(%arg0: i32, %arg1: memref<144x1152xbf16, #tpu.memory_space<vmem>>, %arg2: memref<1152x128xbf16, #tpu.memory_space<vmem>>, %arg3: memref<144x128xbf16, #tpu.memory_space<vmem>>, %arg4: memref<1x8x128xf32, #tpu.memory_space<vmem>>) attributes {dimension_semantics = [#tpu.dimension_semantics<parallel>], iteration_bounds = array<i64: 2>, scalar_prefetch = 0 : i64, scratch_operands = 0 : i64, tpu.core_type = #tpu.core_type<tc>, window_params = [{transform_indices = @transform_0, window_bounds = array<i64: 144, 1152>}, {pipeline_mode = #tpu.pipeline_mode<synchronous>, transform_indices = @transform_1, window_bounds = array<i64: 1152, 128>}, {transform_indices = @transform_2, window_bounds = array<i64: 144, 128>}, {transform_indices = @transform_3, window_bounds = array<i64: 1, 8, 128>}]} {
    %c0 = arith.constant 0 : index
    %c0_0 = arith.constant 0 : index
    %0 = vector.load %arg1[%c0, %c0_0] : memref<144x1152xbf16, #tpu.memory_space<vmem>>, vector<144x1152xbf16>
    %c0_1 = arith.constant 0 : index
    %c0_2 = arith.constant 0 : index
    %1 = vector.load %arg2[%c0_1, %c0_2] : memref<1152x128xbf16, #tpu.memory_space<vmem>>, vector<1152x128xbf16>
    %cst = arith.constant dense<0.000000e+00> : vector<144x128xf32>
    %2 = tpu.matmul %0, %1, %cst {dimension_numbers = #tpu.dot_dimension_numbers<[1], [0], [0], [1], [0, 0, 1, 1], [], []>} : vector<144x1152xbf16>, vector<1152x128xbf16>, vector<144x128xf32> -> vector<144x128xf32>
    %3 = arith.truncf %2 : vector<144x128xf32> to vector<144x128xbf16>
    %c0_3 = arith.constant 0 : index
    %c0_4 = arith.constant 0 : index
    %4 = vector.load %arg3[%c0_3, %c0_4] : memref<144x128xbf16, #tpu.memory_space<vmem>>, vector<144x128xbf16>
    tpu.vector_store %arg3[%c0_3, %c0_4], %3 {strides = array<i32>} : memref<144x128xbf16, #tpu.memory_space<vmem>>, vector<144x128xbf16>,
    %cst_5 = arith.constant dense<0.000000e+00> : vector<128xf32>
    %5 = vector.multi_reduction <add>, %2, %cst_5 [0] : vector<144x128xf32> to vector<128xf32>
    %6 = vector.shape_cast %5 : vector<128xf32> to vector<1x128xf32>
    %7 = arith.mulf %2, %2 : vector<144x128xf32>
    %cst_6 = arith.constant dense<0.000000e+00> : vector<128xf32>
    %8 = vector.multi_reduction <add>, %7, %cst_6 [0] : vector<144x128xf32> to vector<128xf32>
    %9 = vector.shape_cast %8 : vector<128xf32> to vector<1x128xf32>
    %10 = tpu.iota {dimensions = array<i32: 0>} : vector<8x128xi32>
    %c0_i32 = arith.constant 0 : i32
    %11 = vector.broadcast %c0_i32 : i32 to vector<8x128xi32>
    %12 = arith.cmpi eq, %10, %11 : vector<8x128xi32>
    %c1_i32 = arith.constant 1 : i32
    %13 = vector.broadcast %c1_i32 : i32 to vector<8x128xi32>
    %14 = arith.cmpi eq, %10, %13 : vector<8x128xi32>
    %cst_7 = arith.constant 0.000000e+00 : f32
    %15 = vector.shape_cast %9 : vector<1x128xf32> to vector<1x128xf32>
    %16 = vector.broadcast %15 : vector<1x128xf32> to vector<8x128xf32>
    %17 = vector.broadcast %cst_7 : f32 to vector<8x128xf32>
    %18 = arith.select %14, %16, %17 : vector<8x128xi1>, vector<8x128xf32>
    %19 = vector.shape_cast %6 : vector<1x128xf32> to vector<1x128xf32>
    %20 = vector.broadcast %19 : vector<1x128xf32> to vector<8x128xf32>
    %21 = arith.select %12, %20, %18 : vector<8x128xi1>, vector<8x128xf32>
    %c0_8 = arith.constant 0 : index
    %c0_9 = arith.constant 0 : index
    %c0_10 = arith.constant 0 : index
    %22 = vector.load %arg4[%c0_8, %c0_9, %c0_10] : memref<1x8x128xf32, #tpu.memory_space<vmem>>, vector<1x8x128xf32>
    %23 = vector.shape_cast %22 : vector<1x8x128xf32> to vector<8x128xf32>
    %24 = vector.shape_cast %21 : vector<8x128xf32> to vector<1x8x128xf32>
    tpu.vector_store %arg4[%c0_8, %c0_9, %c0_10], %24 {strides = array<i32>} : memref<1x8x128xf32, #tpu.memory_space<vmem>>, vector<1x8x128xf32>,
    return
  }
  func.func @transform_0(%arg0: i32) -> (i32, i32) {
    %c0_i32 = arith.constant 0 : i32
    %c0_i32_0 = arith.constant 0 : i32
    return %arg0, %c0_i32 : i32, i32
  }
  func.func @transform_1(%arg0: i32) -> (i32, i32) {
    %c0_i32 = arith.constant 0 : i32
    %c0_i32_0 = arith.constant 0 : i32
    %c0_i32_1 = arith.constant 0 : i32
    return %c0_i32, %c0_i32_0 : i32, i32
  }
  func.func @transform_2(%arg0: i32) -> (i32, i32) {
    %c0_i32 = arith.constant 0 : i32
    %c0_i32_0 = arith.constant 0 : i32
    return %arg0, %c0_i32 : i32, i32
  }
  func.func @transform_3(%arg0: i32) -> (i32, i32, i32) {
    %c0_i32 = arith.constant 0 : i32
    %c0_i32_0 = arith.constant 0 : i32
    %c0_i32_1 = arith.constant 0 : i32
    return %arg0, %c0_i32, %c0_i32_0 : i32, i32, i32
  }
}

module attributes {stable_mosaic.version = 11 : i64} {
  func.func @_mm_stats_kernel(%arg0: i32, %arg1: memref<48x1152xbf16, #tpu.memory_space<vmem>>, %arg2: memref<1152x128xbf16, #tpu.memory_space<vmem>>, %arg3: memref<48x128xbf16, #tpu.memory_space<vmem>>, %arg4: memref<1x8x128xf32, #tpu.memory_space<vmem>>) attributes {dimension_semantics = [#tpu.dimension_semantics<parallel>], iteration_bounds = array<i64: 2>, scalar_prefetch = 0 : i64, scratch_operands = 0 : i64, tpu.core_type = #tpu.core_type<tc>, window_params = [{transform_indices = @transform_0, window_bounds = array<i64: 48, 1152>}, {pipeline_mode = #tpu.pipeline_mode<synchronous>, transform_indices = @transform_1, window_bounds = array<i64: 1152, 128>}, {transform_indices = @transform_2, window_bounds = array<i64: 48, 128>}, {transform_indices = @transform_3, window_bounds = array<i64: 1, 8, 128>}]} {
    %c0 = arith.constant 0 : index
    %c0_0 = arith.constant 0 : index
    %0 = vector.load %arg1[%c0, %c0_0] : memref<48x1152xbf16, #tpu.memory_space<vmem>>, vector<48x1152xbf16>
    %c0_1 = arith.constant 0 : index
    %c0_2 = arith.constant 0 : index
    %1 = vector.load %arg2[%c0_1, %c0_2] : memref<1152x128xbf16, #tpu.memory_space<vmem>>, vector<1152x128xbf16>
    %cst = arith.constant dense<0.000000e+00> : vector<48x128xf32>
    %2 = tpu.matmul %0, %1, %cst {dimension_numbers = #tpu.dot_dimension_numbers<[1], [0], [0], [1], [0, 0, 1, 1], [], []>} : vector<48x1152xbf16>, vector<1152x128xbf16>, vector<48x128xf32> -> vector<48x128xf32>
    %3 = arith.truncf %2 : vector<48x128xf32> to vector<48x128xbf16>
    %c0_3 = arith.constant 0 : index
    %c0_4 = arith.constant 0 : index
    %4 = vector.load %arg3[%c0_3, %c0_4] : memref<48x128xbf16, #tpu.memory_space<vmem>>, vector<48x128xbf16>
    tpu.vector_store %arg3[%c0_3, %c0_4], %3 {strides = array<i32>} : memref<48x128xbf16, #tpu.memory_space<vmem>>, vector<48x128xbf16>,
    %cst_5 = arith.constant dense<0.000000e+00> : vector<128xf32>
    %5 = vector.multi_reduction <add>, %2, %cst_5 [0] : vector<48x128xf32> to vector<128xf32>
    %6 = vector.shape_cast %5 : vector<128xf32> to vector<1x128xf32>
    %7 = arith.mulf %2, %2 : vector<48x128xf32>
    %cst_6 = arith.constant dense<0.000000e+00> : vector<128xf32>
    %8 = vector.multi_reduction <add>, %7, %cst_6 [0] : vector<48x128xf32> to vector<128xf32>
    %9 = vector.shape_cast %8 : vector<128xf32> to vector<1x128xf32>
    %10 = tpu.iota {dimensions = array<i32: 0>} : vector<8x128xi32>
    %c0_i32 = arith.constant 0 : i32
    %11 = vector.broadcast %c0_i32 : i32 to vector<8x128xi32>
    %12 = arith.cmpi eq, %10, %11 : vector<8x128xi32>
    %c1_i32 = arith.constant 1 : i32
    %13 = vector.broadcast %c1_i32 : i32 to vector<8x128xi32>
    %14 = arith.cmpi eq, %10, %13 : vector<8x128xi32>
    %cst_7 = arith.constant 0.000000e+00 : f32
    %15 = vector.shape_cast %9 : vector<1x128xf32> to vector<1x128xf32>
    %16 = vector.broadcast %15 : vector<1x128xf32> to vector<8x128xf32>
    %17 = vector.broadcast %cst_7 : f32 to vector<8x128xf32>
    %18 = arith.select %14, %16, %17 : vector<8x128xi1>, vector<8x128xf32>
    %19 = vector.shape_cast %6 : vector<1x128xf32> to vector<1x128xf32>
    %20 = vector.broadcast %19 : vector<1x128xf32> to vector<8x128xf32>
    %21 = arith.select %12, %20, %18 : vector<8x128xi1>, vector<8x128xf32>
    %c0_8 = arith.constant 0 : index
    %c0_9 = arith.constant 0 : index
    %c0_10 = arith.constant 0 : index
    %22 = vector.load %arg4[%c0_8, %c0_9, %c0_10] : memref<1x8x128xf32, #tpu.memory_space<vmem>>, vector<1x8x128xf32>
    %23 = vector.shape_cast %22 : vector<1x8x128xf32> to vector<8x128xf32>
    %24 = vector.shape_cast %21 : vector<8x128xf32> to vector<1x8x128xf32>
    tpu.vector_store %arg4[%c0_8, %c0_9, %c0_10], %24 {strides = array<i32>} : memref<1x8x128xf32, #tpu.memory_space<vmem>>, vector<1x8x128xf32>,
    return
  }
  func.func @transform_0(%arg0: i32) -> (i32, i32) {
    %c0_i32 = arith.constant 0 : i32
    %c0_i32_0 = arith.constant 0 : i32
    return %arg0, %c0_i32 : i32, i32
  }
  func.func @transform_1(%arg0: i32) -> (i32, i32) {
    %c0_i32 = arith.constant 0 : i32
    %c0_i32_0 = arith.constant 0 : i32
    %c0_i32_1 = arith.constant 0 : i32
    return %c0_i32, %c0_i32_0 : i32, i32
  }
  func.func @transform_2(%arg0: i32) -> (i32, i32) {
    %c0_i32 = arith.constant 0 : i32
    %c0_i32_0 = arith.constant 0 : i32
    return %arg0, %c0_i32 : i32, i32
  }
  func.func @transform_3(%arg0: i32) -> (i32, i32, i32) {
    %c0_i32 = arith.constant 0 : i32
    %c0_i32_0 = arith.constant 0 : i32
    %c0_i32_1 = arith.constant 0 : i32
    return %arg0, %c0_i32, %c0_i32_0 : i32, i32, i32
  }
}

module attributes {stable_mosaic.version = 11 : i64} {
  func.func @_mm_stats_kernel(%arg0: i32, %arg1: memref<48x128xbf16, #tpu.memory_space<vmem>>, %arg2: memref<128x128xbf16, #tpu.memory_space<vmem>>, %arg3: memref<48x128xbf16, #tpu.memory_space<vmem>>, %arg4: memref<1x8x128xf32, #tpu.memory_space<vmem>>) attributes {dimension_semantics = [#tpu.dimension_semantics<parallel>], iteration_bounds = array<i64: 2>, scalar_prefetch = 0 : i64, scratch_operands = 0 : i64, tpu.core_type = #tpu.core_type<tc>, window_params = [{transform_indices = @transform_0, window_bounds = array<i64: 48, 128>}, {pipeline_mode = #tpu.pipeline_mode<synchronous>, transform_indices = @transform_1, window_bounds = array<i64: 128, 128>}, {transform_indices = @transform_2, window_bounds = array<i64: 48, 128>}, {transform_indices = @transform_3, window_bounds = array<i64: 1, 8, 128>}]} {
    %c0 = arith.constant 0 : index
    %c0_0 = arith.constant 0 : index
    %0 = vector.load %arg1[%c0, %c0_0] : memref<48x128xbf16, #tpu.memory_space<vmem>>, vector<48x128xbf16>
    %c0_1 = arith.constant 0 : index
    %c0_2 = arith.constant 0 : index
    %1 = vector.load %arg2[%c0_1, %c0_2] : memref<128x128xbf16, #tpu.memory_space<vmem>>, vector<128x128xbf16>
    %cst = arith.constant dense<0.000000e+00> : vector<48x128xf32>
    %2 = tpu.matmul %0, %1, %cst {dimension_numbers = #tpu.dot_dimension_numbers<[1], [0], [0], [1], [0, 0, 1, 1], [], []>} : vector<48x128xbf16>, vector<128x128xbf16>, vector<48x128xf32> -> vector<48x128xf32>
    %3 = arith.truncf %2 : vector<48x128xf32> to vector<48x128xbf16>
    %c0_3 = arith.constant 0 : index
    %c0_4 = arith.constant 0 : index
    %4 = vector.load %arg3[%c0_3, %c0_4] : memref<48x128xbf16, #tpu.memory_space<vmem>>, vector<48x128xbf16>
    tpu.vector_store %arg3[%c0_3, %c0_4], %3 {strides = array<i32>} : memref<48x128xbf16, #tpu.memory_space<vmem>>, vector<48x128xbf16>,
    %cst_5 = arith.constant dense<0.000000e+00> : vector<128xf32>
    %5 = vector.multi_reduction <add>, %2, %cst_5 [0] : vector<48x128xf32> to vector<128xf32>
    %6 = vector.shape_cast %5 : vector<128xf32> to vector<1x128xf32>
    %7 = arith.mulf %2, %2 : vector<48x128xf32>
    %cst_6 = arith.constant dense<0.000000e+00> : vector<128xf32>
    %8 = vector.multi_reduction <add>, %7, %cst_6 [0] : vector<48x128xf32> to vector<128xf32>
    %9 = vector.shape_cast %8 : vector<128xf32> to vector<1x128xf32>
    %10 = tpu.iota {dimensions = array<i32: 0>} : vector<8x128xi32>
    %c0_i32 = arith.constant 0 : i32
    %11 = vector.broadcast %c0_i32 : i32 to vector<8x128xi32>
    %12 = arith.cmpi eq, %10, %11 : vector<8x128xi32>
    %c1_i32 = arith.constant 1 : i32
    %13 = vector.broadcast %c1_i32 : i32 to vector<8x128xi32>
    %14 = arith.cmpi eq, %10, %13 : vector<8x128xi32>
    %cst_7 = arith.constant 0.000000e+00 : f32
    %15 = vector.shape_cast %9 : vector<1x128xf32> to vector<1x128xf32>
    %16 = vector.broadcast %15 : vector<1x128xf32> to vector<8x128xf32>
    %17 = vector.broadcast %cst_7 : f32 to vector<8x128xf32>
    %18 = arith.select %14, %16, %17 : vector<8x128xi1>, vector<8x128xf32>
    %19 = vector.shape_cast %6 : vector<1x128xf32> to vector<1x128xf32>
    %20 = vector.broadcast %19 : vector<1x128xf32> to vector<8x128xf32>
    %21 = arith.select %12, %20, %18 : vector<8x128xi1>, vector<8x128xf32>
    %c0_8 = arith.constant 0 : index
    %c0_9 = arith.constant 0 : index
    %c0_10 = arith.constant 0 : index
    %22 = vector.load %arg4[%c0_8, %c0_9, %c0_10] : memref<1x8x128xf32, #tpu.memory_space<vmem>>, vector<1x8x128xf32>
    %23 = vector.shape_cast %22 : vector<1x8x128xf32> to vector<8x128xf32>
    %24 = vector.shape_cast %21 : vector<8x128xf32> to vector<1x8x128xf32>
    tpu.vector_store %arg4[%c0_8, %c0_9, %c0_10], %24 {strides = array<i32>} : memref<1x8x128xf32, #tpu.memory_space<vmem>>, vector<1x8x128xf32>,
    return
  }
  func.func @transform_0(%arg0: i32) -> (i32, i32) {
    %c0_i32 = arith.constant 0 : i32
    %c0_i32_0 = arith.constant 0 : i32
    return %arg0, %c0_i32 : i32, i32
  }
  func.func @transform_1(%arg0: i32) -> (i32, i32) {
    %c0_i32 = arith.constant 0 : i32
    %c0_i32_0 = arith.constant 0 : i32
    %c0_i32_1 = arith.constant 0 : i32
    return %c0_i32, %c0_i32_0 : i32, i32
  }
  func.func @transform_2(%arg0: i32) -> (i32, i32) {
    %c0_i32 = arith.constant 0 : i32
    %c0_i32_0 = arith.constant 0 : i32
    return %arg0, %c0_i32 : i32, i32
  }
  func.func @transform_3(%arg0: i32) -> (i32, i32, i32) {
    %c0_i32 = arith.constant 0 : i32
    %c0_i32_0 = arith.constant 0 : i32
    %c0_i32_1 = arith.constant 0 : i32
    return %arg0, %c0_i32, %c0_i32_0 : i32, i32, i32
  }
}

module attributes {stable_mosaic.version = 11 : i64} {
  func.func @_mm_acc_kernel(%arg0: i32, %arg1: i32, %arg2: memref<8x3200xbf16, #tpu.memory_space<vmem>>, %arg3: memref<3200x128xbf16, #tpu.memory_space<vmem>>, %arg4: memref<8x128xf32, #tpu.memory_space<vmem>>, %arg5: memref<8x128xf32, #tpu.memory_space<vmem>>) attributes {dimension_semantics = [#tpu.dimension_semantics<parallel>, #tpu.dimension_semantics<arbitrary>], iteration_bounds = array<i64: 2, 2>, scalar_prefetch = 0 : i64, scratch_operands = 1 : i64, tpu.core_type = #tpu.core_type<tc>, window_params = [{transform_indices = @transform_0, window_bounds = array<i64: 8, 3200>}, {transform_indices = @transform_1, window_bounds = array<i64: 3200, 128>}, {transform_indices = @transform_2, window_bounds = array<i64: 8, 128>}]} {
    %c0_i32 = arith.constant 0 : i32
    %0 = arith.cmpi eq, %arg1, %c0_i32 : i32
    %1 = arith.extui %0 : i1 to i32
    %c0_i32_0 = arith.constant 0 : i32
    %2 = arith.cmpi ne, %1, %c0_i32_0 : i32
    scf.if %2 {
      %cst_9 = arith.constant 0.000000e+00 : f32
      %12 = vector.broadcast %cst_9 : f32 to vector<8x128xf32>
      %c0_10 = arith.constant 0 : index
      %c0_11 = arith.constant 0 : index
      %13 = vector.load %arg5[%c0_10, %c0_11] : memref<8x128xf32, #tpu.memory_space<vmem>>, vector<8x128xf32>
      tpu.vector_store %arg5[%c0_10, %c0_11], %12 {strides = array<i32>} : memref<8x128xf32, #tpu.memory_space<vmem>>, vector<8x128xf32>,
    } else {
    }
    %c0 = arith.constant 0 : index
    %c0_1 = arith.constant 0 : index
    %3 = vector.load %arg5[%c0, %c0_1] : memref<8x128xf32, #tpu.memory_space<vmem>>, vector<8x128xf32>
    %c0_2 = arith.constant 0 : index
    %c0_3 = arith.constant 0 : index
    %4 = vector.load %arg2[%c0_2, %c0_3] : memref<8x3200xbf16, #tpu.memory_space<vmem>>, vector<8x3200xbf16>
    %c0_4 = arith.constant 0 : index
    %c0_5 = arith.constant 0 : index
    %5 = vector.load %arg3[%c0_4, %c0_5] : memref<3200x128xbf16, #tpu.memory_space<vmem>>, vector<3200x128xbf16>
    %cst = arith.constant dense<0.000000e+00> : vector<8x128xf32>
    %6 = tpu.matmul %4, %5, %cst {dimension_numbers = #tpu.dot_dimension_numbers<[1], [0], [0], [1], [0, 0, 1, 1], [], []>} : vector<8x3200xbf16>, vector<3200x128xbf16>, vector<8x128xf32> -> vector<8x128xf32>
    %7 = arith.addf %3, %6 : vector<8x128xf32>
    %c0_6 = arith.constant 0 : index
    %c0_7 = arith.constant 0 : index
    %8 = vector.load %arg5[%c0_6, %c0_7] : memref<8x128xf32, #tpu.memory_space<vmem>>, vector<8x128xf32>
    tpu.vector_store %arg5[%c0_6, %c0_7], %7 {strides = array<i32>} : memref<8x128xf32, #tpu.memory_space<vmem>>, vector<8x128xf32>,
    %c1_i32 = arith.constant 1 : i32
    %9 = arith.cmpi eq, %arg1, %c1_i32 : i32
    %10 = arith.extui %9 : i1 to i32
    %c0_i32_8 = arith.constant 0 : i32
    %11 = arith.cmpi ne, %10, %c0_i32_8 : i32
    scf.if %11 {
      %c0_9 = arith.constant 0 : index
      %c0_10 = arith.constant 0 : index
      %12 = vector.load %arg5[%c0_9, %c0_10] : memref<8x128xf32, #tpu.memory_space<vmem>>, vector<8x128xf32>
      %cst_11 = arith.constant 0.000000e+00 : f32
      %13 = vector.broadcast %cst_11 : f32 to vector<8x128xf32>
      %14 = arith.maximumf %12, %13 : vector<8x128xf32>
      %c0_12 = arith.constant 0 : index
      %c0_13 = arith.constant 0 : index
      %15 = vector.load %arg4[%c0_12, %c0_13] : memref<8x128xf32, #tpu.memory_space<vmem>>, vector<8x128xf32>
      tpu.vector_store %arg4[%c0_12, %c0_13], %14 {strides = array<i32>} : memref<8x128xf32, #tpu.memory_space<vmem>>, vector<8x128xf32>,
    } else {
    }
    return
  }
  func.func @transform_0(%arg0: i32, %arg1: i32) -> (i32, i32) {
    %c0_i32 = arith.constant 0 : i32
    %c0_i32_0 = arith.constant 0 : i32
    return %c0_i32, %arg1 : i32, i32
  }
  func.func @transform_1(%arg0: i32, %arg1: i32) -> (i32, i32) {
    %c0_i32 = arith.constant 0 : i32
    return %arg1, %arg0 : i32, i32
  }
  func.func @transform_2(%arg0: i32, %arg1: i32) -> (i32, i32) {
    %c0_i32 = arith.constant 0 : i32
    %c0_i32_0 = arith.constant 0 : i32
    return %c0_i32, %arg0 : i32, i32
  }
}

module attributes {stable_mosaic.version = 11 : i64} {
  func.func @_avgpool_fc_kernel(%arg0: memref<2x4x256xf32, #tpu.memory_space<vmem>>, %arg1: memref<2x256xf32, #tpu.memory_space<vmem>>, %arg2: memref<1x2xf32, #tpu.memory_space<vmem>>, %arg3: memref<2x2xf32, #tpu.memory_space<vmem>>) attributes {dimension_semantics = [], scalar_prefetch = 0 : i64, scratch_operands = 0 : i64, tpu.core_type = #tpu.core_type<tc>} {
    %c0 = arith.constant 0 : index
    %c0_0 = arith.constant 0 : index
    %c0_1 = arith.constant 0 : index
    %0 = vector.load %arg0[%c0, %c0_0, %c0_1] : memref<2x4x256xf32, #tpu.memory_space<vmem>>, vector<2x4x256xf32>
    %cst = arith.constant dense<0.000000e+00> : vector<2x256xf32>
    %1 = vector.multi_reduction <add>, %0, %cst [1] : vector<2x4x256xf32> to vector<2x256xf32>
    %cst_2 = arith.constant 4.000000e+00 : f32
    %2 = vector.broadcast %cst_2 : f32 to vector<2x256xf32>
    %3 = arith.divf %1, %2 : vector<2x256xf32>
    %4 = vector.shape_cast %3 : vector<2x256xf32> to vector<2x1x256xf32>
    %c0_3 = arith.constant 0 : index
    %c0_4 = arith.constant 0 : index
    %5 = vector.load %arg1[%c0_3, %c0_4] : memref<2x256xf32, #tpu.memory_space<vmem>>, vector<2x256xf32>
    %6 = vector.shape_cast %5 : vector<2x256xf32> to vector<1x2x256xf32>
    %7 = vector.broadcast %4 : vector<2x1x256xf32> to vector<2x2x256xf32>
    %8 = vector.broadcast %6 : vector<1x2x256xf32> to vector<2x2x256xf32>
    %9 = arith.mulf %7, %8 : vector<2x2x256xf32>
    %cst_5 = arith.constant dense<0.000000e+00> : vector<2x2xf32>
    %10 = vector.multi_reduction <add>, %9, %cst_5 [2] : vector<2x2x256xf32> to vector<2x2xf32>
    %c0_6 = arith.constant 0 : index
    %c0_7 = arith.constant 0 : index
    %11 = vector.load %arg2[%c0_6, %c0_7] : memref<1x2xf32, #tpu.memory_space<vmem>>, vector<1x2xf32>
    %12 = vector.broadcast %11 : vector<1x2xf32> to vector<2x2xf32>
    %13 = arith.addf %10, %12 : vector<2x2xf32>
    %c0_8 = arith.constant 0 : index
    %c0_9 = arith.constant 0 : index
    %14 = vector.load %arg3[%c0_8, %c0_9] : memref<2x2xf32, #tpu.memory_space<vmem>>, vector<2x2xf32>
    tpu.vector_store %arg3[%c0_8, %c0_9], %13 {strides = array<i32>} : memref<2x2xf32, #tpu.memory_space<vmem>>, vector<2x2xf32>,
    return
  }
}

</mosaic_0001>

<bundles_post_ra>
// kernel: resnet18_forward.12
= control target key start
LH: loop header
LB: loop body
LE: loop exit
PB: predicated region body
PF: predicated region fallthrough
CT: control target
= control target key end

     0   :  { %s1791_s12 = smov 0   ;;  %s2204_s0 = inlined_call_operand.vmem [shape: bf16[1152,256], index: 0, kind: input, shape index: {}]   ;;  %s2205_s1 = inlined_call_operand.vmem [shape: bf16[256,128], index: 1, kind: input, shape index: {}]   ;;  %s2206_s2 = inlined_call_operand.vmem [shape: bf16[1152,128], index: 2, kind: output, shape index: {0}]   ;;  %s2207_s3 = inlined_call_operand.vmem [shape: f32[3,8,128], index: 3, kind: output, shape index: {1}]  }
   0x1 LB: > { %s1797_s13 = sadd.s32 4294967295, %s1768_s12   ;;  %p1322_p0 = scmp.ge.s32.totalorder %s1768_s12, 1  ;;  %s1768_s12 = sphi %s1791_s12, %s14_s12  }
   0x2   : > { %p142_p1 = scmp.lt.s32.totalorder %s1768_s12, 4 }
   0x4   : > { %p143_p2 = pnand %p1322_p0, %p142_p1 }
   0x5   : > { %s171_s16 = smul.u32 (!%p143_p2), 48, %s1797_s13  ;;  %p184_p4 = scmp.lt.s32.totalorder (!%p143_p2), %s1797_s13, 2 }
   0x6   : > { %146 = sbr.rel (%p143_p2) target bundleno = 428 (0x1ac), region = 28 }
   0x7   : > { %p172_p3 = scmp.lt.s32.totalorder (!%p143_p2), %s171_s16, 143 }
   0xb   : > { %v1674_v0 = vld [vmem:[%s2205_s1 + $0x38] sm:$0xff]   ;;  %v1770_v1 = vmov 0   ;;  %v1675_v2 = vld [vmem:[%s2205_s1 + $0x30] sm:$0xff]   ;;  %v1676_v3 = vld [vmem:[%s2205_s1 + $0x28] sm:$0xff]   ;;  %s2209_s16 = smov (!%p172_p3, %s171_s16), 143  ;;  %s2211_s13 = smov (!%p184_p4, %s1797_s13), 2 }
   0xc   : > { %605 = vmatprep.subr.bf16.mxu0 %v1770_v1  ;;  %1633 = vmatprep.subr.bf16.mxu1 %v1770_v1  ;;  %v1677_v4 = vld [vmem:[%s2205_s1 + $0x20] sm:$0xff]   ;;  %s1441_s23 = sshll.u32 %s2209_s16, 3  ;;  %v1678_v5 = vld [vmem:[%s2205_s1 + $0x18] sm:$0xff]   ;;  %v1679_v7 = vld [vmem:[%s2205_s1 + $0x10] sm:$0xff]   ;;  %s1325_s27 = sshll.u32 %s2209_s16, 2 }
   0xd   : > { %606 = vmatpush1.bf16.msra.mxu0 %v1674_v0  ;;  %1649 = vmatpush1.bf16.msra.mxu1 %v1674_v0  ;;  %s1831_s28 = scalar_lea.vmem %s2204_s0, %s1441_s23  ;;  %v1680_v8 = vld [vmem:[%s2205_s1 + $0x8] sm:$0xff]   ;;  %v1681_v10 = vld [vmem:[%s2205_s1] sm:$0xff]   ;;  %v1682_v11 = vld [vmem:[%s2205_s1 + $0x78] sm:$0xff]   ;;  %s1946_s4 = scalar_lea.vmem %s2206_s2, %s1325_s27 }
   0xe   : > { %607 = vmatprep.subr.bf16.mxu0 %v1770_v1  ;;  %1634 = vmatprep.subr.bf16.mxu1 %v1770_v1  ;;  %v1692_v6 = vld [vmem:[%s1831_s28 + $0x4] ss:$8 sps:$4 sm:$0xff]   ;;  %v1683_v12 = vld [vmem:[%s2205_s1 + $0x70] sm:$0xff]   ;;  %v1686_v15 = vld [vmem:[%s2205_s1 + $0x58] sm:$0xff]   ;;  %s1326_s16 = sshll.u32 %s2211_s13, 3 }
   0xf   : > { %637 = vmatprep.mubr.bf16.mxu0 %v1692_v6  ;;  %v1710_v9 = vld [vmem:[%s1831_s28 + $0xc4] ss:$8 sps:$4 sm:$0xff]   ;;  %v1687_v16 = vld [vmem:[%s2205_s1 + $0x50] sm:$0xff]   ;;  %v1690_v19 = vld [vmem:[%s1831_s28] ss:$8 sps:$4 sm:$0xff]   ;;  %s187_s6 = scalar_lea.vmem %s2207_s3, %s1326_s16 }
  0x10   : > { %733 = vmatprep.mubr.bf16.mxu1 %v1710_v9  ;;  %v1684_v13 = vld [vmem:[%s2205_s1 + $0x68] sm:$0xff]   ;;  %v1685_v14 = vld [vmem:[%s2205_s1 + $0x60] sm:$0xff]   ;;  %v1693_v21 = vld [vmem:[%s1831_s28 + $0x14] ss:$8 sps:$4 sm:$0xff]  }
  0x11   : > { %608 = vmatpush1.bf16.msra.mxu0 %v1675_v2  ;;  %1650 = vmatpush1.bf16.msra.mxu1 %v1675_v2  ;;  %v1688_v17 = vld [vmem:[%s2205_s1 + $0x48] sm:$0xff]   ;;  %v1689_v18 = vld [vmem:[%s2205_s1 + $0x40] sm:$0xff]   ;;  %v1714_v22 = vld [vmem:[%s1831_s28 + $0xd4] ss:$8 sps:$4 sm:$0xff]  }
  0x12   : > { %609 = vmatprep.subr.bf16.mxu0 %v1770_v1  ;;  %1635 = vmatprep.subr.bf16.mxu1 %v1770_v1  ;;  %v1708_v20 = vld [vmem:[%s1831_s28 + $0xc0] ss:$8 sps:$4 sm:$0xff]   ;;  %v1695_v23 = vld [vmem:[%s1831_s28 + $0x10] ss:$8 sps:$4 sm:$0xff]   ;;  %v1696_v25 = vld [vmem:[%s1831_s28 + $0x24] ss:$8 sps:$4 sm:$0xff]  }
  0x13   : > { %v1716_v24 = vld [vmem:[%s1831_s28 + $0xd0] ss:$8 sps:$4 sm:$0xff]   ;;  %v1720_v26 = vld [vmem:[%s1831_s28 + $0xe4] ss:$8 sps:$4 sm:$0xff]   ;;  %v1698_v27 = vld [vmem:[%s1831_s28 + $0x20] ss:$8 sps:$4 sm:$0xff]  }
  0x14   : > { %v1722_v28 = vld [vmem:[%s1831_s28 + $0xe0] ss:$8 sps:$4 sm:$0xff]   ;;  %v1699_v29 = vld [vmem:[%s1831_s28 + $0x34] ss:$8 sps:$4 sm:$0xff]   ;;  %v1701_v31 = vld [vmem:[%s1831_s28 + $0x30] ss:$8 sps:$4 sm:$0xff]  }
  0x15   : > { %610 = vmatpush1.bf16.msra.mxu0 %v1676_v3  ;;  %1651 = vmatpush1.bf16.msra.mxu1 %v1676_v3  ;;  %v1726_v30 = vld [vmem:[%s1831_s28 + $0xf4] ss:$8 sps:$4 sm:$0xff]   ;;  %v1728_v32 = vld [vmem:[%s1831_s28 + $0xf0] ss:$8 sps:$4 sm:$0xff]   ;;  %v1702_v33 = vld [vmem:[%s1831_s28 + $0x44] ss:$8 sps:$4 sm:$0xff]  }
  0x16   : > { %611 = vmatprep.subr.bf16.mxu0 %v1770_v1  ;;  %1636 = vmatprep.subr.bf16.mxu1 %v1770_v1  ;;  %v1732_v34 = vld [vmem:[%s1831_s28 + $0x104] ss:$8 sps:$4 sm:$0xff]   ;;  %v1704_v35 = vld [vmem:[%s1831_s28 + $0x40] ss:$8 sps:$4 sm:$0xff]   ;;  %v1705_v37 = vld [vmem:[%s1831_s28 + $0x54] ss:$8 sps:$4 sm:$0xff]  }
  0x17   : > { %v1734_v36 = vld [vmem:[%s1831_s28 + $0x100] ss:$8 sps:$4 sm:$0xff]   ;;  %v1738_v38 = vld [vmem:[%s1831_s28 + $0x114] ss:$8 sps:$4 sm:$0xff]   ;;  %v1707_v39 = vld [vmem:[%s1831_s28 + $0x50] ss:$8 sps:$4 sm:$0xff]  }
  0x18   : > { %v1740_v40 = vld [vmem:[%s1831_s28 + $0x110] ss:$8 sps:$4 sm:$0xff]   ;;  %v1711_v41 = vld [vmem:[%s1831_s28 + $0x64] ss:$8 sps:$4 sm:$0xff]   ;;  %v1713_v43 = vld [vmem:[%s1831_s28 + $0x60] ss:$8 sps:$4 sm:$0xff]  }
  0x19   : > { %612 = vmatpush1.bf16.msra.mxu0 %v1677_v4  ;;  %1652 = vmatpush1.bf16.msra.mxu1 %v1677_v4  ;;  %v1744_v42 = vld [vmem:[%s1831_s28 + $0x124] ss:$8 sps:$4 sm:$0xff]   ;;  %v1746_v44 = vld [vmem:[%s1831_s28 + $0x120] ss:$8 sps:$4 sm:$0xff]   ;;  %v1717_v45 = vld [vmem:[%s1831_s28 + $0x74] ss:$8 sps:$4 sm:$0xff]  }
  0x1a   : > { %613 = vmatprep.subr.bf16.mxu0 %v1770_v1  ;;  %1637 = vmatprep.subr.bf16.mxu1 %v1770_v1  ;;  %v1747_v46 = vld [vmem:[%s1831_s28 + $0x134] ss:$8 sps:$4 sm:$0xff]   ;;  %v1719_v47 = vld [vmem:[%s1831_s28 + $0x70] ss:$8 sps:$4 sm:$0xff]   ;;  %v1723_v49 = vld [vmem:[%s1831_s28 + $0x84] ss:$8 sps:$4 sm:$0xff]  }
  0x1b   : > { %v1749_v48 = vld [vmem:[%s1831_s28 + $0x130] ss:$8 sps:$4 sm:$0xff]   ;;  %v1750_v50 = vld [vmem:[%s1831_s28 + $0x144] ss:$8 sps:$4 sm:$0xff]   ;;  %v1725_v51 = vld [vmem:[%s1831_s28 + $0x80] ss:$8 sps:$4 sm:$0xff]  }
  0x1c   : > { %v1752_v52 = vld [vmem:[%s1831_s28 + $0x140] ss:$8 sps:$4 sm:$0xff]   ;;  %v1729_v53 = vld [vmem:[%s1831_s28 + $0x94] ss:$8 sps:$4 sm:$0xff]   ;;  %v1731_v55 = vld [vmem:[%s1831_s28 + $0x90] ss:$8 sps:$4 sm:$0xff]  }
  0x1d   : > { %614 = vmatpush1.bf16.msra.mxu0 %v1678_v5  ;;  %1653 = vmatpush1.bf16.msra.mxu1 %v1678_v5  ;;  %v1753_v54 = vld [vmem:[%s1831_s28 + $0x154] ss:$8 sps:$4 sm:$0xff]   ;;  %v1755_v56 = vld [vmem:[%s1831_s28 + $0x150] ss:$8 sps:$4 sm:$0xff]   ;;  %v1735_v57 = vld [vmem:[%s1831_s28 + $0xa4] ss:$8 sps:$4 sm:$0xff]  }
  0x1e   : > { %615 = vmatprep.subr.bf16.mxu0 %v1770_v1  ;;  %1638 = vmatprep.subr.bf16.mxu1 %v1770_v1  ;;  %v1756_v58 = vld [vmem:[%s1831_s28 + $0x164] ss:$8 sps:$4 sm:$0xff]   ;;  %v1737_v59 = vld [vmem:[%s1831_s28 + $0xa0] ss:$8 sps:$4 sm:$0xff]   ;;  %v1741_v61 = vld [vmem:[%s1831_s28 + $0xb4] ss:$8 sps:$4 sm:$0xff]  }
  0x1f   : > { %v1758_v60 = vld [vmem:[%s1831_s28 + $0x160] ss:$8 sps:$4 sm:$0xff]   ;;  %v1759_v62 = vld [vmem:[%s1831_s28 + $0x174] ss:$8 sps:$4 sm:$0xff]   ;;  %v1743_v63 = vld [vmem:[%s1831_s28 + $0xb0] ss:$8 sps:$4 sm:$0xff]  }
  0x20   : > { %v1761_v0 = vld [vmem:[%s1831_s28 + $0x170] ss:$8 sps:$4 sm:$0xff]  }
  0x21   : > { %616 = vmatpush1.bf16.msra.mxu0 %v1679_v7  ;;  %1654 = vmatpush1.bf16.msra.mxu1 %v1679_v7 }
  0x22   : > { %617 = vmatprep.subr.bf16.mxu0 %v1770_v1  ;;  %1639 = vmatprep.subr.bf16.mxu1 %v1770_v1 }
  0x25   : > { %618 = vmatpush1.bf16.msra.mxu0 %v1680_v8  ;;  %1655 = vmatpush1.bf16.msra.mxu1 %v1680_v8 }
  0x26   : > { %619 = vmatprep.subr.bf16.mxu0 %v1770_v1  ;;  %1640 = vmatprep.subr.bf16.mxu1 %v1770_v1 }
  0x29   : > { %620 = vmatpush1.bf16.msra.mxu0 %v1681_v10  ;;  %1656 = vmatpush1.bf16.msra.mxu1 %v1681_v10 }
  0x2a   : > { %621 = vmatprep.subr.bf16.mxu0 %v1770_v1  ;;  %1641 = vmatprep.subr.bf16.mxu1 %v1770_v1 }
  0x2d   : > { %622 = vmatpush2.bf16.msra.mxu0 %v1682_v11  ;;  %1657 = vmatpush2.bf16.msra.mxu1 %v1682_v11 }
  0x2e   : > { %623 = vmatprep.subr.bf16.mxu0 %v1770_v1  ;;  %1642 = vmatprep.subr.bf16.mxu1 %v1770_v1 }
  0x31   : > { %624 = vmatpush2.bf16.msra.mxu0 %v1683_v12  ;;  %1658 = vmatpush2.bf16.msra.mxu1 %v1683_v12 }
  0x32   : > { %625 = vmatprep.subr.bf16.mxu0 %v1770_v1  ;;  %1643 = vmatprep.subr.bf16.mxu1 %v1770_v1 }
  0x35   : > { %626 = vmatpush2.bf16.msra.mxu0 %v1684_v13  ;;  %1659 = vmatpush2.bf16.msra.mxu1 %v1684_v13 }
  0x36   : > { %627 = vmatprep.subr.bf16.mxu0 %v1770_v1  ;;  %1644 = vmatprep.subr.bf16.mxu1 %v1770_v1 }
  0x39   : > { %628 = vmatpush2.bf16.msra.mxu0 %v1685_v14  ;;  %1660 = vmatpush2.bf16.msra.mxu1 %v1685_v14 }
  0x3a   : > { %629 = vmatprep.subr.bf16.mxu0 %v1770_v1  ;;  %1645 = vmatprep.subr.bf16.mxu1 %v1770_v1 }
  0x3d   : > { %630 = vmatpush2.bf16.msra.mxu0 %v1686_v15  ;;  %1661 = vmatpush2.bf16.msra.mxu1 %v1686_v15 }
  0x3e   : > { %631 = vmatprep.subr.bf16.mxu0 %v1770_v1  ;;  %1646 = vmatprep.subr.bf16.mxu1 %v1770_v1 }
  0x41   : > { %632 = vmatpush2.bf16.msra.mxu0 %v1687_v16  ;;  %1662 = vmatpush2.bf16.msra.mxu1 %v1687_v16 }
  0x42   : > { %633 = vmatprep.subr.bf16.mxu0 %v1770_v1  ;;  %1647 = vmatprep.subr.bf16.mxu1 %v1770_v1 }
  0x45   : > { %634 = vmatpush2.bf16.msra.mxu0 %v1688_v17  ;;  %1663 = vmatpush2.bf16.msra.mxu1 %v1688_v17 }
  0x46   : > { %635 = vmatprep.subr.bf16.mxu0 %v1770_v1  ;;  %1648 = vmatprep.subr.bf16.mxu1 %v1770_v1 }
  0x49   : > { %636 = vmatpush2.bf16.msra.mxu0 %v1689_v18  ;;  %1664 = vmatpush2.bf16.msra.mxu1 %v1689_v18 }
  0x4c   : > { %638 = vmatmul.mubr.bf16.vlgmr.msra.gmra.mxu0 %v1690_v19  ;;  %734 = vmatmul.mubr.bf16.vlgmr.msra.gmra.mxu1 %v1708_v20 }
  0x4d   : > { %645 = vmatprep.mubr.bf16.mxu0 %v1693_v21  ;;  %741 = vmatprep.mubr.bf16.mxu1 %v1714_v22 }
  0x54   : > { %646 = vmatmul.mubr.bf16.gmra.mxu0 %v1695_v23  ;;  %742 = vmatmul.mubr.bf16.gmra.mxu1 %v1716_v24 }
  0x55   : > { %653 = vmatprep.mubr.bf16.mxu0 %v1696_v25  ;;  %749 = vmatprep.mubr.bf16.mxu1 %v1720_v26 }
  0x5c   : > { %654 = vmatmul.mubr.bf16.gmra.mxu0 %v1698_v27  ;;  %750 = vmatmul.mubr.bf16.gmra.mxu1 %v1722_v28 }
  0x5d   : > { %661 = vmatprep.mubr.bf16.mxu0 %v1699_v29  ;;  %757 = vmatprep.mubr.bf16.mxu1 %v1726_v30 }
  0x64   : > { %662 = vmatmul.mubr.bf16.gmra.mxu0 %v1701_v31  ;;  %758 = vmatmul.mubr.bf16.gmra.mxu1 %v1728_v32 }
  0x65   : > { %669 = vmatprep.mubr.bf16.mxu0 %v1702_v33  ;;  %765 = vmatprep.mubr.bf16.mxu1 %v1732_v34 }
  0x6c   : > { %670 = vmatmul.mubr.bf16.gmra.mxu0 %v1704_v35  ;;  %766 = vmatmul.mubr.bf16.gmra.mxu1 %v1734_v36 }
  0x6d   : > { %677 = vmatprep.mubr.bf16.mxu0 %v1705_v37  ;;  %773 = vmatprep.mubr.bf16.mxu1 %v1738_v38 }
  0x74   : > { %678 = vmatmul.mubr.bf16.gmra.mxu0 %v1707_v39  ;;  %774 = vmatmul.mubr.bf16.gmra.mxu1 %v1740_v40 }
  0x75   : > { %685 = vmatprep.mubr.bf16.mxu0 %v1711_v41  ;;  %781 = vmatprep.mubr.bf16.mxu1 %v1744_v42 }
  0x7c   : > { %686 = vmatmul.mubr.bf16.gmra.mxu0 %v1713_v43  ;;  %782 = vmatmul.mubr.bf16.gmra.mxu1 %v1746_v44 }
  0x7d   : > { %693 = vmatprep.mubr.bf16.mxu0 %v1717_v45  ;;  %789 = vmatprep.mubr.bf16.mxu1 %v1747_v46 }
  0x84   : > { %694 = vmatmul.mubr.bf16.gmra.mxu0 %v1719_v47  ;;  %790 = vmatmul.mubr.bf16.gmra.mxu1 %v1749_v48 }
  0x85   : > { %701 = vmatprep.mubr.bf16.mxu0 %v1723_v49  ;;  %797 = vmatprep.mubr.bf16.mxu1 %v1750_v50 }
  0x8c   : > { %702 = vmatmul.mubr.bf16.gmra.mxu0 %v1725_v51  ;;  %798 = vmatmul.mubr.bf16.gmra.mxu1 %v1752_v52 }
  0x8d   : > { %709 = vmatprep.mubr.bf16.mxu0 %v1729_v53  ;;  %805 = vmatprep.mubr.bf16.mxu1 %v1753_v54 }
  0x94   : > { %710 = vmatmul.mubr.bf16.gmra.mxu0 %v1731_v55  ;;  %806 = vmatmul.mubr.bf16.gmra.mxu1 %v1755_v56 }
  0x95   : > { %717 = vmatprep.mubr.bf16.mxu0 %v1735_v57  ;;  %813 = vmatprep.mubr.bf16.mxu1 %v1756_v58 }
  0x9c   : > { %718 = vmatmul.mubr.bf16.gmra.mxu0 %v1737_v59  ;;  %814 = vmatmul.mubr.bf16.gmra.mxu1 %v1758_v60 }
  0x9d   : > { %725 = vmatprep.mubr.bf16.mxu0 %v1741_v61  ;;  %821 = vmatprep.mubr.bf16.mxu1 %v1759_v62 }
  0xa4   : > { %726 = vmatmul.mubr.bf16.gmra.mxu0 %v1743_v63  ;;  %822 = vmatmul.mubr.bf16.gmra.mxu1 %v1761_v0 }
 0x10c   : > { %v1938_v1 = vpop.f32.mrf.mxu0  ;;  %v1940_v2 = vpop.f32.mrf.mxu1 }
 0x10d   : > { %v1123_v62 = vmul.f32 %v1938_v1, %v1938_v1 }
 0x10e   : > { %v641_v3 = vpop.f32.mrf.mxu0  ;;  %v737_v4 = vpop.f32.mrf.mxu1 }
 0x110   : > { %v1948_v5 = vpop.f32.mrf.mxu0  ;;  %v1950_v6 = vpop.f32.mrf.mxu1 }
 0x111   : > { %v1493_v7 = vpack.c.bf16 %v1948_v5, %v1938_v1  ;;  %v1553_v8 = vpack.c.bf16 %v1950_v6, %v1940_v2  ;;  %v1124_v59 = vmul.f32 %v1948_v5, %v1948_v5  ;;  %v1070_v4 = vadd.f32 %v1948_v5, %v1938_v1 }
 0x112   : > { %v644_v9 = vpop.f32.mrf.mxu0  ;;  %v740_v10 = vpop.f32.mrf.mxu1 }
 0x113   : > { %1494 = vst [vmem:[%s1946_s4] sm:$0xff] %v1493_v7   ;;  %1621 = vst [vmem:[%s1946_s4 + $0x60] sm:$0xff] %v1553_v8   ;;  %v1171_v7 = vadd.f32 %v1124_v59, %v1123_v62 }
 0x114   : > { %v1958_v11 = vpop.f32.mrf.mxu0  ;;  %v1960_v12 = vpop.f32.mrf.mxu1 }
 0x115   : > { %v1125_v63 = vmul.f32 %v1958_v11, %v1958_v11 }
 0x116   : > { %v649_v13 = vpop.f32.mrf.mxu0  ;;  %v745_v14 = vpop.f32.mrf.mxu1 }
 0x117   : > { %v1071_v13 = vadd.f32 %v1070_v4, %v1958_v11  ;;  %v1172_v14 = vadd.f32 %v1171_v7, %v1125_v63 }
 0x118   : > { %v1962_v15 = vpop.f32.mrf.mxu0  ;;  %v1964_v16 = vpop.f32.mrf.mxu1 }
 0x119   : > { %v1498_v17 = vpack.c.bf16 %v1962_v15, %v1958_v11  ;;  %v1558_v18 = vpack.c.bf16 %v1964_v16, %v1960_v12  ;;  %v1126_v8 = vmul.f32 %v1962_v15, %v1962_v15  ;;  %v1072_v1 = vadd.f32 %v1071_v13, %v1962_v15 }
 0x11a   : > { %v652_v19 = vpop.f32.mrf.mxu0  ;;  %v748_v20 = vpop.f32.mrf.mxu1 }
 0x11b   : > { %1610 = vst [vmem:[%s1946_s4 + $0x8] sm:$0xff] %v1498_v17   ;;  %1622 = vst [vmem:[%s1946_s4 + $0x68] sm:$0xff] %v1558_v18  }
 0x11c   : > { %v1972_v21 = vpop.f32.mrf.mxu0  ;;  %v1974_v22 = vpop.f32.mrf.mxu1 }
 0x11d   : > { %v1127_v17 = vmul.f32 %v1972_v21, %v1972_v21 }
 0x11e   : > { %v657_v23 = vpop.f32.mrf.mxu0  ;;  %v753_v24 = vpop.f32.mrf.mxu1 }
 0x11f   : > { %v1173_v23 = vadd.f32 %v1172_v14, %v1126_v8 }
 0x120   : > { %v1976_v25 = vpop.f32.mrf.mxu0  ;;  %v1978_v26 = vpop.f32.mrf.mxu1 }
 0x121   : > { %v1503_v27 = vpack.c.bf16 %v1976_v25, %v1972_v21  ;;  %v1563_v28 = vpack.c.bf16 %v1978_v26, %v1974_v22  ;;  %v1128_v11 = vmul.f32 %v1976_v25, %v1976_v25 }
 0x122   : > { %v660_v29 = vpop.f32.mrf.mxu0  ;;  %v756_v30 = vpop.f32.mrf.mxu1 }
 0x123   : > { %1611 = vst [vmem:[%s1946_s4 + $0x10] sm:$0xff] %v1503_v27   ;;  %1623 = vst [vmem:[%s1946_s4 + $0x70] sm:$0xff] %v1563_v28   ;;  %v1073_v28 = vadd.f32 %v1072_v1, %v1972_v21  ;;  %v1174_v29 = vadd.f32 %v1173_v23, %v1127_v17 }
 0x124   : > { %v1986_v31 = vpop.f32.mrf.mxu0  ;;  %v1988_v32 = vpop.f32.mrf.mxu1 }
 0x125   : > { %v1129_v15 = vmul.f32 %v1986_v31, %v1986_v31 }
 0x126   : > { %v665_v33 = vpop.f32.mrf.mxu0  ;;  %v761_v34 = vpop.f32.mrf.mxu1 }
 0x127   : > { %v1074_v34 = vadd.f32 %v1073_v28, %v1976_v25 }
 0x128   : > { %v1990_v35 = vpop.f32.mrf.mxu0  ;;  %v1992_v36 = vpop.f32.mrf.mxu1 }
 0x129   : > { %v1508_v37 = vpack.c.bf16 %v1990_v35, %v1986_v31  ;;  %v1568_v38 = vpack.c.bf16 %v1992_v36, %v1988_v32  ;;  %v1075_v21 = vadd.f32 %v1074_v34, %v1986_v31 }
 0x12a   : > { %v668_v39 = vpop.f32.mrf.mxu0  ;;  %v764_v40 = vpop.f32.mrf.mxu1 }
 0x12b   : > { %1612 = vst [vmem:[%s1946_s4 + $0x18] sm:$0xff] %v1508_v37   ;;  %1624 = vst [vmem:[%s1946_s4 + $0x78] sm:$0xff] %v1568_v38   ;;  %v1175_v37 = vadd.f32 %v1174_v29, %v1128_v11  ;;  %v1130_v38 = vmul.f32 %v1990_v35, %v1990_v35 }
 0x12c   : > { %v2000_v41 = vpop.f32.mrf.mxu0  ;;  %v2002_v42 = vpop.f32.mrf.mxu1 }
 0x12e   : > { %v673_v43 = vpop.f32.mrf.mxu0  ;;  %v769_v44 = vpop.f32.mrf.mxu1 }
 0x12f   : > { %v1176_v43 = vadd.f32 %v1175_v37, %v1129_v15  ;;  %v1131_v44 = vmul.f32 %v2000_v41, %v2000_v41 }
 0x130   : > { %v2004_v45 = vpop.f32.mrf.mxu0  ;;  %v2006_v46 = vpop.f32.mrf.mxu1 }
 0x131   : > { %v1513_v47 = vpack.c.bf16 %v2004_v45, %v2000_v41  ;;  %v1573_v48 = vpack.c.bf16 %v2006_v46, %v2002_v42 }
 0x132   : > { %v676_v49 = vpop.f32.mrf.mxu0  ;;  %v772_v50 = vpop.f32.mrf.mxu1 }
 0x133   : > { %1613 = vst [vmem:[%s1946_s4 + $0x20] sm:$0xff] %v1513_v47   ;;  %1625 = vst [vmem:[%s1946_s4 + $0x80] sm:$0xff] %v1573_v48   ;;  %v1076_v49 = vadd.f32 %v1075_v21, %v1990_v35 }
 0x134   : > { %v2014_v51 = vpop.f32.mrf.mxu0  ;;  %v2016_v52 = vpop.f32.mrf.mxu1 }
 0x135   : > { %v1077_v31 = vadd.f32 %v1076_v49, %v2000_v41 }
 0x136   : > { %v681_v53 = vpop.f32.mrf.mxu0  ;;  %v777_v54 = vpop.f32.mrf.mxu1 }
 0x137   : > { %v1177_v53 = vadd.f32 %v1176_v43, %v1130_v38  ;;  %v1132_v54 = vmul.f32 %v2004_v45, %v2004_v45  ;;  %v1078_v62 = vadd.f32 %v1077_v31, %v2004_v45 }
 0x138   : > { %v2018_v55 = vpop.f32.mrf.mxu0  ;;  %v2020_v56 = vpop.f32.mrf.mxu1 }
 0x139   : > { %v1518_v57 = vpack.c.bf16 %v2018_v55, %v2014_v51  ;;  %v1578_v58 = vpack.c.bf16 %v2020_v56, %v2016_v52  ;;  %v1178_v59 = vadd.f32 %v1177_v53, %v1131_v44  ;;  %v1134_v4 = vmul.f32 %v2018_v55, %v2018_v55 }
 0x13a   : > { %v684_v60 = vpop.f32.mrf.mxu0  ;;  %v780_v61 = vpop.f32.mrf.mxu1  ;;  %v1079_v41 = vadd.f32 %v1078_v62, %v2014_v51 }
 0x13b   : > { %1614 = vst [vmem:[%s1946_s4 + $0x28] sm:$0xff] %v1518_v57   ;;  %1626 = vst [vmem:[%s1946_s4 + $0x88] sm:$0xff] %v1578_v58   ;;  %v1133_v60 = vmul.f32 %v2014_v51, %v2014_v51  ;;  %v1179_v63 = vadd.f32 %v1178_v59, %v1132_v54 }
 0x13c   : > { %v2034_v0 = vpop.f32.mrf.mxu0  ;;  %v2036_v3 = vpop.f32.mrf.mxu1  ;;  %v1080_v17 = vadd.f32 %v1079_v41, %v2018_v55 }
 0x13e   : > { %v689_v9 = vpop.f32.mrf.mxu0  ;;  %v785_v10 = vpop.f32.mrf.mxu1  ;;  %v1081_v51 = vadd.f32 %v1080_v17, %v2034_v0 }
 0x13f   : > { %v1180_v9 = vadd.f32 %v1179_v63, %v1133_v60  ;;  %v1135_v10 = vmul.f32 %v2034_v0, %v2034_v0 }
 0x140   : > { %v2045_v18 = vpop.f32.mrf.mxu0  ;;  %v2047_v19 = vpop.f32.mrf.mxu1 }
 0x141   : > { %v1523_v5 = vpack.c.bf16 %v2045_v18, %v2034_v0  ;;  %v1583_v20 = vpack.c.bf16 %v2047_v19, %v2036_v3  ;;  %v1082_v55 = vadd.f32 %v1081_v51, %v2045_v18 }
 0x142   : > { %v692_v24 = vpop.f32.mrf.mxu0  ;;  %v788_v27 = vpop.f32.mrf.mxu1 }
 0x143   : > { %1615 = vst [vmem:[%s1946_s4 + $0x30] sm:$0xff] %v1523_v5   ;;  %1627 = vst [vmem:[%s1946_s4 + $0x90] sm:$0xff] %v1583_v20   ;;  %v1181_v5 = vadd.f32 %v1180_v9, %v1134_v4  ;;  %v1136_v20 = vmul.f32 %v2045_v18, %v2045_v18 }
 0x144   : > { %v695_v30 = vpop.f32.mrf.mxu0  ;;  %v2061_v33 = vpop.f32.mrf.mxu1 }
 0x145   : > { %v1182_v24 = vadd.f32 %v1181_v5, %v1135_v10  ;;  %v1137_v27 = vmul.f32 %v695_v30, %v695_v30 }
 0x146   : > { %v697_v39 = vpop.f32.mrf.mxu0  ;;  %v793_v40 = vpop.f32.mrf.mxu1 }
 0x147   : > { %v1183_v15 = vadd.f32 %v1182_v24, %v1136_v20  ;;  %v1083_v39 = vadd.f32 %v1082_v55, %v695_v30 }
 0x148   : > { %v698_v47 = vpop.f32.mrf.mxu0  ;;  %v2069_v48 = vpop.f32.mrf.mxu1 }
 0x149   : > { %v1528_v25 = vpack.c.bf16 %v698_v47, %v695_v30  ;;  %v1588_v50 = vpack.c.bf16 %v2069_v48, %v2061_v33  ;;  %v1138_v34 = vmul.f32 %v698_v47, %v698_v47  ;;  %v1184_v40 = vadd.f32 %v1183_v15, %v1137_v27 }
 0x14a   : > { %v700_v57 = vpop.f32.mrf.mxu0  ;;  %v796_v58 = vpop.f32.mrf.mxu1  ;;  %v1084_v44 = vadd.f32 %v1083_v39, %v698_v47 }
 0x14b   : > { %1616 = vst [vmem:[%s1946_s4 + $0x38] sm:$0xff] %v1528_v25   ;;  %1628 = vst [vmem:[%s1946_s4 + $0x98] sm:$0xff] %v1588_v50   ;;  %v1185_v50 = vadd.f32 %v1184_v40, %v1138_v34 }
 0x14c   : > { %v703_v61 = vpop.f32.mrf.mxu0  ;;  %v2081_v35 = vpop.f32.mrf.mxu1 }
 0x14d   : > { %v1139_v21 = vmul.f32 %v703_v61, %v703_v61  ;;  %v1085_v57 = vadd.f32 %v1084_v44, %v703_v61 }
 0x14e   : > { %v705_v7 = vpop.f32.mrf.mxu0  ;;  %v801_v8 = vpop.f32.mrf.mxu1 }
 0x14f   : > { %v1186_v58 = vadd.f32 %v1185_v50, %v1139_v21 }
 0x150   : > { %v706_v13 = vpop.f32.mrf.mxu0  ;;  %v2089_v14 = vpop.f32.mrf.mxu1 }
 0x151   : > { %v1533_v45 = vpack.c.bf16 %v706_v13, %v703_v61  ;;  %v1593_v1 = vpack.c.bf16 %v2089_v14, %v2081_v35  ;;  %v1140_v53 = vmul.f32 %v706_v13, %v706_v13  ;;  %v1086_v60 = vadd.f32 %v1085_v57, %v706_v13 }
 0x152   : > { %v708_v23 = vpop.f32.mrf.mxu0  ;;  %v804_v11 = vpop.f32.mrf.mxu1  ;;  %v1148_v57 = vmul.f32 %v1950_v6, %v1950_v6 }
 0x153   : > { %1617 = vst [vmem:[%s1946_s4 + $0x40] sm:$0xff] %v1533_v45   ;;  %1629 = vst [vmem:[%s1946_s4 + $0xa0] sm:$0xff] %v1593_v1   ;;  %v1187_v62 = vadd.f32 %v1186_v58, %v1140_v53  ;;  %v1147_v53 = vmul.f32 %v1940_v2, %v1940_v2 }
 0x154   : > { %v711_v28 = vpop.f32.mrf.mxu0  ;;  %v2099_v29 = vpop.f32.mrf.mxu1 }
 0x155   : > { %v1141_v31 = vmul.f32 %v711_v28, %v711_v28  ;;  %v1087_v7 = vadd.f32 %v1086_v60, %v711_v28 }
 0x156   : > { %v713_v37 = vpop.f32.mrf.mxu0  ;;  %v809_v38 = vpop.f32.mrf.mxu1 }
 0x157   : > { %v1188_v8 = vadd.f32 %v1187_v62, %v1141_v31 }
 0x158   : > { %v714_v43 = vpop.f32.mrf.mxu0  ;;  %v2102_v0 = vpop.f32.mrf.mxu1 }
 0x159   : > { %v1538_v49 = vpack.c.bf16 %v714_v43, %v711_v28  ;;  %v1598_v25 = vpack.c.bf16 %v2102_v0, %v2099_v29  ;;  %v1142_v63 = vmul.f32 %v714_v43, %v714_v43  ;;  %v1088_v61 = vadd.f32 %v1087_v7, %v714_v43 }
 0x15a   : > { %v716_v18 = vpop.f32.mrf.mxu0  ;;  %v812_v54 = vpop.f32.mrf.mxu1 }
 0x15b   : > { %1618 = vst [vmem:[%s1946_s4 + $0x48] sm:$0xff] %v1538_v49   ;;  %1630 = vst [vmem:[%s1946_s4 + $0xa8] sm:$0xff] %v1598_v25   ;;  %v1189_v1 = vadd.f32 %v1188_v8, %v1142_v63  ;;  %v1150_v63 = vmul.f32 %v1964_v16, %v1964_v16 }
 0x15c   : > { %v719_v30 = vpop.f32.mrf.mxu0  ;;  %v2108_v59 = vpop.f32.mrf.mxu1 }
 0x15d   : > { %v1143_v41 = vmul.f32 %v719_v30, %v719_v30  ;;  %v1089_v23 = vadd.f32 %v1088_v61, %v719_v30 }
 0x15e   : > { %v721_v47 = vpop.f32.mrf.mxu0  ;;  %v817_v4 = vpop.f32.mrf.mxu1 }
 0x15f   : > { %v1190_v11 = vadd.f32 %v1189_v1, %v1143_v41  ;;  %v1151_v4 = vmul.f32 %v1974_v22, %v1974_v22 }
 0x160   : > { %v722_v9 = vpop.f32.mrf.mxu0  ;;  %v2110_v10 = vpop.f32.mrf.mxu1 }
 0x161   : > { %v1543_v17 = vpack.c.bf16 %v722_v9, %v719_v30  ;;  %v1603_v45 = vpack.c.bf16 %v2110_v10, %v2108_v59  ;;  %v1144_v5 = vmul.f32 %v722_v9, %v722_v9  ;;  %v1090_v27 = vadd.f32 %v1089_v23, %v722_v9 }
 0x162   : > { %v724_v13 = vpop.f32.mrf.mxu0  ;;  %v820_v20 = vpop.f32.mrf.mxu1  ;;  %v1149_v30 = vmul.f32 %v1960_v12, %v1960_v12 }
 0x163   : > { %1619 = vst [vmem:[%s1946_s4 + $0x50] sm:$0xff] %v1543_v17   ;;  %1631 = vst [vmem:[%s1946_s4 + $0xb0] sm:$0xff] %v1603_v45   ;;  %v1191_v55 = vadd.f32 %v1190_v11, %v1144_v5 }
 0x164   : > { %v727_v51 = vpop.f32.mrf.mxu0  ;;  %v2116_v24 = vpop.f32.mrf.mxu1 }
 0x165   : > { %v1145_v28 = vmul.f32 %v727_v51, %v727_v51  ;;  %v1091_v37 = vadd.f32 %v1090_v27, %v727_v51 }
 0x166   : > { %v729_v15 = vpop.f32.mrf.mxu0  ;;  %v825_v34 = vpop.f32.mrf.mxu1 }
 0x167   : > { %v1192_v38 = vadd.f32 %v1191_v55, %v1145_v28  ;;  %v1160_v34 = vmul.f32 %v2047_v19, %v2047_v19 }
 0x168   : > { %v730_v39 = vpop.f32.mrf.mxu0  ;;  %v2118_v40 = vpop.f32.mrf.mxu1 }
 0x169   : > { %v1548_v21 = vpack.c.bf16 %v730_v39, %v727_v51  ;;  %v1092_v43 = vadd.f32 %v1091_v37, %v730_v39  ;;  %v1146_v44 = vmul.f32 %v730_v39, %v730_v39  ;;  %v1608_v49 = vpack.c.bf16 %v2118_v40, %v2116_v24 }
 0x16a   : > { %v732_v25 = vpop.f32.mrf.mxu0  ;;  %v828_v50 = vpop.f32.mrf.mxu1  ;;  %v1161_v39 = vmul.f32 %v2061_v33, %v2061_v33 }
 0x16b   : > { %1620 = vst [vmem:[%s1946_s4 + $0x58] sm:$0xff] %v1548_v21   ;;  %v1093_v18 = vadd.f32 %v1092_v43, %v1940_v2  ;;  %v1193_v54 = vadd.f32 %v1192_v38, %v1146_v44  ;;  %1632 = vst [vmem:[%s1946_s4 + $0xb8] sm:$0xff] %v1608_v49   ;;  %v1162_v43 = vmul.f32 %v2069_v48, %v2069_v48 }
 0x16c   : > { %v1163_v49 = vmul.f32 %v2081_v35, %v2081_v35  ;;  %v1164_v50 = vmul.f32 %v2089_v14, %v2089_v14 }
 0x16d   : > { %v1094_v58 = vadd.f32 %v1093_v18, %v1950_v6  ;;  %v1194_v31 = vadd.f32 %v1193_v54, %v1147_v53  ;;  %v1152_v6 = vmul.f32 %v1978_v26, %v1978_v26  ;;  %v1165_v18 = vmul.f32 %v2099_v29, %v2099_v29 }
 0x16f   : > { %v1095_v60 = vadd.f32 %v1094_v58, %v1960_v12  ;;  %v1195_v62 = vadd.f32 %v1194_v31, %v1148_v57  ;;  %v1153_v12 = vmul.f32 %v1988_v32, %v1988_v32  ;;  %v1166_v57 = vmul.f32 %v2102_v0, %v2102_v0 }
 0x170   : > { %v1167_v31 = vmul.f32 %v2108_v59, %v2108_v59 }
 0x171   : > { %v1096_v47 = vadd.f32 %v1095_v60, %v1964_v16  ;;  %v1196_v2 = vadd.f32 %v1195_v62, %v1149_v30  ;;  %v1154_v16 = vmul.f32 %v1992_v36, %v1992_v36 }
 0x173   : > { %v1097_v7 = vadd.f32 %v1096_v47, %v1974_v22  ;;  %v1197_v8 = vadd.f32 %v1196_v2, %v1150_v63  ;;  %v1155_v22 = vmul.f32 %v2002_v42, %v2002_v42  ;;  %v1169_v63 = vmul.f32 %v2116_v24, %v2116_v24 }
 0x174   : > { %v1170_v2 = vmul.f32 %v2118_v40, %v2118_v40 }
 0x175   : > { %v1098_v41 = vadd.f32 %v1097_v7, %v1978_v26  ;;  %v1198_v9 = vadd.f32 %v1197_v8, %v1151_v4  ;;  %v1156_v26 = vmul.f32 %v2006_v46, %v2006_v46 }
 0x177   : > { %v1199_v61 = vadd.f32 %v1198_v9, %v1152_v6  ;;  %v1099_v17 = vadd.f32 %v1098_v41, %v1988_v32  ;;  %v1157_v32 = vmul.f32 %v2016_v52, %v2016_v52  ;;  %v1224_v6 = vlaneseq }
 0x179   : > { %v1100_v45 = vadd.f32 %v1099_v17, %v1992_v36  ;;  %v1200_v1 = vadd.f32 %v1199_v61, %v1153_v12  ;;  %v1158_v36 = vmul.f32 %v2020_v56, %v2020_v56  ;;  %v1225_v61 = vshrl.u32 %v1224_v6, 7 }
 0x17b   : > { %v1101_v5 = vadd.f32 %v1100_v45, %v2002_v42  ;;  %v1201_v13 = vadd.f32 %v1200_v1, %v1154_v16  ;;  %v1159_v42 = vmul.f32 %v2036_v3, %v2036_v3  ;;  %vm1227_vm0 = vcmp.eq.s32.totalorder %v1225_v61, 1 }
 0x17c   : > { %vm1226_vm1 = vcmp.eq.s32.totalorder %v1225_v61, 0 }
 0x17d   : > { %v1102_v20 = vadd.f32 %v1101_v5, %v2006_v46  ;;  %v1202_v23 = vadd.f32 %v1201_v13, %v1155_v22 }
 0x17f   : > { %v1103_v11 = vadd.f32 %v1102_v20, %v2016_v52  ;;  %v1203_v51 = vadd.f32 %v1202_v23, %v1156_v26 }
 0x181   : > { %v1104_v27 = vadd.f32 %v1103_v11, %v2020_v56  ;;  %v1204_v28 = vadd.f32 %v1203_v51, %v1157_v32 }
 0x183   : > { %v1105_v55 = vadd.f32 %v1104_v27, %v2036_v3  ;;  %v1205_v15 = vadd.f32 %v1204_v28, %v1158_v36 }
 0x185   : > { %v1106_v46 = vadd.f32 %v1105_v55, %v2047_v19  ;;  %v1206_v37 = vadd.f32 %v1205_v15, %v1159_v42 }
 0x187   : > { %v1207_v52 = vadd.f32 %v1206_v37, %v1160_v34  ;;  %v1107_v38 = vadd.f32 %v1106_v46, %v2061_v33 }
 0x189   : > { %v1208_v56 = vadd.f32 %v1207_v52, %v1161_v39  ;;  %v1108_v21 = vadd.f32 %v1107_v38, %v2069_v48 }
 0x18b   : > { %v1209_v3 = vadd.f32 %v1208_v56, %v1162_v43  ;;  %v1109_v44 = vadd.f32 %v1108_v21, %v2081_v35 }
 0x18d   : > { %v1210_v19 = vadd.f32 %v1209_v3, %v1163_v49  ;;  %v1110_v25 = vadd.f32 %v1109_v44, %v2089_v14 }
 0x18f   : > { %v1211_v53 = vadd.f32 %v1210_v19, %v1164_v50  ;;  %v1111_v33 = vadd.f32 %v1110_v25, %v2099_v29  ;;  %v1168_v29 = vmul.f32 %v2110_v10, %v2110_v10 }
 0x191   : > { %v1212_v54 = vadd.f32 %v1211_v53, %v1165_v18  ;;  %v1112_v48 = vadd.f32 %v1111_v33, %v2102_v0 }
 0x193   : > { %v1213_v35 = vadd.f32 %v1212_v54, %v1166_v57  ;;  %v1113_v58 = vadd.f32 %v1112_v48, %v2108_v59 }
 0x195   : > { %v1214_v14 = vadd.f32 %v1213_v35, %v1167_v31  ;;  %v1114_v30 = vadd.f32 %v1113_v58, %v2110_v10 }
 0x197   : > { %v1215_v60 = vadd.f32 %v1214_v14, %v1168_v29  ;;  %v1115_v62 = vadd.f32 %v1114_v30, %v2116_v24 }
 0x199   : > { %v1216_v0 = vadd.f32 %v1215_v60, %v1169_v63  ;;  %v1116_v47 = vadd.f32 %v1115_v62, %v2118_v40 }
 0x19b   : > { %v1117_v59 = vrot.slane %v1116_v47, 4  ;;  %v1217_v4 = vadd.f32 %v1216_v0, %v1170_v2 }
 0x19d   : > { %v1118_v7 = vadd.f32 %v1117_v59, %v1116_v47  ;;  %v1218_v8 = vrot.slane %v1217_v4, 4 }
 0x19f   : > { %v1119_v41 = vrot.slane %v1118_v7, 2  ;;  %v1219_v10 = vadd.f32 %v1218_v8, %v1217_v4 }
 0x1a1   : > { %v1120_v9 = vadd.f32 %v1119_v41, %v1118_v7  ;;  %v1220_v12 = vrot.slane %v1219_v10, 2 }
 0x1a3   : > { %v1221_v17 = vadd.f32 %v1220_v12, %v1219_v10  ;;  %v1121_v24 = vrot.slane %v1120_v9, 1 }
 0x1a5   : > { %v1222_v16 = vrot.slane %v1221_v17, 1  ;;  %v1122_v40 = vadd.f32 %v1121_v24, %v1120_v9 }
 0x1a7   : > { %v1223_v45 = vadd.f32 %v1222_v16, %v1221_v17 }
 0x1a9   : > { %v1228_v1 = vsel %vm1227_vm0, %v1223_v45, 0.0 }
 0x1aa   : > { %v1229_v22 = vsel %vm1226_vm1, %v1122_v40, %v1228_v1 }
 0x1ab   : > { %1230 = vst [vmem:[%s187_s6] sm:$0xff] %v1229_v22 }
 0x1ac PF: > { %s14_s12 = sadd.s32 1, %s1768_s12  }
 0x1ad   : > { %p11_p5 = scmp.ge.s32.totalorder %s14_s12, 5  }
 0x1af   :  { %13 = sbr.rel (!%p11_p5) target bundleno = 1 (0x1), region = 70 }

// kernel: resnet18_forward.13
= control target key start
LH: loop header
LB: loop body
LE: loop exit
PB: predicated region body
PF: predicated region fallthrough
CT: control target
= control target key end

     0   :  { %s2889_s12 = smov 0   ;;  %s3359_s0 = inlined_call_operand.vmem [shape: bf16[288,1152], index: 0, kind: input, shape index: {}]   ;;  %s3360_s1 = inlined_call_operand.vmem [shape: bf16[1152,128], index: 1, kind: input, shape index: {}]   ;;  %s3361_s2 = inlined_call_operand.vmem [shape: bf16[288,128], index: 2, kind: output, shape index: {0}]   ;;  %s3362_s3 = inlined_call_operand.vmem [shape: f32[2,8,128], index: 3, kind: output, shape index: {1}]  }
   0x1 LB: > { %s2895_s13 = sadd.s32 4294967295, %s2865_s12   ;;  %p2046_p0 = scmp.ge.s32.totalorder %s2865_s12, 1  ;;  %s2865_s12 = sphi %s2889_s12, %s14_s12  }
   0x2   : > { %p142_p1 = scmp.lt.s32.totalorder %s2865_s12, 3 }
   0x4   : > { %p143_p2 = pnand %p2046_p0, %p142_p1 }
   0x5   : > { %s171_s16 = smul.u32 (!%p143_p2), 18, %s2895_s13  ;;  %p184_p4 = scmp.lt.s32.totalorder (!%p143_p2), %s2895_s13, 1 }
   0x6   : > { %146 = sbr.rel (%p143_p2) target bundleno = 444 (0x1bc), region = 28 }
   0x7   : > { %p172_p3 = scmp.lt.s32.totalorder (!%p143_p2), %s171_s16, 35 }
   0xb   : > { %v2670_v0 = vld [vmem:[%s3360_s1 + $0x78] sm:$0xff]   ;;  %v2672_v2 = vld [vmem:[%s3360_s1 + $0x70] sm:$0xff]   ;;  %v2674_v4 = vld [vmem:[%s3360_s1 + $0x68] sm:$0xff]   ;;  %s3364_s16 = smov (!%p172_p3, %s171_s16), 35  ;;  %vm2868_vm0 = vmmov 0   ;;  %s3366_s13 = smov (!%p184_p4, %s2895_s13), 1 }
   0xc   : > { %v2671_v1 = vld [vmem:[%s3360_s1 + $0x38] sm:$0xff]   ;;  %2643 = vmatprep.subr.bf16.mxu1 %v2670_v0  ;;  %2294 = vmatprep.subr.bf16.mxu0 %v2670_v0  ;;  %v2673_v3 = vld [vmem:[%s3360_s1 + $0x30] sm:$0xff]   ;;  %v2675_v5 = vld [vmem:[%s3360_s1 + $0x28] sm:$0xff]   ;;  %s2659_s29 = smul.u32 36, %s3364_s16 }
   0xd   : > { %2651 = vmatpush3.bf16.msra.mxu1 %v2671_v1  ;;  %2295 = vmatpush3.bf16.msra.mxu0 %v2671_v1  ;;  %v2676_v6 = vld [vmem:[%s3360_s1 + $0x60] sm:$0xff]   ;;  %v2678_v8 = vld [vmem:[%s3360_s1 + $0x58] sm:$0xff]   ;;  %v2680_v10 = vld [vmem:[%s3360_s1 + $0x50] sm:$0xff]  }
   0xe   : > { %2644 = vmatprep.subr.bf16.mxu1 %v2672_v2  ;;  %2296 = vmatprep.subr.bf16.mxu0 %v2672_v2  ;;  %v2677_v7 = vld [vmem:[%s3360_s1 + $0x20] sm:$0xff]   ;;  %s2933_s9 = scalar_lea.vmem %s3359_s0, %s2659_s29  ;;  %v2679_v9 = vld [vmem:[%s3360_s1 + $0x18] sm:$0xff]   ;;  %v2681_v12 = vld [vmem:[%s3360_s1 + $0x10] sm:$0xff]  }
   0xf   : > { %v2688_v11 = vld [vmem:[%s2933_s9 + $0x124] ss:$36 sps:$4 sm:$0xff]   ;;  %v2689_v18 = vld [vmem:[%s3360_s1 + $0xf8] sm:$0xff]   ;;  %v2693_v22 = vld [vmem:[%s2933_s9 + $0x16c] ss:$36 sps:$4 sm:$0xff]  }
  0x10   : > { %v2682_v13 = vld [vmem:[%s3360_s1 + $0x48] sm:$0xff]   ;;  %1333 = vmatprep.mubr.bf16.mxu1 %v2688_v11  ;;  %v2684_v16 = vld [vmem:[%s3360_s1 + $0x40] sm:$0xff]   ;;  %v2699_v20 = vld [vmem:[%s3360_s1 + $0x178] sm:$0xff]  }
  0x11   : > { %2652 = vmatpush3.bf16.msra.mxu1 %v2673_v3  ;;  %2297 = vmatpush3.bf16.msra.mxu0 %v2673_v3  ;;  %v2683_v14 = vld [vmem:[%s3360_s1 + $0x8] sm:$0xff]   ;;  %v2685_v17 = vld [vmem:[%s3360_s1] sm:$0xff]   ;;  %v2690_v21 = vld [vmem:[%s3360_s1 + $0xb8] sm:$0xff]  }
  0x12   : > { %2645 = vmatprep.subr.bf16.mxu1 %v2674_v4  ;;  %2298 = vmatprep.subr.bf16.mxu0 %v2674_v4  ;;  %v2697_v15 = vld [vmem:[%s2933_s9 + $0x4] ss:$36 sps:$4 sm:$0xff]   ;;  %v2691_v23 = vld [vmem:[%s3360_s1 + $0xf0] sm:$0xff]   ;;  %v2701_v25 = vld [vmem:[%s3360_s1 + $0x138] sm:$0xff]  }
  0x13   : > { %1301 = vmatprep.mubr.bf16.mxu0 %v2697_v15  ;;  %v2686_v19 = vld [vmem:[%s2933_s9 + $0x120] ss:$36 sps:$4 sm:$0xff]   ;;  %v2703_v26 = vld [vmem:[%s3360_s1 + $0x170] sm:$0xff]   ;;  %v2700_v29 = vld [vmem:[%s3360_s1 + $0xe8] sm:$0xff]  }
  0x14   : > { %v2695_v24 = vld [vmem:[%s2933_s9] ss:$36 sps:$4 sm:$0xff]   ;;  %v2708_v27 = vld [vmem:[%s2933_s9 + $0x4c] ss:$36 sps:$4 sm:$0xff]   ;;  %v2705_v33 = vld [vmem:[%s2933_s9 + $0x1b4] ss:$36 sps:$4 sm:$0xff]  }
  0x15   : > { %2653 = vmatpush3.bf16.msra.mxu1 %v2675_v5  ;;  %2299 = vmatpush3.bf16.msra.mxu0 %v2675_v5  ;;  %v2692_v28 = vld [vmem:[%s3360_s1 + $0xb0] sm:$0xff]   ;;  %v2698_v30 = vld [vmem:[%s2933_s9 + $0x168] ss:$36 sps:$4 sm:$0xff]   ;;  %v2707_v36 = vld [vmem:[%s3360_s1 + $0xe0] sm:$0xff]  }
  0x16   : > { %2646 = vmatprep.subr.bf16.mxu1 %v2676_v6  ;;  %2300 = vmatprep.subr.bf16.mxu0 %v2676_v6  ;;  %v2704_v31 = vld [vmem:[%s3360_s1 + $0x130] sm:$0xff]   ;;  %v2702_v32 = vld [vmem:[%s3360_s1 + $0xa8] sm:$0xff]   ;;  %v2717_v38 = vld [vmem:[%s3360_s1 + $0x160] sm:$0xff]   ;;  %v2867_v6 = vmov 0.0  }
  0x17   : > { %v2713_v34 = vld [vmem:[%s3360_s1 + $0x168] sm:$0xff]   ;;  %v2711_v39 = vld [vmem:[%s3360_s1 + $0xa0] sm:$0xff]   ;;  %v2721_v40 = vld [vmem:[%s2933_s9 + $0x94] ss:$36 sps:$4 sm:$0xff]  }
  0x18   : > { %v2712_v35 = vld [vmem:[%s2933_s9 + $0x48] ss:$36 sps:$4 sm:$0xff]   ;;  %v2715_v41 = vld [vmem:[%s3360_s1 + $0xd8] sm:$0xff]   ;;  %v2710_v42 = vld [vmem:[%s2933_s9 + $0x1b0] ss:$36 sps:$4 sm:$0xff]  }
  0x19   : > { %2654 = vmatpush3.bf16.msra.mxu1 %v2677_v7  ;;  %2301 = vmatpush3.bf16.msra.mxu0 %v2677_v7  ;;  %v2714_v37 = vld [vmem:[%s3360_s1 + $0x128] sm:$0xff]   ;;  %v2718_v43 = vld [vmem:[%s3360_s1 + $0x120] sm:$0xff]   ;;  %v2716_v44 = vld [vmem:[%s3360_s1 + $0x98] sm:$0xff]  }
  0x1a   : > { %2647 = vmatprep.subr.bf16.mxu1 %v2678_v8  ;;  %2302 = vmatprep.subr.bf16.mxu0 %v2678_v8  ;;  %v2719_v45 = vld [vmem:[%s2933_s9 + $0x1fc] ss:$36 sps:$4 sm:$0xff]   ;;  %v2724_v47 = vld [vmem:[%s2933_s9 + $0x90] ss:$36 sps:$4 sm:$0xff]   ;;  %v2730_v52 = vld [vmem:[%s3360_s1 + $0xc8] sm:$0xff]  }
  0x1b   : > { %v2726_v46 = vld [vmem:[%s3360_s1 + $0x158] sm:$0xff]   ;;  %v2725_v48 = vld [vmem:[%s3360_s1 + $0xd0] sm:$0xff]   ;;  %v2732_v55 = vld [vmem:[%s2933_s9 + $0x244] ss:$36 sps:$4 sm:$0xff]  }
  0x1c   : > { %v2728_v49 = vld [vmem:[%s3360_s1 + $0x118] sm:$0xff]   ;;  %v2729_v50 = vld [vmem:[%s3360_s1 + $0x150] sm:$0xff]   ;;  %v2734_v56 = vld [vmem:[%s3360_s1 + $0x88] sm:$0xff]  }
  0x1d   : > { %2655 = vmatpush3.bf16.msra.mxu1 %v2679_v9  ;;  %2303 = vmatpush3.bf16.msra.mxu0 %v2679_v9  ;;  %v2727_v51 = vld [vmem:[%s3360_s1 + $0x90] sm:$0xff]   ;;  %v2723_v53 = vld [vmem:[%s2933_s9 + $0x1f8] ss:$36 sps:$4 sm:$0xff]   ;;  %v2739_v59 = vld [vmem:[%s3360_s1 + $0x148] sm:$0xff]  }
  0x1e   : > { %2648 = vmatprep.subr.bf16.mxu1 %v2680_v10  ;;  %2304 = vmatprep.subr.bf16.mxu0 %v2680_v10  ;;  %v2731_v54 = vld [vmem:[%s3360_s1 + $0x110] sm:$0xff]   ;;  %v2735_v57 = vld [vmem:[%s2933_s9 + $0xdc] ss:$36 sps:$4 sm:$0xff]   ;;  %v2740_v60 = vld [vmem:[%s3360_s1 + $0x108] sm:$0xff]  }
  0x1f   : > { %v2738_v58 = vld [vmem:[%s2933_s9 + $0xd8] ss:$36 sps:$4 sm:$0xff]   ;;  %v2741_v61 = vld [vmem:[%s3360_s1 + $0xc0] sm:$0xff]   ;;  %v2747_v2 = vld [vmem:[%s2933_s9 + $0xc] ss:$36 sps:$4 sm:$0xff]  }
  0x20   : > { %v2743_v62 = vld [vmem:[%s3360_s1 + $0x140] sm:$0xff]   ;;  %v2748_v3 = vld [vmem:[%s2933_s9 + $0x10] ss:$36 sps:$4 sm:$0xff]   ;;  %v2751_v5 = vld [vmem:[%s3360_s1 + $0x1f8] sm:$0xff]  }
  0x21   : > { %2656 = vmatpush3.bf16.msra.mxu1 %v2681_v12  ;;  %2305 = vmatpush3.bf16.msra.mxu0 %v2681_v12  ;;  %v2742_v63 = vld [vmem:[%s3360_s1 + $0x80] sm:$0xff]   ;;  %v2750_v4 = vld [vmem:[%s2933_s9 + $0x14] ss:$36 sps:$4 sm:$0xff]   ;;  %v2745_v9 = vld [vmem:[%s2933_s9 + $0x8] ss:$36 sps:$4 sm:$0xff]  }
  0x22   : > { %2649 = vmatprep.subr.bf16.mxu1 %v2682_v13  ;;  %2306 = vmatprep.subr.bf16.mxu0 %v2682_v13  ;;  %v2737_v0 = vld [vmem:[%s2933_s9 + $0x240] ss:$36 sps:$4 sm:$0xff]   ;;  %v2755_v7 = vld [vmem:[%s3360_s1 + $0x238] sm:$0xff]   ;;  %v2760_v13 = vld [vmem:[%s3360_s1 + $0x1f0] sm:$0xff]  }
  0x23   : > { %v2744_v1 = vld [vmem:[%s3360_s1 + $0x100] sm:$0xff]   ;;  %v2752_v10 = vld [vmem:[%s3360_s1 + $0x1b8] sm:$0xff]   ;;  %v2767_v15 = vld [vmem:[%s3360_s1 + $0x230] sm:$0xff]  }
  0x24   : > { %v2757_v8 = vld [vmem:[%s2933_s9 + $0x5c] ss:$36 sps:$4 sm:$0xff]   ;;  %v2753_v11 = vld [vmem:[%s2933_s9 + $0x54] ss:$36 sps:$4 sm:$0xff]  }
  0x25   : > { %2657 = vmatpush3.bf16.msra.mxu1 %v2683_v14  ;;  %2307 = vmatpush3.bf16.msra.mxu0 %v2683_v14  ;;  %v2759_v12 = vld [vmem:[%s2933_s9 + $0x58] ss:$36 sps:$4 sm:$0xff]   ;;  %v2765_v14 = vld [vmem:[%s2933_s9 + $0xa4] ss:$36 sps:$4 sm:$0xff]  }
  0x26   : > { %2650 = vmatprep.subr.bf16.mxu1 %v2684_v16  ;;  %2308 = vmatprep.subr.bf16.mxu0 %v2684_v16  ;;  %v2761_v16 = vld [vmem:[%s3360_s1 + $0x1b0] sm:$0xff]  }
  0x29   : > { %2658 = vmatpush3.bf16.msra.mxu1 %v2685_v17  ;;  %2309 = vmatpush3.bf16.msra.mxu0 %v2685_v17  ;;  %v2756_v17 = vld [vmem:[%s2933_s9 + $0x50] ss:$36 sps:$4 sm:$0xff]  }
  0x2a   : > { %2364 = vmatprep.subr.bf16.mxu1 %v2689_v18  ;;  %2434 = vmatprep.subr.bf16.mxu0 %v2699_v20  ;;  %v2769_v18 = vld [vmem:[%s3360_s1 + $0x1e8] sm:$0xff]   ;;  %v2768_v20 = vld [vmem:[%s2933_s9 + $0xa0] ss:$36 sps:$4 sm:$0xff]  }
  0x2c   : > { %1334 = vmatmul.mubr.bf16.vlgmr.msra.gmra.mxu1 %v2686_v19  ;;  %1302 = vmatmul.mubr.bf16.vlgmr.msra.gmra.mxu0 %v2695_v24  ;;  %v2762_v19 = vld [vmem:[%s2933_s9 + $0x9c] ss:$36 sps:$4 sm:$0xff]   ;;  %v2774_v24 = vld [vmem:[%s2933_s9 + $0xec] ss:$36 sps:$4 sm:$0xff]  }
  0x2d   : > { %2365 = vmatpush3.bf16.msra.mxu1 %v2690_v21  ;;  %1341 = vmatprep.mubr.bf16.mxu1 %v2693_v22  ;;  %v2770_v21 = vld [vmem:[%s3360_s1 + $0x1a8] sm:$0xff]  }
  0x2e   : > { %2366 = vmatprep.subr.bf16.mxu1 %v2691_v23  ;;  %2435 = vmatpush3.bf16.msra.mxu0 %v2701_v25  ;;  %v2777_v22 = vld [vmem:[%s3360_s1 + $0x228] sm:$0xff]   ;;  %v2778_v23 = vld [vmem:[%s3360_s1 + $0x1e0] sm:$0xff]  }
  0x2f   : > { %2436 = vmatprep.subr.bf16.mxu0 %v2703_v26  ;;  %1309 = vmatprep.mubr.bf16.mxu0 %v2708_v27  ;;  %v2779_v25 = vld [vmem:[%s3360_s1 + $0x1a0] sm:$0xff]   ;;  %v2764_v26 = vld [vmem:[%s2933_s9 + $0x98] ss:$36 sps:$4 sm:$0xff]  }
  0x30   : > { %v2771_v27 = vld [vmem:[%s2933_s9 + $0xe4] ss:$36 sps:$4 sm:$0xff]  }
  0x31   : > { %2367 = vmatpush3.bf16.msra.mxu1 %v2692_v28  ;;  %v2786_v28 = vld [vmem:[%s3360_s1 + $0x220] sm:$0xff]  }
  0x32   : > { %2368 = vmatprep.subr.bf16.mxu1 %v2700_v29  ;;  %2437 = vmatpush3.bf16.msra.mxu0 %v2704_v31  ;;  %v2787_v29 = vld [vmem:[%s3360_s1 + $0x1d8] sm:$0xff]   ;;  %v2776_v31 = vld [vmem:[%s2933_s9 + $0xe8] ss:$36 sps:$4 sm:$0xff]  }
  0x33   : > { %2438 = vmatprep.subr.bf16.mxu0 %v2713_v34  ;;  %v2796_v34 = vld [vmem:[%s3360_s1 + $0x1d0] sm:$0xff]  }
  0x34   : > { %1342 = vmatmul.mubr.bf16.gmra.mxu1 %v2698_v30  ;;  %1310 = vmatmul.mubr.bf16.gmra.mxu0 %v2712_v35  ;;  %v2788_v30 = vld [vmem:[%s3360_s1 + $0x198] sm:$0xff]   ;;  %v2797_v35 = vld [vmem:[%s3360_s1 + $0x190] sm:$0xff]  }
  0x35   : > { %2369 = vmatpush3.bf16.msra.mxu1 %v2702_v32  ;;  %1349 = vmatprep.mubr.bf16.mxu1 %v2705_v33  ;;  %v2783_v32 = vld [vmem:[%s2933_s9 + $0x134] ss:$36 sps:$4 sm:$0xff]  }
  0x36   : > { %2370 = vmatprep.subr.bf16.mxu1 %v2707_v36  ;;  %2439 = vmatpush3.bf16.msra.mxu0 %v2714_v37  ;;  %v2795_v33 = vld [vmem:[%s3360_s1 + $0x218] sm:$0xff]   ;;  %v2773_v36 = vld [vmem:[%s2933_s9 + $0xe0] ss:$36 sps:$4 sm:$0xff]   ;;  %v2780_v37 = vld [vmem:[%s2933_s9 + $0x12c] ss:$36 sps:$4 sm:$0xff]  }
  0x37   : > { %2440 = vmatprep.subr.bf16.mxu0 %v2717_v38  ;;  %1317 = vmatprep.mubr.bf16.mxu0 %v2721_v40  ;;  %v2785_v38 = vld [vmem:[%s2933_s9 + $0x130] ss:$36 sps:$4 sm:$0xff]  }
  0x38   : > { %v2804_v40 = vld [vmem:[%s3360_s1 + $0x210] sm:$0xff]  }
  0x39   : > { %2371 = vmatpush3.bf16.msra.mxu1 %v2711_v39  ;;  %v2792_v39 = vld [vmem:[%s2933_s9 + $0x17c] ss:$36 sps:$4 sm:$0xff]  }
  0x3a   : > { %2372 = vmatprep.subr.bf16.mxu1 %v2715_v41  ;;  %2441 = vmatpush3.bf16.msra.mxu0 %v2718_v43  ;;  %v2805_v41 = vld [vmem:[%s3360_s1 + $0x1c8] sm:$0xff]  }
  0x3b   : > { %2442 = vmatprep.subr.bf16.mxu0 %v2726_v46  ;;  %v2782_v43 = vld [vmem:[%s2933_s9 + $0x128] ss:$36 sps:$4 sm:$0xff]   ;;  %v2794_v46 = vld [vmem:[%s2933_s9 + $0x178] ss:$36 sps:$4 sm:$0xff]  }
  0x3c   : > { %1350 = vmatmul.mubr.bf16.gmra.mxu1 %v2710_v42  ;;  %1318 = vmatmul.mubr.bf16.gmra.mxu0 %v2724_v47  ;;  %v2808_v42 = vld [vmem:[%s3360_s1 + $0x188] sm:$0xff]   ;;  %v2816_v47 = vld [vmem:[%s3360_s1 + $0x1c0] sm:$0xff]  }
  0x3d   : > { %2373 = vmatpush3.bf16.msra.mxu1 %v2716_v44  ;;  %1357 = vmatprep.mubr.bf16.mxu1 %v2719_v45  ;;  %v2813_v44 = vld [vmem:[%s3360_s1 + $0x208] sm:$0xff]   ;;  %v2789_v45 = vld [vmem:[%s2933_s9 + $0x174] ss:$36 sps:$4 sm:$0xff]  }
  0x3e   : > { %2374 = vmatprep.subr.bf16.mxu1 %v2725_v48  ;;  %2443 = vmatpush3.bf16.msra.mxu0 %v2728_v49  ;;  %v2801_v48 = vld [vmem:[%s2933_s9 + $0x1c4] ss:$36 sps:$4 sm:$0xff]  }
  0x3f   : > { %2444 = vmatprep.subr.bf16.mxu0 %v2729_v50  ;;  %1325 = vmatprep.mubr.bf16.mxu0 %v2735_v57  ;;  %v2820_v49 = vld [vmem:[%s3360_s1 + $0x180] sm:$0xff]   ;;  %v2812_v57 = vld [vmem:[%s2933_s9 + $0x208] ss:$36 sps:$4 sm:$0xff]  }
  0x40   : > { %v2822_v50 = vld [vmem:[%s3360_s1 + $0x200] sm:$0xff]  }
  0x41   : > { %2375 = vmatpush3.bf16.msra.mxu1 %v2727_v51  ;;  %v2791_v51 = vld [vmem:[%s2933_s9 + $0x170] ss:$36 sps:$4 sm:$0xff]  }
  0x42   : > { %2376 = vmatprep.subr.bf16.mxu1 %v2730_v52  ;;  %2445 = vmatpush3.bf16.msra.mxu0 %v2731_v54  ;;  %v2798_v52 = vld [vmem:[%s2933_s9 + $0x1bc] ss:$36 sps:$4 sm:$0xff]   ;;  %v2810_v54 = vld [vmem:[%s2933_s9 + $0x20c] ss:$36 sps:$4 sm:$0xff]  }
  0x43   : > { %2446 = vmatprep.subr.bf16.mxu0 %v2739_v59  ;;  %v2809_v59 = vld [vmem:[%s2933_s9 + $0x200] ss:$36 sps:$4 sm:$0xff]  }
  0x44   : > { %1358 = vmatmul.mubr.bf16.gmra.mxu1 %v2723_v53  ;;  %1326 = vmatmul.mubr.bf16.gmra.mxu0 %v2738_v58  ;;  %v2803_v53 = vld [vmem:[%s2933_s9 + $0x1c0] ss:$36 sps:$4 sm:$0xff]   ;;  %v2818_v58 = vld [vmem:[%s2933_s9 + $0x254] ss:$36 sps:$4 sm:$0xff]  }
  0x45   : > { %1365 = vmatprep.mubr.bf16.mxu1 %v2732_v55  ;;  %2377 = vmatpush3.bf16.msra.mxu1 %v2734_v56  ;;  %v2800_v55 = vld [vmem:[%s2933_s9 + $0x1b8] ss:$36 sps:$4 sm:$0xff]   ;;  %v2806_v56 = vld [vmem:[%s2933_s9 + $0x204] ss:$36 sps:$4 sm:$0xff]  }
  0x46   : > { %2447 = vmatpush3.bf16.msra.mxu0 %v2740_v60  ;;  %2378 = vmatprep.subr.bf16.mxu1 %v2741_v61  ;;  %v2814_v60 = vld [vmem:[%s2933_s9 + $0x24c] ss:$36 sps:$4 sm:$0xff]  }
  0x47   : > { %2448 = vmatprep.subr.bf16.mxu0 %v2743_v62  ;;  %1511 = vmatprep.mubr.bf16.mxu0 %v2750_v4  ;;  %v2821_v61 = vld [vmem:[%s2933_s9 + $0x250] ss:$36 sps:$4 sm:$0xff]   ;;  %v2817_v62 = vld [vmem:[%s2933_s9 + $0x248] ss:$36 sps:$4 sm:$0xff]   ;;  %v2829_v4 = vld [vmem:[%s2933_s9 + $0x60] ss:$36 sps:$4 sm:$0xff]  }
  0x49   : > { %2379 = vmatpush3.bf16.msra.mxu1 %v2742_v63  ;;  %v2825_v63 = vld [vmem:[%s2933_s9 + $0x1c] ss:$36 sps:$4 sm:$0xff]  }
  0x4a   : > { %2449 = vmatpush3.bf16.msra.mxu0 %v2744_v1  ;;  %2504 = vmatprep.subr.bf16.mxu1 %v2751_v5  ;;  %v2823_v1 = vld [vmem:[%s2933_s9 + $0x18] ss:$36 sps:$4 sm:$0xff]   ;;  %v2831_v5 = vld [vmem:[%s2933_s9 + $0xac] ss:$36 sps:$4 sm:$0xff]  }
  0x4b   : > { %2591 = vmatprep.subr.bf16.mxu0 %v2867_v6 }
  0x4c   : > { %1366 = vmatmul.mubr.bf16.gmra.mxu1 %v2737_v0  ;;  %v2826_v0 = vld [vmem:[%s2933_s9 + $0x20] ss:$36 sps:$4 sm:$0xff]  }
  0x4d   : > { %1406 = vmatprep.mubr.bf16.mxu1 %v2747_v2  ;;  %1512 = vmatmul.mubr.bf16.vlgmr.msra.gmra.mxu0 %v2748_v3  ;;  %v2827_v2 = vld [vmem:[%s2933_s9 + $0x64] ss:$36 sps:$4 sm:$0xff]  }
  0x4e   : > { %2592 = vmatpush3.bf16.msra.mxu0 %v2755_v7  ;;  %1519 = vmatprep.mubr.bf16.mxu0 %v2757_v8  ;;  %v2830_v3 = vld [vmem:[%s2933_s9 + $0x68] ss:$36 sps:$4 sm:$0xff]   ;;  %v2834_v7 = vld [vmem:[%s2933_s9 + $0xb0] ss:$36 sps:$4 sm:$0xff]  }
  0x4f   : > { %2593 = vmatprep.subr.bf16.mxu0 %v2867_v6  ;;  %v2833_v8 = vld [vmem:[%s2933_s9 + $0xa8] ss:$36 sps:$4 sm:$0xff]  }
  0x52   : > { %2594 = vmatpush3.bf16.msra.mxu0 %v2767_v15  ;;  %v2843_v15 = vld [vmem:[%s2933_s9 + $0x184] ss:$36 sps:$4 sm:$0xff]  }
  0x53   : > { %2595 = vmatprep.subr.bf16.mxu0 %v2867_v6 }
  0x54   : > { %1407 = vmatmul.mubr.bf16.vlgmr.msra.gmra.mxu1 %v2745_v9  ;;  %v2835_v9 = vld [vmem:[%s2933_s9 + $0xf4] ss:$36 sps:$4 sm:$0xff]  }
  0x55   : > { %2505 = vmatpush3.bf16.msra.mxu1 %v2752_v10  ;;  %1414 = vmatprep.mubr.bf16.mxu1 %v2753_v11  ;;  %v2838_v10 = vld [vmem:[%s2933_s9 + $0xf8] ss:$36 sps:$4 sm:$0xff]   ;;  %v2837_v11 = vld [vmem:[%s2933_s9 + $0xf0] ss:$36 sps:$4 sm:$0xff]  }
  0x56   : > { %1520 = vmatmul.mubr.bf16.gmra.mxu0 %v2759_v12  ;;  %2506 = vmatprep.subr.bf16.mxu1 %v2760_v13  ;;  %v2839_v12 = vld [vmem:[%s2933_s9 + $0x13c] ss:$36 sps:$4 sm:$0xff]  }
  0x57   : > { %1527 = vmatprep.mubr.bf16.mxu0 %v2765_v14  ;;  %2596 = vmatpush3.bf16.msra.mxu0 %v2777_v22  ;;  %v2842_v13 = vld [vmem:[%s2933_s9 + $0x140] ss:$36 sps:$4 sm:$0xff]   ;;  %v2841_v14 = vld [vmem:[%s2933_s9 + $0x138] ss:$36 sps:$4 sm:$0xff]  }
  0x58   : > { %2597 = vmatprep.subr.bf16.mxu0 %v2867_v6  ;;  %v2854_v22 = vld [vmem:[%s2933_s9 + $0x218] ss:$36 sps:$4 sm:$0xff]  }
  0x59   : > { %2507 = vmatpush3.bf16.msra.mxu1 %v2761_v16  ;;  %v2846_v16 = vld [vmem:[%s2933_s9 + $0x188] ss:$36 sps:$4 sm:$0xff]  }
  0x5a   : > { %2508 = vmatprep.subr.bf16.mxu1 %v2769_v18  ;;  %v2847_v18 = vld [vmem:[%s2933_s9 + $0x1cc] ss:$36 sps:$4 sm:$0xff]  }
  0x5b   : > { %2598 = vmatpush3.bf16.msra.mxu0 %v2786_v28 }
  0x5c   : > { %1415 = vmatmul.mubr.bf16.gmra.mxu1 %v2756_v17  ;;  %2599 = vmatprep.subr.bf16.mxu0 %v2867_v6  ;;  %v2845_v17 = vld [vmem:[%s2933_s9 + $0x180] ss:$36 sps:$4 sm:$0xff]  }
  0x5d   : > { %1422 = vmatprep.mubr.bf16.mxu1 %v2762_v19  ;;  %2509 = vmatpush3.bf16.msra.mxu1 %v2770_v21  ;;  %v2850_v19 = vld [vmem:[%s2933_s9 + $0x1d0] ss:$36 sps:$4 sm:$0xff]  }
  0x5e   : > { %1528 = vmatmul.mubr.bf16.gmra.mxu0 %v2768_v20  ;;  %2510 = vmatprep.subr.bf16.mxu1 %v2778_v23  ;;  %v2849_v20 = vld [vmem:[%s2933_s9 + $0x1c8] ss:$36 sps:$4 sm:$0xff]   ;;  %v2851_v21 = vld [vmem:[%s2933_s9 + $0x214] ss:$36 sps:$4 sm:$0xff]  }
  0x5f   : > { %1535 = vmatprep.mubr.bf16.mxu0 %v2774_v24  ;;  %2600 = vmatpush3.bf16.msra.mxu0 %v2795_v33  ;;  %v2853_v23 = vld [vmem:[%s2933_s9 + $0x210] ss:$36 sps:$4 sm:$0xff]   ;;  %v2855_v24 = vld [vmem:[%s2933_s9 + $0x25c] ss:$36 sps:$4 sm:$0xff]  }
  0x60   : > { %2601 = vmatprep.subr.bf16.mxu0 %v2867_v6 }
  0x61   : > { %2511 = vmatpush3.bf16.msra.mxu1 %v2779_v25  ;;  %v2858_v25 = vld [vmem:[%s2933_s9 + $0x260] ss:$36 sps:$4 sm:$0xff]  }
  0x62   : > { %2512 = vmatprep.subr.bf16.mxu1 %v2787_v29 }
  0x63   : > { %2602 = vmatpush3.bf16.msra.mxu0 %v2804_v40 }
  0x64   : > { %1423 = vmatmul.mubr.bf16.gmra.mxu1 %v2764_v26  ;;  %2603 = vmatprep.subr.bf16.mxu0 %v2867_v6  ;;  %v2857_v26 = vld [vmem:[%s2933_s9 + $0x258] ss:$36 sps:$4 sm:$0xff]   ;;  %s2048_s9 = sshll.u32 %s3364_s16, 2  ;;  %s2049_s16 = sshll.u32 %s3366_s13, 3 }
  0x65   : > { %1430 = vmatprep.mubr.bf16.mxu1 %v2771_v27  ;;  %2513 = vmatpush3.bf16.msra.mxu1 %v2788_v30  ;;  %s3324_s26 = scalar_lea.vmem %s3361_s2, %s2048_s9  ;;  %s187_s29 = scalar_lea.vmem %s3362_s3, %s2049_s16 }
  0x66   : > { %1536 = vmatmul.mubr.bf16.gmra.mxu0 %v2776_v31  ;;  %2514 = vmatprep.subr.bf16.mxu1 %v2796_v34 }
  0x67   : > { %1543 = vmatprep.mubr.bf16.mxu0 %v2783_v32  ;;  %2604 = vmatpush3.bf16.msra.mxu0 %v2813_v44 }
  0x68   : > { %2605 = vmatprep.subr.bf16.mxu0 %v2867_v6 }
  0x69   : > { %2515 = vmatpush3.bf16.msra.mxu1 %v2797_v35 }
  0x6a   : > { %2516 = vmatprep.subr.bf16.mxu1 %v2805_v41 }
  0x6b   : > { %2606 = vmatpush3.bf16.msra.mxu0 %v2822_v50 }
  0x6c   : > { %1431 = vmatmul.mubr.bf16.gmra.mxu1 %v2773_v36 }
  0x6d   : > { %1438 = vmatprep.mubr.bf16.mxu1 %v2780_v37  ;;  %2517 = vmatpush3.bf16.msra.mxu1 %v2808_v42 }
  0x6e   : > { %1544 = vmatmul.mubr.bf16.gmra.mxu0 %v2785_v38  ;;  %2518 = vmatprep.subr.bf16.mxu1 %v2816_v47 }
  0x6f   : > { %1551 = vmatprep.mubr.bf16.mxu0 %v2792_v39 }
  0x71   : > { %2519 = vmatpush3.bf16.msra.mxu1 %v2820_v49 }
  0x74   : > { %1439 = vmatmul.mubr.bf16.gmra.mxu1 %v2782_v43 }
  0x75   : > { %1446 = vmatprep.mubr.bf16.mxu1 %v2789_v45 }
  0x76   : > { %1552 = vmatmul.mubr.bf16.gmra.mxu0 %v2794_v46 }
  0x77   : > { %1559 = vmatprep.mubr.bf16.mxu0 %v2801_v48 }
  0x7c   : > { %1447 = vmatmul.mubr.bf16.gmra.mxu1 %v2791_v51 }
  0x7d   : > { %1454 = vmatprep.mubr.bf16.mxu1 %v2798_v52 }
  0x7e   : > { %1560 = vmatmul.mubr.bf16.gmra.mxu0 %v2803_v53 }
  0x7f   : > { %1567 = vmatprep.mubr.bf16.mxu0 %v2810_v54 }
  0x84   : > { %1455 = vmatmul.mubr.bf16.gmra.mxu1 %v2800_v55 }
  0x85   : > { %1462 = vmatprep.mubr.bf16.mxu1 %v2806_v56 }
  0x86   : > { %1568 = vmatmul.mubr.bf16.gmra.mxu0 %v2812_v57 }
  0x87   : > { %1575 = vmatprep.mubr.bf16.mxu0 %v2818_v58 }
  0x8c   : > { %1463 = vmatmul.mubr.bf16.gmra.mxu1 %v2809_v59 }
  0x8d   : > { %1470 = vmatprep.mubr.bf16.mxu1 %v2814_v60 }
  0x8e   : > { %1576 = vmatmul.mubr.bf16.gmra.mxu0 %v2821_v61 }
  0x8f   : > { %2607 = vmatprep.mubr.msk.bf16.mxu0 %vm2868_vm0, %v2867_v6 }
  0x94   : > { %1471 = vmatmul.mubr.bf16.gmra.mxu1 %v2817_v62 }
  0x95   : > { %1616 = vmatprep.mubr.bf16.mxu1 %v2825_v63 }
  0x96   : > { %2608 = vmatmul.mubr.bf16.vlgmr.msra.gmra.mxu0 %v2826_v0 }
  0x97   : > { %2611 = vmatprep.mubr.msk.bf16.mxu0 %vm2868_vm0, %v2867_v6 }
  0x9c   : > { %1617 = vmatmul.mubr.bf16.vlgmr.msra.gmra.mxu1 %v2823_v1 }
  0x9d   : > { %1624 = vmatprep.mubr.bf16.mxu1 %v2827_v2 }
  0x9e   : > { %2612 = vmatmul.mubr.bf16.gmra.mxu0 %v2830_v3 }
  0x9f   : > { %2615 = vmatprep.mubr.msk.bf16.mxu0 %vm2868_vm0, %v2867_v6 }
  0xa4   : > { %1625 = vmatmul.mubr.bf16.gmra.mxu1 %v2829_v4 }
  0xa5   : > { %1632 = vmatprep.mubr.bf16.mxu1 %v2831_v5 }
  0xa6   : > { %2616 = vmatmul.mubr.bf16.gmra.mxu0 %v2834_v7 }
  0xa7   : > { %2619 = vmatprep.mubr.msk.bf16.mxu0 %vm2868_vm0, %v2867_v6 }
  0xac   : > { %1633 = vmatmul.mubr.bf16.gmra.mxu1 %v2833_v8 }
  0xad   : > { %1640 = vmatprep.mubr.bf16.mxu1 %v2835_v9 }
  0xae   : > { %2620 = vmatmul.mubr.bf16.gmra.mxu0 %v2838_v10 }
  0xaf   : > { %2623 = vmatprep.mubr.msk.bf16.mxu0 %vm2868_vm0, %v2867_v6 }
  0xb4   : > { %1641 = vmatmul.mubr.bf16.gmra.mxu1 %v2837_v11 }
  0xb5   : > { %1648 = vmatprep.mubr.bf16.mxu1 %v2839_v12 }
  0xb6   : > { %2624 = vmatmul.mubr.bf16.gmra.mxu0 %v2842_v13 }
  0xb7   : > { %2627 = vmatprep.mubr.msk.bf16.mxu0 %vm2868_vm0, %v2867_v6 }
  0xbc   : > { %1649 = vmatmul.mubr.bf16.gmra.mxu1 %v2841_v14 }
  0xbd   : > { %1656 = vmatprep.mubr.bf16.mxu1 %v2843_v15 }
  0xbe   : > { %2628 = vmatmul.mubr.bf16.gmra.mxu0 %v2846_v16 }
  0xbf   : > { %2631 = vmatprep.mubr.msk.bf16.mxu0 %vm2868_vm0, %v2867_v6 }
  0xc4   : > { %1657 = vmatmul.mubr.bf16.gmra.mxu1 %v2845_v17 }
  0xc5   : > { %1664 = vmatprep.mubr.bf16.mxu1 %v2847_v18 }
  0xc6   : > { %2632 = vmatmul.mubr.bf16.gmra.mxu0 %v2850_v19 }
  0xc7   : > { %2635 = vmatprep.mubr.msk.bf16.mxu0 %vm2868_vm0, %v2867_v6 }
  0xcc   : > { %1665 = vmatmul.mubr.bf16.gmra.mxu1 %v2849_v20 }
  0xcd   : > { %1672 = vmatprep.mubr.bf16.mxu1 %v2851_v21 }
  0xce   : > { %2636 = vmatmul.mubr.bf16.gmra.mxu0 %v2854_v22 }
  0xcf   : > { %2639 = vmatprep.mubr.msk.bf16.mxu0 %vm2868_vm0, %v2867_v6 }
  0xd4   : > { %1673 = vmatmul.mubr.bf16.gmra.mxu1 %v2853_v23 }
  0xd5   : > { %1680 = vmatprep.mubr.bf16.mxu1 %v2855_v24 }
  0xd6   : > { %2640 = vmatmul.mubr.bf16.gmra.mxu0 %v2858_v25 }
  0xdc   : > { %1681 = vmatmul.mubr.bf16.gmra.mxu1 %v2857_v26 }
  0xec   : > { %v2334_v27 = vpop.f32.mrf.mxu1  ;;  %v2310_v28 = vpop.f32.mrf.mxu0 }
  0xee   : > { %v2335_v29 = vpop.f32.mrf.mxu1  ;;  %v2311_v30 = vpop.f32.mrf.mxu0 }
  0xef   : > { %v3231_v31 = vadd.f32 %v2335_v29, %v2334_v27  ;;  %v2312_v32 = vadd.f32 %v2311_v30, %v2310_v28 }
  0xf0   : > { %v2337_v33 = vpop.f32.mrf.mxu1  ;;  %v2313_v34 = vpop.f32.mrf.mxu0 }
  0xf2   : > { %v2338_v35 = vpop.f32.mrf.mxu1  ;;  %v2314_v36 = vpop.f32.mrf.mxu0 }
  0xf3   : > { %v3233_v6 = vadd.f32 %v2338_v35, %v2337_v33  ;;  %v3235_v37 = vadd.f32 %v2314_v36, %v2313_v34 }
  0xf4   : > { %v2340_v38 = vpop.f32.mrf.mxu1  ;;  %v2316_v39 = vpop.f32.mrf.mxu0 }
  0xf6   : > { %v2341_v40 = vpop.f32.mrf.mxu1  ;;  %v2317_v41 = vpop.f32.mrf.mxu0 }
  0xf7   : > { %v3237_v42 = vadd.f32 %v2341_v40, %v2340_v38  ;;  %v3239_v43 = vadd.f32 %v2317_v41, %v2316_v39 }
  0xf8   : > { %v2343_v44 = vpop.f32.mrf.mxu1  ;;  %v2319_v45 = vpop.f32.mrf.mxu0 }
  0xfa   : > { %v2344_v46 = vpop.f32.mrf.mxu1  ;;  %v2320_v47 = vpop.f32.mrf.mxu0 }
  0xfb   : > { %v3241_v48 = vadd.f32 %v2344_v46, %v2343_v44  ;;  %v3243_v49 = vadd.f32 %v2320_v47, %v2319_v45 }
  0xfc   : > { %v2346_v50 = vpop.f32.mrf.mxu1  ;;  %v2322_v51 = vpop.f32.mrf.mxu0 }
  0xfe   : > { %v2347_v52 = vpop.f32.mrf.mxu1  ;;  %v2323_v53 = vpop.f32.mrf.mxu0 }
  0xff   : > { %v3245_v54 = vadd.f32 %v2347_v52, %v2346_v50  ;;  %v3247_v55 = vadd.f32 %v2323_v53, %v2322_v51 }
 0x100   : > { %v2349_v56 = vpop.f32.mrf.mxu1  ;;  %v2325_v57 = vpop.f32.mrf.mxu0 }
 0x102   : > { %v2350_v58 = vpop.f32.mrf.mxu1  ;;  %v2326_v59 = vpop.f32.mrf.mxu0 }
 0x103   : > { %v3249_v60 = vadd.f32 %v2350_v58, %v2349_v56  ;;  %v3251_v61 = vadd.f32 %v2326_v59, %v2325_v57 }
 0x104   : > { %v2352_v62 = vpop.f32.mrf.mxu1  ;;  %v2328_v63 = vpop.f32.mrf.mxu0 }
 0x106   : > { %v2353_v0 = vpop.f32.mrf.mxu1  ;;  %v2329_v1 = vpop.f32.mrf.mxu0 }
 0x107   : > { %v3253_v2 = vadd.f32 %v2353_v0, %v2352_v62  ;;  %v3255_v3 = vadd.f32 %v2329_v1, %v2328_v63 }
 0x108   : > { %v2355_v4 = vpop.f32.mrf.mxu1  ;;  %v2331_v5 = vpop.f32.mrf.mxu0 }
 0x10a   : > { %v2356_v7 = vpop.f32.mrf.mxu1  ;;  %v2332_v8 = vpop.f32.mrf.mxu0 }
 0x10b   : > { %v3257_v9 = vadd.f32 %v2356_v7, %v2355_v4  ;;  %v3259_v10 = vadd.f32 %v2332_v8, %v2331_v5 }
 0x10c   : > { %v2358_v11 = vpop.f32.mrf.mxu1 }
 0x10d   : > { %v2450_v12 = vpop.f32.mrf.mxu0 }
 0x10e   : > { %v2359_v13 = vpop.f32.mrf.mxu1 }
 0x10f   : > { %v3261_v14 = vadd.f32 %v2359_v13, %v2358_v11  ;;  %v2451_v15 = vpop.f32.mrf.mxu0 }
 0x110   : > { %v2361_v16 = vpop.f32.mrf.mxu1  ;;  %v2452_v17 = vadd.f32 %v2451_v15, %v2450_v12 }
 0x111   : > { %v2453_v18 = vpop.f32.mrf.mxu0 }
 0x112   : > { %v2362_v19 = vpop.f32.mrf.mxu1 }
 0x113   : > { %v3263_v20 = vadd.f32 %v2362_v19, %v2361_v16  ;;  %v2454_v21 = vpop.f32.mrf.mxu0 }
 0x114   : > { %v2380_v22 = vpop.f32.mrf.mxu1  ;;  %v2455_v23 = vadd.f32 %v2454_v21, %v2453_v18 }
 0x116   : > { %v2381_v24 = vpop.f32.mrf.mxu1  ;;  %v2456_v25 = vpop.f32.mrf.mxu0 }
 0x117   : > { %v2382_v26 = vadd.f32 %v2381_v24, %v2380_v22 }
 0x118   : > { %v2383_v27 = vpop.f32.mrf.mxu1  ;;  %v2457_v28 = vpop.f32.mrf.mxu0 }
 0x119   : > { %v1409_v29 = vadd.f32 %v2382_v26, %v2312_v32  ;;  %v2458_v30 = vadd.f32 %v2457_v28, %v2456_v25 }
 0x11a   : > { %v2384_v33 = vpop.f32.mrf.mxu1  ;;  %v2459_v34 = vpop.f32.mrf.mxu0 }
 0x11b   : > { %v3265_v35 = vadd.f32 %v2452_v17, %v1409_v29  ;;  %v2385_v36 = vadd.f32 %v2384_v33, %v2383_v27 }
 0x11c   : > { %v2386_v38 = vpop.f32.mrf.mxu1  ;;  %v2460_v39 = vpop.f32.mrf.mxu0 }
 0x11d   : > { %v1412_v40 = vadd.f32 %v2385_v36, %v3235_v37  ;;  %v2461_v41 = vadd.f32 %v2460_v39, %v2459_v34 }
 0x11e   : > { %v2387_v44 = vpop.f32.mrf.mxu1  ;;  %v2462_v45 = vpop.f32.mrf.mxu0 }
 0x11f   : > { %v3268_v46 = vadd.f32 %v2455_v23, %v1412_v40  ;;  %v2388_v47 = vadd.f32 %v2387_v44, %v2386_v38 }
 0x120   : > { %v2389_v50 = vpop.f32.mrf.mxu1  ;;  %v2463_v51 = vpop.f32.mrf.mxu0 }
 0x121   : > { %v1417_v32 = vadd.f32 %v2388_v47, %v3239_v43  ;;  %v2464_v52 = vadd.f32 %v2463_v51, %v2462_v45 }
 0x122   : > { %v2390_v53 = vpop.f32.mrf.mxu1  ;;  %v2465_v56 = vpop.f32.mrf.mxu0 }
 0x123   : > { %v3271_v57 = vadd.f32 %v2458_v30, %v1417_v32  ;;  %v2391_v58 = vadd.f32 %v2390_v53, %v2389_v50 }
 0x124   : > { %v2392_v59 = vpop.f32.mrf.mxu1  ;;  %v2466_v62 = vpop.f32.mrf.mxu0 }
 0x125   : > { %v1420_v37 = vadd.f32 %v2391_v58, %v3243_v49  ;;  %v2467_v63 = vadd.f32 %v2466_v62, %v2465_v56 }
 0x126   : > { %v2393_v0 = vpop.f32.mrf.mxu1  ;;  %v2468_v1 = vpop.f32.mrf.mxu0 }
 0x127   : > { %v3274_v4 = vadd.f32 %v2461_v41, %v1420_v37  ;;  %v2394_v5 = vadd.f32 %v2393_v0, %v2392_v59 }
 0x128   : > { %v2395_v7 = vpop.f32.mrf.mxu1  ;;  %v2469_v8 = vpop.f32.mrf.mxu0 }
 0x129   : > { %v1425_v43 = vadd.f32 %v2394_v5, %v3247_v55  ;;  %v2470_v11 = vadd.f32 %v2469_v8, %v2468_v1 }
 0x12a   : > { %v2396_v12 = vpop.f32.mrf.mxu1  ;;  %v2471_v13 = vpop.f32.mrf.mxu0 }
 0x12b   : > { %v3277_v15 = vadd.f32 %v2464_v52, %v1425_v43  ;;  %v2397_v16 = vadd.f32 %v2396_v12, %v2395_v7 }
 0x12c   : > { %v2398_v17 = vpop.f32.mrf.mxu1  ;;  %v2472_v18 = vpop.f32.mrf.mxu0 }
 0x12d   : > { %v1428_v49 = vadd.f32 %v2397_v16, %v3251_v61  ;;  %v2473_v19 = vadd.f32 %v2472_v18, %v2471_v13 }
 0x12e   : > { %v2399_v21 = vpop.f32.mrf.mxu1  ;;  %v2474_v22 = vpop.f32.mrf.mxu0 }
 0x12f   : > { %v3280_v23 = vadd.f32 %v2467_v63, %v1428_v49  ;;  %v2400_v24 = vadd.f32 %v2399_v21, %v2398_v17 }
 0x130   : > { %v2401_v25 = vpop.f32.mrf.mxu1  ;;  %v2475_v26 = vpop.f32.mrf.mxu0 }
 0x131   : > { %v1433_v55 = vadd.f32 %v2400_v24, %v3255_v3  ;;  %v2476_v27 = vadd.f32 %v2475_v26, %v2474_v22 }
 0x132   : > { %v2402_v28 = vpop.f32.mrf.mxu1  ;;  %v2477_v29 = vpop.f32.mrf.mxu0 }
 0x133   : > { %v3283_v30 = vadd.f32 %v2470_v11, %v1433_v55  ;;  %v2403_v33 = vadd.f32 %v2402_v28, %v2401_v25 }
 0x134   : > { %v2404_v34 = vpop.f32.mrf.mxu1  ;;  %v2478_v36 = vpop.f32.mrf.mxu0 }
 0x135   : > { %v1436_v61 = vadd.f32 %v2403_v33, %v3259_v10  ;;  %v2479_v38 = vadd.f32 %v2478_v36, %v2477_v29 }
 0x136   : > { %v2405_v39 = vpop.f32.mrf.mxu1  ;;  %v2480_v40 = vpop.f32.mrf.mxu0 }
 0x137   : > { %v3286_v41 = vadd.f32 %v2473_v19, %v1436_v61  ;;  %v2406_v44 = vadd.f32 %v2405_v39, %v2404_v34 }
 0x138   : > { %v2407_v45 = vpop.f32.mrf.mxu1  ;;  %v2481_v47 = vpop.f32.mrf.mxu0 }
 0x139   : > { %v1441_v3 = vadd.f32 %v2406_v44, %v3231_v31  ;;  %v2482_v50 = vadd.f32 %v2481_v47, %v2480_v40 }
 0x13a   : > { %v2408_v51 = vpop.f32.mrf.mxu1  ;;  %v2483_v32 = vpop.f32.mrf.mxu0 }
 0x13b   : > { %v3289_v52 = vadd.f32 %v2476_v27, %v1441_v3  ;;  %v2409_v53 = vadd.f32 %v2408_v51, %v2407_v45 }
 0x13c   : > { %v2410_v56 = vpop.f32.mrf.mxu1  ;;  %v2484_v58 = vpop.f32.mrf.mxu0 }
 0x13d   : > { %v1444_v10 = vadd.f32 %v2409_v53, %v3233_v6  ;;  %v2485_v59 = vadd.f32 %v2484_v58, %v2483_v32 }
 0x13e   : > { %v2411_v62 = vpop.f32.mrf.mxu1  ;;  %v2486_v37 = vpop.f32.mrf.mxu0 }
 0x13f   : > { %v3292_v63 = vadd.f32 %v2479_v38, %v1444_v10  ;;  %v2412_v0 = vadd.f32 %v2411_v62, %v2410_v56 }
 0x140   : > { %v2413_v1 = vpop.f32.mrf.mxu1  ;;  %v2487_v5 = vpop.f32.mrf.mxu0 }
 0x141   : > { %v1449_v31 = vadd.f32 %v2412_v0, %v3237_v42  ;;  %v2488_v7 = vadd.f32 %v2487_v5, %v2486_v37 }
 0x142   : > { %v2414_v8 = vpop.f32.mrf.mxu1  ;;  %v2489_v43 = vpop.f32.mrf.mxu0 }
 0x143   : > { %v3295_v11 = vadd.f32 %v2482_v50, %v1449_v31  ;;  %v2415_v12 = vadd.f32 %v2414_v8, %v2413_v1 }
 0x144   : > { %v2416_v13 = vpop.f32.mrf.mxu1  ;;  %v2490_v16 = vpop.f32.mrf.mxu0 }
 0x145   : > { %v1452_v6 = vadd.f32 %v2415_v12, %v3241_v48  ;;  %v2491_v17 = vadd.f32 %v2490_v16, %v2489_v43 }
 0x146   : > { %v2417_v18 = vpop.f32.mrf.mxu1  ;;  %v2492_v49 = vpop.f32.mrf.mxu0 }
 0x147   : > { %v3298_v19 = vadd.f32 %v2485_v59, %v1452_v6  ;;  %v2418_v21 = vadd.f32 %v2417_v18, %v2416_v13 }
 0x148   : > { %v2419_v22 = vpop.f32.mrf.mxu1  ;;  %v2493_v24 = vpop.f32.mrf.mxu0 }
 0x149   : > { %v1457_v42 = vadd.f32 %v2418_v21, %v3245_v54  ;;  %v2494_v25 = vadd.f32 %v2493_v24, %v2492_v49 }
 0x14a   : > { %v2420_v26 = vpop.f32.mrf.mxu1  ;;  %v2495_v55 = vpop.f32.mrf.mxu0 }
 0x14b   : > { %v3301_v27 = vadd.f32 %v2488_v7, %v1457_v42  ;;  %v2421_v28 = vadd.f32 %v2420_v26, %v2419_v22 }
 0x14c   : > { %v2422_v29 = vpop.f32.mrf.mxu1  ;;  %v2496_v33 = vpop.f32.mrf.mxu0 }
 0x14d   : > { %v1460_v48 = vadd.f32 %v2421_v28, %v3249_v60  ;;  %v2497_v34 = vadd.f32 %v2496_v33, %v2495_v55 }
 0x14e   : > { %v2423_v36 = vpop.f32.mrf.mxu1  ;;  %v2498_v61 = vpop.f32.mrf.mxu0 }
 0x14f   : > { %v3304_v38 = vadd.f32 %v2491_v17, %v1460_v48  ;;  %v2424_v39 = vadd.f32 %v2423_v36, %v2422_v29 }
 0x150   : > { %v2425_v40 = vpop.f32.mrf.mxu1  ;;  %v2499_v44 = vpop.f32.mrf.mxu0 }
 0x151   : > { %v1465_v54 = vadd.f32 %v2424_v39, %v3253_v2  ;;  %v2500_v45 = vadd.f32 %v2499_v44, %v2498_v61 }
 0x152   : > { %v2426_v47 = vpop.f32.mrf.mxu1  ;;  %v2501_v3 = vpop.f32.mrf.mxu0 }
 0x153   : > { %v3307_v50 = vadd.f32 %v2494_v25, %v1465_v54  ;;  %v2427_v51 = vadd.f32 %v2426_v47, %v2425_v40 }
 0x154   : > { %v2428_v32 = vpop.f32.mrf.mxu1  ;;  %v2502_v53 = vpop.f32.mrf.mxu0 }
 0x155   : > { %v1468_v60 = vadd.f32 %v2427_v51, %v3257_v9  ;;  %v2503_v56 = vadd.f32 %v2502_v53, %v2501_v3 }
 0x156   : > { %v2429_v58 = vpop.f32.mrf.mxu1  ;;  %v1723_v10 = vpop.f32.mrf.mxu0 }
 0x157   : > { %v3310_v59 = vadd.f32 %v2497_v34, %v1468_v60  ;;  %v2430_v62 = vadd.f32 %v2429_v58, %v2428_v32 }
 0x158   : > { %v2431_v37 = vpop.f32.mrf.mxu1  ;;  %v2609_v0 = vpop.f32.mrf.mxu0 }
 0x159   : > { %v1473_v2 = vadd.f32 %v2430_v62, %v3261_v14 }
 0x15a   : > { %v2432_v1 = vpop.f32.mrf.mxu1  ;;  %v1726_v5 = vpop.f32.mrf.mxu0 }
 0x15b   : > { %v3313_v31 = vadd.f32 %v2500_v45, %v1473_v2  ;;  %v2433_v7 = vadd.f32 %v2432_v1, %v2431_v37 }
 0x15c   : > { %v2520_v8 = vpop.f32.mrf.mxu1  ;;  %v2610_v43 = vpop.f32.mrf.mxu0 }
 0x15d   : > { %v1476_v9 = vadd.f32 %v2433_v7, %v3263_v20 }
 0x15e   : > { %v2521_v12 = vpop.f32.mrf.mxu1  ;;  %v1731_v13 = vpop.f32.mrf.mxu0 }
 0x15f   : > { %v3316_v16 = vadd.f32 %v2503_v56, %v1476_v9  ;;  %v2522_v6 = vadd.f32 %v2521_v12, %v2520_v8 }
 0x160   : > { %v2523_v17 = vpop.f32.mrf.mxu1  ;;  %v2613_v18 = vpop.f32.mrf.mxu0 }
 0x161   : > { %v1619_v49 = vadd.f32 %v2522_v6, %v3265_v35 }
 0x162   : > { %v2524_v14 = vpop.f32.mrf.mxu1  ;;  %v1734_v21 = vpop.f32.mrf.mxu0 }
 0x163   : > { %v2525_v22 = vadd.f32 %v2524_v14, %v2523_v17  ;;  %v1724_v24 = vadd.f32 %v1723_v10, %v1619_v49 }
 0x164   : > { %v2526_v42 = vpop.f32.mrf.mxu1  ;;  %v2614_v25 = vpop.f32.mrf.mxu0 }
 0x165   : > { %v1622_v26 = vadd.f32 %v2525_v22, %v3268_v46  ;;  %v1907_v33 = vmul.f32 %v1724_v24, %v1724_v24 }
 0x166   : > { %v2527_v55 = vpop.f32.mrf.mxu1  ;;  %v1739_v20 = vpop.f32.mrf.mxu0 }
 0x167   : > { %v1727_v28 = vadd.f32 %v1726_v5, %v1622_v26  ;;  %v2528_v29 = vadd.f32 %v2527_v55, %v2526_v42 }
 0x168   : > { %v2529_v35 = vpop.f32.mrf.mxu1  ;;  %v2617_v48 = vpop.f32.mrf.mxu0 }
 0x169   : > { %v2244_v34 = vpack.c.bf16 %v1727_v28, %v1724_v24  ;;  %v1884_v36 = vadd.f32 %v1727_v28, %v1724_v24  ;;  %v1908_v61 = vmul.f32 %v1727_v28, %v1727_v28  ;;  %v1627_v39 = vadd.f32 %v2528_v29, %v3271_v57 }
 0x16a   : > { %v2530_v40 = vpop.f32.mrf.mxu1  ;;  %v1742_v46 = vpop.f32.mrf.mxu0 }
 0x16b   : > { %2245 = vst [vmem:[%s3324_s26] sm:$0xff] %v2244_v34   ;;  %v1925_v44 = vadd.f32 %v1908_v61, %v1907_v33  ;;  %v1732_v54 = vadd.f32 %v1731_v13, %v1627_v39  ;;  %v2531_v45 = vadd.f32 %v2530_v40, %v2529_v35 }
 0x16c   : > { %v2532_v47 = vpop.f32.mrf.mxu1  ;;  %v2618_v3 = vpop.f32.mrf.mxu0 }
 0x16d   : > { %v1885_v51 = vadd.f32 %v1884_v36, %v1732_v54  ;;  %v1909_v32 = vmul.f32 %v1732_v54, %v1732_v54  ;;  %v1630_v53 = vadd.f32 %v2531_v45, %v3274_v4 }
 0x16e   : > { %v2533_v60 = vpop.f32.mrf.mxu1  ;;  %v1747_v56 = vpop.f32.mrf.mxu0 }
 0x16f   : > { %v1926_v58 = vadd.f32 %v1925_v44, %v1909_v32  ;;  %v1735_v10 = vadd.f32 %v1734_v21, %v1630_v53  ;;  %v2534_v62 = vadd.f32 %v2533_v60, %v2532_v47 }
 0x170   : > { %v2535_v37 = vpop.f32.mrf.mxu1  ;;  %v2621_v57 = vpop.f32.mrf.mxu0 }
 0x171   : > { %v2249_v0 = vpack.c.bf16 %v1735_v10, %v1732_v54  ;;  %v1886_v2 = vadd.f32 %v1885_v51, %v1735_v10  ;;  %v1910_v1 = vmul.f32 %v1735_v10, %v1735_v10  ;;  %v1635_v5 = vadd.f32 %v2534_v62, %v3277_v15 }
 0x172   : > { %v2536_v7 = vpop.f32.mrf.mxu1  ;;  %v1750_v8 = vpop.f32.mrf.mxu0 }
 0x173   : > { %2286 = vst [vmem:[%s3324_s26 + $0x8] sm:$0xff] %v2249_v0   ;;  %v1927_v43 = vadd.f32 %v1926_v58, %v1910_v1  ;;  %v1740_v9 = vadd.f32 %v1739_v20, %v1635_v5  ;;  %v2537_v12 = vadd.f32 %v2536_v7, %v2535_v37 }
 0x174   : > { %v2538_v13 = vpop.f32.mrf.mxu1  ;;  %v2622_v4 = vpop.f32.mrf.mxu0 }
 0x175   : > { %v1887_v6 = vadd.f32 %v1886_v2, %v1740_v9  ;;  %v1911_v17 = vmul.f32 %v1740_v9, %v1740_v9  ;;  %v1638_v18 = vadd.f32 %v2537_v12, %v3280_v23 }
 0x176   : > { %v2539_v49 = vpop.f32.mrf.mxu1  ;;  %v1755_v14 = vpop.f32.mrf.mxu0 }
 0x177   : > { %v1928_v21 = vadd.f32 %v1927_v43, %v1911_v17  ;;  %v1743_v22 = vadd.f32 %v1742_v46, %v1638_v18  ;;  %v2540_v24 = vadd.f32 %v2539_v49, %v2538_v13 }
 0x178   : > { %v2541_v42 = vpop.f32.mrf.mxu1  ;;  %v2625_v15 = vpop.f32.mrf.mxu0 }
 0x179   : > { %v2254_v25 = vpack.c.bf16 %v1743_v22, %v1740_v9  ;;  %v1888_v26 = vadd.f32 %v1887_v6, %v1743_v22  ;;  %v1912_v55 = vmul.f32 %v1743_v22, %v1743_v22  ;;  %v1643_v20 = vadd.f32 %v2540_v24, %v3283_v30 }
 0x17a   : > { %v2542_v28 = vpop.f32.mrf.mxu1  ;;  %v1758_v29 = vpop.f32.mrf.mxu0 }
 0x17b   : > { %2287 = vst [vmem:[%s3324_s26 + $0x10] sm:$0xff] %v2254_v25   ;;  %v1929_v33 = vadd.f32 %v1928_v21, %v1912_v55  ;;  %v1748_v35 = vadd.f32 %v1747_v56, %v1643_v20  ;;  %v2543_v48 = vadd.f32 %v2542_v28, %v2541_v42 }
 0x17c   : > { %v2544_v34 = vpop.f32.mrf.mxu1  ;;  %v2626_v23 = vpop.f32.mrf.mxu0 }
 0x17d   : > { %v1889_v36 = vadd.f32 %v1888_v26, %v1748_v35  ;;  %v1913_v61 = vmul.f32 %v1748_v35, %v1748_v35  ;;  %v1646_v39 = vadd.f32 %v2543_v48, %v3286_v41 }
 0x17e   : > { %v2545_v40 = vpop.f32.mrf.mxu1  ;;  %v1763_v46 = vpop.f32.mrf.mxu0 }
 0x17f   : > { %v1930_v44 = vadd.f32 %v1929_v33, %v1913_v61  ;;  %v1751_v54 = vadd.f32 %v1750_v8, %v1646_v39  ;;  %v2546_v45 = vadd.f32 %v2545_v40, %v2544_v34 }
 0x180   : > { %v2547_v47 = vpop.f32.mrf.mxu1  ;;  %v2629_v30 = vpop.f32.mrf.mxu0 }
 0x181   : > { %v2259_v3 = vpack.c.bf16 %v1751_v54, %v1748_v35  ;;  %v1890_v51 = vadd.f32 %v1889_v36, %v1751_v54  ;;  %v1914_v32 = vmul.f32 %v1751_v54, %v1751_v54  ;;  %v1651_v53 = vadd.f32 %v2546_v45, %v3289_v52 }
 0x182   : > { %v2548_v60 = vpop.f32.mrf.mxu1  ;;  %v1766_v56 = vpop.f32.mrf.mxu0 }
 0x183   : > { %2288 = vst [vmem:[%s3324_s26 + $0x18] sm:$0xff] %v2259_v3   ;;  %v1931_v58 = vadd.f32 %v1930_v44, %v1914_v32  ;;  %v1756_v10 = vadd.f32 %v1755_v14, %v1651_v53  ;;  %v2549_v62 = vadd.f32 %v2548_v60, %v2547_v47 }
 0x184   : > { %v2550_v37 = vpop.f32.mrf.mxu1  ;;  %v2630_v41 = vpop.f32.mrf.mxu0 }
 0x185   : > { %v1891_v57 = vadd.f32 %v1890_v51, %v1756_v10  ;;  %v1915_v0 = vmul.f32 %v1756_v10, %v1756_v10  ;;  %v1654_v2 = vadd.f32 %v2549_v62, %v3292_v63 }
 0x186   : > { %v2551_v1 = vpop.f32.mrf.mxu1  ;;  %v1771_v5 = vpop.f32.mrf.mxu0 }
 0x187   : > { %v1932_v7 = vadd.f32 %v1931_v58, %v1915_v0  ;;  %v1759_v8 = vadd.f32 %v1758_v29, %v1654_v2  ;;  %v2552_v43 = vadd.f32 %v2551_v1, %v2550_v37 }
 0x188   : > { %v2553_v9 = vpop.f32.mrf.mxu1  ;;  %v2633_v52 = vpop.f32.mrf.mxu0 }
 0x189   : > { %v2264_v12 = vpack.c.bf16 %v1759_v8, %v1756_v10  ;;  %v1892_v13 = vadd.f32 %v1891_v57, %v1759_v8  ;;  %v1916_v4 = vmul.f32 %v1759_v8, %v1759_v8  ;;  %v1659_v6 = vadd.f32 %v2552_v43, %v3295_v11 }
 0x18a   : > { %v2554_v17 = vpop.f32.mrf.mxu1  ;;  %v1774_v18 = vpop.f32.mrf.mxu0 }
 0x18b   : > { %2289 = vst [vmem:[%s3324_s26 + $0x20] sm:$0xff] %v2264_v12   ;;  %v1933_v49 = vadd.f32 %v1932_v7, %v1916_v4  ;;  %v1764_v14 = vadd.f32 %v1763_v46, %v1659_v6  ;;  %v2555_v21 = vadd.f32 %v2554_v17, %v2553_v9 }
 0x18c   : > { %v2556_v22 = vpop.f32.mrf.mxu1  ;;  %v2634_v63 = vpop.f32.mrf.mxu0 }
 0x18d   : > { %v1893_v24 = vadd.f32 %v1892_v13, %v1764_v14  ;;  %v1917_v42 = vmul.f32 %v1764_v14, %v1764_v14  ;;  %v1662_v15 = vadd.f32 %v2555_v21, %v3298_v19 }
 0x18e   : > { %v2557_v25 = vpop.f32.mrf.mxu1  ;;  %v1779_v26 = vpop.f32.mrf.mxu0 }
 0x18f   : > { %v1934_v55 = vadd.f32 %v1933_v49, %v1917_v42  ;;  %v1767_v20 = vadd.f32 %v1766_v56, %v1662_v15  ;;  %v2558_v28 = vadd.f32 %v2557_v25, %v2556_v22 }
 0x190   : > { %v2559_v29 = vpop.f32.mrf.mxu1  ;;  %v2637_v11 = vpop.f32.mrf.mxu0 }
 0x191   : > { %v2269_v33 = vpack.c.bf16 %v1767_v20, %v1764_v14  ;;  %v1894_v35 = vadd.f32 %v1893_v24, %v1767_v20  ;;  %v1918_v48 = vmul.f32 %v1767_v20, %v1767_v20  ;;  %v1667_v34 = vadd.f32 %v2558_v28, %v3301_v27 }
 0x192   : > { %v2560_v23 = vpop.f32.mrf.mxu1  ;;  %v1782_v36 = vpop.f32.mrf.mxu0  ;;  %v1948_v28 = vlaneseq }
 0x193   : > { %2290 = vst [vmem:[%s3324_s26 + $0x28] sm:$0xff] %v2269_v33   ;;  %v1935_v61 = vadd.f32 %v1934_v55, %v1918_v48  ;;  %v1772_v39 = vadd.f32 %v1771_v5, %v1667_v34  ;;  %v2561_v40 = vadd.f32 %v2560_v23, %v2559_v29 }
 0x194   : > { %v2562_v46 = vpop.f32.mrf.mxu1  ;;  %v2638_v19 = vpop.f32.mrf.mxu0  ;;  %v1949_v48 = vshrl.u32 %v1948_v28, 7 }
 0x195   : > { %v1895_v44 = vadd.f32 %v1894_v35, %v1772_v39  ;;  %v1919_v54 = vmul.f32 %v1772_v39, %v1772_v39  ;;  %v1670_v45 = vadd.f32 %v2561_v40, %v3304_v38 }
 0x196   : > { %v2563_v47 = vpop.f32.mrf.mxu1  ;;  %v1787_v30 = vpop.f32.mrf.mxu0  ;;  %vm1951_vm1 = vcmp.eq.s32.totalorder %v1949_v48, 1  ;;  %vm1950_vm2 = vcmp.eq.s32.totalorder %v1949_v48, 0 }
 0x197   : > { %v1936_v3 = vadd.f32 %v1935_v61, %v1919_v54  ;;  %v1775_v51 = vadd.f32 %v1774_v18, %v1670_v45  ;;  %v2564_v32 = vadd.f32 %v2563_v47, %v2562_v46 }
 0x198   : > { %v2565_v53 = vpop.f32.mrf.mxu1  ;;  %v2641_v27 = vpop.f32.mrf.mxu0 }
 0x199   : > { %v2274_v60 = vpack.c.bf16 %v1775_v51, %v1772_v39  ;;  %v1896_v56 = vadd.f32 %v1895_v44, %v1775_v51  ;;  %v1920_v58 = vmul.f32 %v1775_v51, %v1775_v51  ;;  %v1675_v10 = vadd.f32 %v2564_v32, %v3307_v50 }
 0x19a   : > { %v2566_v62 = vpop.f32.mrf.mxu1  ;;  %v1790_v37 = vpop.f32.mrf.mxu0 }
 0x19b   : > { %2291 = vst [vmem:[%s3324_s26 + $0x30] sm:$0xff] %v2274_v60   ;;  %v1937_v41 = vadd.f32 %v1936_v3, %v1920_v58  ;;  %v1780_v57 = vadd.f32 %v1779_v26, %v1675_v10  ;;  %v2567_v0 = vadd.f32 %v2566_v62, %v2565_v53 }
 0x19c   : > { %v2568_v38 = vpop.f32.mrf.mxu1  ;;  %v2642_v2 = vpop.f32.mrf.mxu0 }
 0x19d   : > { %v1897_v1 = vadd.f32 %v1896_v56, %v1780_v57  ;;  %v1921_v5 = vmul.f32 %v1780_v57, %v1780_v57  ;;  %v1678_v7 = vadd.f32 %v2567_v0, %v3310_v59 }
 0x19e   : > { %v2569_v8 = vpop.f32.mrf.mxu1 }
 0x19f   : > { %v1938_v43 = vadd.f32 %v1937_v41, %v1921_v5  ;;  %v1783_v9 = vadd.f32 %v1782_v36, %v1678_v7  ;;  %v2570_v52 = vadd.f32 %v2569_v8, %v2568_v38 }
 0x1a0   : > { %v2571_v12 = vpop.f32.mrf.mxu1 }
 0x1a1   : > { %v2279_v13 = vpack.c.bf16 %v1783_v9, %v1780_v57  ;;  %v1898_v50 = vadd.f32 %v1897_v1, %v1783_v9  ;;  %v1922_v4 = vmul.f32 %v1783_v9, %v1783_v9  ;;  %v1683_v6 = vadd.f32 %v2570_v52, %v3313_v31 }
 0x1a2   : > { %v2572_v17 = vpop.f32.mrf.mxu1 }
 0x1a3   : > { %2292 = vst [vmem:[%s3324_s26 + $0x38] sm:$0xff] %v2279_v13   ;;  %v1939_v18 = vadd.f32 %v1938_v43, %v1922_v4  ;;  %v1788_v49 = vadd.f32 %v1787_v30, %v1683_v6  ;;  %v2573_v14 = vadd.f32 %v2572_v17, %v2571_v12 }
 0x1a5   : > { %v1899_v21 = vadd.f32 %v1898_v50, %v1788_v49  ;;  %v1923_v22 = vmul.f32 %v1788_v49, %v1788_v49  ;;  %v1686_v59 = vadd.f32 %v2573_v14, %v3316_v16 }
 0x1a7   : > { %v1940_v63 = vadd.f32 %v1939_v18, %v1923_v22  ;;  %v1791_v24 = vadd.f32 %v1790_v37, %v1686_v59 }
 0x1a9   : > { %v2284_v42 = vpack.c.bf16 %v1791_v24, %v1788_v49  ;;  %v1900_v15 = vadd.f32 %v1899_v21, %v1791_v24  ;;  %v1924_v25 = vmul.f32 %v1791_v24, %v1791_v24 }
 0x1ab   : > { %2293 = vst [vmem:[%s3324_s26 + $0x40] sm:$0xff] %v2284_v42   ;;  %v1901_v26 = vrot.slane %v1900_v15, 4  ;;  %v1941_v55 = vadd.f32 %v1940_v63, %v1924_v25 }
 0x1ad   : > { %v1902_v31 = vadd.f32 %v1901_v26, %v1900_v15  ;;  %v1942_v20 = vrot.slane %v1941_v55, 4 }
 0x1af   : > { %v1903_v29 = vrot.slane %v1902_v31, 2  ;;  %v1943_v11 = vadd.f32 %v1942_v20, %v1941_v55 }
 0x1b1   : > { %v1904_v33 = vadd.f32 %v1903_v29, %v1902_v31  ;;  %v1944_v35 = vrot.slane %v1943_v11, 2 }
 0x1b3   : > { %v1945_v34 = vadd.f32 %v1944_v35, %v1943_v11  ;;  %v1905_v16 = vrot.slane %v1904_v33, 1 }
 0x1b5   : > { %v1946_v23 = vrot.slane %v1945_v34, 1  ;;  %v1906_v61 = vadd.f32 %v1905_v16, %v1904_v33 }
 0x1b7   : > { %v1947_v36 = vadd.f32 %v1946_v23, %v1945_v34 }
 0x1b9   : > { %v1952_v39 = vsel %vm1951_vm1, %v1947_v36, 0.0 }
 0x1ba   : > { %v1953_v40 = vsel %vm1950_vm2, %v1906_v61, %v1952_v39 }
 0x1bb   : > { %1954 = vst [vmem:[%s187_s29] sm:$0xff] %v1953_v40 }
 0x1bc PF: > { %s14_s12 = sadd.s32 1, %s2865_s12  }
 0x1bd   : > { %p11_p5 = scmp.ge.s32.totalorder %s14_s12, 4  }
 0x1bf   :  { %13 = sbr.rel (!%p11_p5) target bundleno = 1 (0x1), region = 70 }

// kernel: resnet18_forward.17
= control target key start
LH: loop header
LB: loop body
LE: loop exit
PB: predicated region body
PF: predicated region fallthrough
CT: control target
= control target key end

     0   :  { %s1851_s12 = smov 0   ;;  %s2152_s0 = inlined_call_operand.vmem [shape: bf16[96,1152], index: 0, kind: input, shape index: {}]   ;;  %s2153_s1 = inlined_call_operand.vmem [shape: bf16[1152,128], index: 1, kind: input, shape index: {}]   ;;  %s2154_s2 = inlined_call_operand.vmem [shape: bf16[96,128], index: 2, kind: output, shape index: {0}]   ;;  %s2155_s3 = inlined_call_operand.vmem [shape: f32[2,8,128], index: 3, kind: output, shape index: {1}]  }
   0x1 LB: > { %s1857_s13 = sadd.s32 4294967295, %s1827_s12   ;;  %p1374_p0 = scmp.ge.s32.totalorder %s1827_s12, 1  ;;  %s1827_s12 = sphi %s1851_s12, %s14_s12  }
   0x2   : > { %p142_p1 = scmp.lt.s32.totalorder %s1827_s12, 3 }
   0x4   : > { %p143_p2 = pnand %p1374_p0, %p142_p1 }
   0x5   : > { %s171_s17 = smul.u32 (!%p143_p2), 6, %s1857_s13  ;;  %p184_p4 = scmp.lt.s32.totalorder (!%p143_p2), %s1857_s13, 1 }
   0x6   : > { %146 = sbr.rel (%p143_p2) target bundleno = 336 (0x150), region = 28 }
   0x7   : > { %p172_p3 = scmp.lt.s32.totalorder (!%p143_p2), %s171_s17, 11 }
   0xb   : > { %v1710_v0 = vld [vmem:[%s2153_s1 + $0x78] sm:$0xff]   ;;  %v1714_v4 = vld [vmem:[%s2153_s1 + $0x70] sm:$0xff]   ;;  %v1718_v8 = vld [vmem:[%s2153_s1 + $0x68] sm:$0xff]   ;;  %s2157_s17 = smov (!%p172_p3, %s171_s17), 11  ;;  %vm1830_vm0 = vmmov 0   ;;  %s2159_s13 = smov (!%p184_p4, %s1857_s13), 1 }
   0xc   : > { %v1711_v1 = vld [vmem:[%s2153_s1 + $0xf8] sm:$0xff]   ;;  %1508 = vmatprep.subr.bf16.mxu0 %v1710_v0  ;;  %v1715_v5 = vld [vmem:[%s2153_s1 + $0xf0] sm:$0xff]   ;;  %v1719_v9 = vld [vmem:[%s2153_s1 + $0xe8] sm:$0xff]   ;;  %s1699_s18 = smul.u32 36, %s2157_s17 }
   0xd   : > { %v1712_v2 = vld [vmem:[%s2153_s1 + $0x38] sm:$0xff]   ;;  %1542 = vmatprep.subr.bf16.mxu1 %v1711_v1  ;;  %v1716_v6 = vld [vmem:[%s2153_s1 + $0x30] sm:$0xff]   ;;  %v1720_v10 = vld [vmem:[%s2153_s1 + $0x28] sm:$0xff]  }
   0xe   : > { %v1713_v3 = vld [vmem:[%s2153_s1 + $0xb8] sm:$0xff]   ;;  %1509 = vmatpush3.bf16.msra.mxu0 %v1712_v2  ;;  %v1717_v7 = vld [vmem:[%s2153_s1 + $0xb0] sm:$0xff]   ;;  %v1721_v11 = vld [vmem:[%s2153_s1 + $0xa8] sm:$0xff]   ;;  %s1958_s29 = scalar_lea.vmem %s2152_s0, %s1699_s18 }
   0xf   : > { %1543 = vmatpush3.bf16.msra.mxu1 %v1713_v3  ;;  %1510 = vmatprep.subr.bf16.mxu0 %v1714_v4  ;;  %v1722_v12 = vld [vmem:[%s2153_s1 + $0x60] sm:$0xff]   ;;  %v1726_v16 = vld [vmem:[%s2153_s1 + $0x58] sm:$0xff]   ;;  %v1730_v20 = vld [vmem:[%s2153_s1 + $0x50] sm:$0xff]  }
  0x10   : > { %1544 = vmatprep.subr.bf16.mxu1 %v1715_v5  ;;  %v1723_v13 = vld [vmem:[%s2153_s1 + $0xe0] sm:$0xff]   ;;  %v1727_v17 = vld [vmem:[%s2153_s1 + $0xd8] sm:$0xff]   ;;  %v1731_v21 = vld [vmem:[%s2153_s1 + $0xd0] sm:$0xff]  }
  0x11   : > { %v1724_v14 = vld [vmem:[%s2153_s1 + $0x20] sm:$0xff]   ;;  %v1728_v18 = vld [vmem:[%s2153_s1 + $0x18] sm:$0xff]   ;;  %v1732_v22 = vld [vmem:[%s2153_s1 + $0x10] sm:$0xff]  }
  0x12   : > { %1511 = vmatpush3.bf16.msra.mxu0 %v1716_v6  ;;  %v1725_v15 = vld [vmem:[%s2153_s1 + $0xa0] sm:$0xff]   ;;  %v1729_v19 = vld [vmem:[%s2153_s1 + $0x98] sm:$0xff]   ;;  %v1733_v23 = vld [vmem:[%s2153_s1 + $0x90] sm:$0xff]  }
  0x13   : > { %1545 = vmatpush3.bf16.msra.mxu1 %v1717_v7  ;;  %1512 = vmatprep.subr.bf16.mxu0 %v1718_v8  ;;  %v1734_v24 = vld [vmem:[%s2153_s1 + $0x48] sm:$0xff]   ;;  %v1738_v28 = vld [vmem:[%s2153_s1 + $0x40] sm:$0xff]   ;;  %v1748_v36 = vld [vmem:[%s2153_s1 + $0x178] sm:$0xff]  }
  0x14   : > { %1546 = vmatprep.subr.bf16.mxu1 %v1719_v9  ;;  %v1735_v25 = vld [vmem:[%s2153_s1 + $0xc8] sm:$0xff]   ;;  %v1739_v29 = vld [vmem:[%s2153_s1 + $0xc0] sm:$0xff]   ;;  %v1749_v37 = vld [vmem:[%s2153_s1 + $0x1f8] sm:$0xff]  }
  0x15   : > { %v1736_v26 = vld [vmem:[%s2153_s1 + $0x8] sm:$0xff]   ;;  %v1740_v30 = vld [vmem:[%s2153_s1] sm:$0xff]   ;;  %v1750_v38 = vld [vmem:[%s2153_s1 + $0x138] sm:$0xff]  }
  0x16   : > { %1513 = vmatpush3.bf16.msra.mxu0 %v1720_v10  ;;  %v1737_v27 = vld [vmem:[%s2153_s1 + $0x88] sm:$0xff]   ;;  %v1741_v31 = vld [vmem:[%s2153_s1 + $0x80] sm:$0xff]   ;;  %v1751_v39 = vld [vmem:[%s2153_s1 + $0x1b8] sm:$0xff]  }
  0x17   : > { %1547 = vmatpush3.bf16.msra.mxu1 %v1721_v11  ;;  %1514 = vmatprep.subr.bf16.mxu0 %v1722_v12  ;;  %v1742_v32 = vld [vmem:[%s1958_s29] ss:$36 sps:$4 sm:$0xff]   ;;  %v1745_v34 = vld [vmem:[%s1958_s29 + $0x8] ss:$36 sps:$4 sm:$0xff]   ;;  %v1752_v40 = vld [vmem:[%s2153_s1 + $0x170] sm:$0xff]  }
  0x18   : > { %1548 = vmatprep.subr.bf16.mxu1 %v1723_v13  ;;  %v1744_v33 = vld [vmem:[%s1958_s29 + $0x4] ss:$36 sps:$4 sm:$0xff]   ;;  %v1747_v35 = vld [vmem:[%s1958_s29 + $0xc] ss:$36 sps:$4 sm:$0xff]   ;;  %v1762_v49 = vld [vmem:[%s1958_s29 + $0x54] ss:$36 sps:$4 sm:$0xff]  }
  0x19   : > { %965 = vmatprep.mubr.bf16.mxu0 %v1744_v33  ;;  %1022 = vmatprep.mubr.bf16.mxu1 %v1747_v35  ;;  %v1753_v41 = vld [vmem:[%s2153_s1 + $0x1f0] sm:$0xff]   ;;  %v1756_v44 = vld [vmem:[%s2153_s1 + $0x168] sm:$0xff]   ;;  %v1766_v52 = vld [vmem:[%s2153_s1 + $0x160] sm:$0xff]  }
  0x1a   : > { %1515 = vmatpush3.bf16.msra.mxu0 %v1724_v14  ;;  %v1754_v42 = vld [vmem:[%s2153_s1 + $0x130] sm:$0xff]   ;;  %v1757_v45 = vld [vmem:[%s2153_s1 + $0x1e8] sm:$0xff]   ;;  %v1767_v53 = vld [vmem:[%s2153_s1 + $0x1e0] sm:$0xff]   ;;  %v1829_v14 = vmov 0.0  }
  0x1b   : > { %1549 = vmatpush3.bf16.msra.mxu1 %v1725_v15  ;;  %1516 = vmatprep.subr.bf16.mxu0 %v1726_v16  ;;  %v1755_v43 = vld [vmem:[%s2153_s1 + $0x1b0] sm:$0xff]   ;;  %v1758_v46 = vld [vmem:[%s2153_s1 + $0x128] sm:$0xff]   ;;  %v1768_v54 = vld [vmem:[%s2153_s1 + $0x120] sm:$0xff]  }
  0x1c   : > { %1550 = vmatprep.subr.bf16.mxu1 %v1727_v17  ;;  %v1759_v47 = vld [vmem:[%s2153_s1 + $0x1a8] sm:$0xff]   ;;  %v1765_v51 = vld [vmem:[%s1958_s29 + $0x50] ss:$36 sps:$4 sm:$0xff]   ;;  %v1769_v55 = vld [vmem:[%s2153_s1 + $0x1a0] sm:$0xff]  }
  0x1d   : > { %v1760_v48 = vld [vmem:[%s1958_s29 + $0x4c] ss:$36 sps:$4 sm:$0xff]   ;;  %v1770_v56 = vld [vmem:[%s2153_s1 + $0x158] sm:$0xff]   ;;  %v1788_v8 = vld [vmem:[%s2153_s1 + $0x140] sm:$0xff]  }
  0x1e   : > { %1517 = vmatpush3.bf16.msra.mxu0 %v1728_v18  ;;  %v1764_v50 = vld [vmem:[%s1958_s29 + $0x48] ss:$36 sps:$4 sm:$0xff]   ;;  %v1771_v57 = vld [vmem:[%s2153_s1 + $0x1d8] sm:$0xff]   ;;  %v1778_v62 = vld [vmem:[%s1958_s29 + $0x90] ss:$36 sps:$4 sm:$0xff]  }
  0x1f   : > { %1551 = vmatpush3.bf16.msra.mxu1 %v1729_v19  ;;  %1518 = vmatprep.subr.bf16.mxu0 %v1730_v20  ;;  %v1772_v58 = vld [vmem:[%s2153_s1 + $0x118] sm:$0xff]   ;;  %v1780_v0 = vld [vmem:[%s2153_s1 + $0x150] sm:$0xff]   ;;  %v1784_v4 = vld [vmem:[%s2153_s1 + $0x148] sm:$0xff]  }
  0x20   : > { %1552 = vmatprep.subr.bf16.mxu1 %v1731_v21  ;;  %v1773_v59 = vld [vmem:[%s2153_s1 + $0x198] sm:$0xff]   ;;  %v1781_v1 = vld [vmem:[%s2153_s1 + $0x1d0] sm:$0xff]   ;;  %v1785_v5 = vld [vmem:[%s2153_s1 + $0x1c8] sm:$0xff]  }
  0x21   : > { %v1774_v60 = vld [vmem:[%s1958_s29 + $0x94] ss:$36 sps:$4 sm:$0xff]   ;;  %v1776_v61 = vld [vmem:[%s1958_s29 + $0x9c] ss:$36 sps:$4 sm:$0xff]   ;;  %v1786_v6 = vld [vmem:[%s2153_s1 + $0x108] sm:$0xff]  }
  0x22   : > { %1519 = vmatpush3.bf16.msra.mxu0 %v1732_v22  ;;  %v1779_v63 = vld [vmem:[%s1958_s29 + $0x98] ss:$36 sps:$4 sm:$0xff]   ;;  %v1782_v2 = vld [vmem:[%s2153_s1 + $0x110] sm:$0xff]   ;;  %v1787_v7 = vld [vmem:[%s2153_s1 + $0x188] sm:$0xff]  }
  0x23   : > { %1553 = vmatpush3.bf16.msra.mxu1 %v1733_v23  ;;  %1520 = vmatprep.subr.bf16.mxu0 %v1734_v24  ;;  %v1783_v3 = vld [vmem:[%s2153_s1 + $0x190] sm:$0xff]   ;;  %v1789_v9 = vld [vmem:[%s2153_s1 + $0x1c0] sm:$0xff]   ;;  %v1795_v15 = vld [vmem:[%s1958_s29 + $0x18] ss:$36 sps:$4 sm:$0xff]  }
  0x24   : > { %1554 = vmatprep.subr.bf16.mxu1 %v1735_v25  ;;  %v1790_v10 = vld [vmem:[%s2153_s1 + $0x100] sm:$0xff]   ;;  %v1792_v12 = vld [vmem:[%s1958_s29 + $0x10] ss:$36 sps:$4 sm:$0xff]   ;;  %v1798_v17 = vld [vmem:[%s2153_s1 + $0x238] sm:$0xff]  }
  0x25   : > { %v1791_v11 = vld [vmem:[%s2153_s1 + $0x180] sm:$0xff]   ;;  %v1794_v13 = vld [vmem:[%s1958_s29 + $0x14] ss:$36 sps:$4 sm:$0xff]   ;;  %v1805_v22 = vld [vmem:[%s2153_s1 + $0x228] sm:$0xff]  }
  0x26   : > { %1521 = vmatpush3.bf16.msra.mxu0 %v1736_v26  ;;  %v1797_v16 = vld [vmem:[%s1958_s29 + $0x1c] ss:$36 sps:$4 sm:$0xff]   ;;  %v1799_v18 = vld [vmem:[%s2153_s1 + $0x230] sm:$0xff]   ;;  %v1803_v20 = vld [vmem:[%s1958_s29 + $0x64] ss:$36 sps:$4 sm:$0xff]  }
  0x27   : > { %1555 = vmatpush3.bf16.msra.mxu1 %v1737_v27  ;;  %1522 = vmatprep.subr.bf16.mxu0 %v1738_v28  ;;  %v1800_v19 = vld [vmem:[%s1958_s29 + $0x5c] ss:$36 sps:$4 sm:$0xff]   ;;  %v1808_v24 = vld [vmem:[%s1958_s29 + $0xa4] ss:$36 sps:$4 sm:$0xff]   ;;  %v1811_v25 = vld [vmem:[%s1958_s29 + $0xac] ss:$36 sps:$4 sm:$0xff]  }
  0x28   : > { %1556 = vmatprep.subr.bf16.mxu1 %v1739_v29  ;;  %v1802_v21 = vld [vmem:[%s1958_s29 + $0x58] ss:$36 sps:$4 sm:$0xff]   ;;  %v1806_v23 = vld [vmem:[%s1958_s29 + $0x60] ss:$36 sps:$4 sm:$0xff]   ;;  %v1814_v29 = vld [vmem:[%s1958_s29 + $0xa8] ss:$36 sps:$4 sm:$0xff]  }
  0x29   : > { %v1807_v26 = vld [vmem:[%s2153_s1 + $0x220] sm:$0xff]   ;;  %v1813_v28 = vld [vmem:[%s2153_s1 + $0x218] sm:$0xff]   ;;  %v1820_v35 = vld [vmem:[%s1958_s29 + $0xb0] ss:$36 sps:$4 sm:$0xff]  }
  0x2a   : > { %1523 = vmatpush3.bf16.msra.mxu0 %v1740_v30  ;;  %v1810_v27 = vld [vmem:[%s1958_s29 + $0xa0] ss:$36 sps:$4 sm:$0xff]   ;;  %v1815_v30 = vld [vmem:[%s2153_s1 + $0x210] sm:$0xff]  }
  0x2b   : > { %1557 = vmatpush3.bf16.msra.mxu1 %v1741_v31  ;;  %1576 = vmatprep.subr.bf16.mxu0 %v1748_v36  ;;  %v1816_v31 = vld [vmem:[%s2153_s1 + $0x208] sm:$0xff]   ;;  %v1818_v33 = vld [vmem:[%s1958_s29 + $0x20] ss:$36 sps:$4 sm:$0xff]  }
  0x2c   : > { %1610 = vmatprep.subr.bf16.mxu1 %v1749_v37 }
  0x2d   : > { %966 = vmatmul.mubr.bf16.vlgmr.msra.gmra.mxu0 %v1742_v32  ;;  %v1817_v32 = vld [vmem:[%s2153_s1 + $0x200] sm:$0xff]  }
  0x2e   : > { %1023 = vmatmul.mubr.bf16.vlgmr.msra.gmra.mxu1 %v1745_v34  ;;  %1577 = vmatpush3.bf16.msra.mxu0 %v1750_v38  ;;  %v1819_v34 = vld [vmem:[%s1958_s29 + $0x68] ss:$36 sps:$4 sm:$0xff]   ;;  %s1376_s29 = sshll.u32 %s2157_s17, 2  ;;  %s1377_s17 = sshll.u32 %s2159_s13, 3 }
  0x2f   : > { %1611 = vmatpush3.bf16.msra.mxu1 %v1751_v39  ;;  %1578 = vmatprep.subr.bf16.mxu0 %v1752_v40  ;;  %s2139_s23 = scalar_lea.vmem %s2154_s2, %s1376_s29  ;;  %s187_s26 = scalar_lea.vmem %s2155_s3, %s1377_s17 }
  0x30   : > { %1612 = vmatprep.subr.bf16.mxu1 %v1753_v41  ;;  %973 = vmatprep.mubr.bf16.mxu0 %v1760_v48 }
  0x31   : > { %1030 = vmatprep.mubr.bf16.mxu1 %v1762_v49 }
  0x32   : > { %1579 = vmatpush3.bf16.msra.mxu0 %v1754_v42 }
  0x33   : > { %1613 = vmatpush3.bf16.msra.mxu1 %v1755_v43  ;;  %1580 = vmatprep.subr.bf16.mxu0 %v1756_v44 }
  0x34   : > { %1614 = vmatprep.subr.bf16.mxu1 %v1757_v45 }
  0x35   : > { %974 = vmatmul.mubr.bf16.gmra.mxu0 %v1764_v50 }
  0x36   : > { %1581 = vmatpush3.bf16.msra.mxu0 %v1758_v46  ;;  %1031 = vmatmul.mubr.bf16.gmra.mxu1 %v1765_v51 }
  0x37   : > { %1615 = vmatpush3.bf16.msra.mxu1 %v1759_v47  ;;  %1582 = vmatprep.subr.bf16.mxu0 %v1766_v52 }
  0x38   : > { %1616 = vmatprep.subr.bf16.mxu1 %v1767_v53  ;;  %981 = vmatprep.mubr.bf16.mxu0 %v1774_v60 }
  0x39   : > { %1038 = vmatprep.mubr.bf16.mxu1 %v1776_v61 }
  0x3a   : > { %1583 = vmatpush3.bf16.msra.mxu0 %v1768_v54 }
  0x3b   : > { %1617 = vmatpush3.bf16.msra.mxu1 %v1769_v55  ;;  %1584 = vmatprep.subr.bf16.mxu0 %v1770_v56 }
  0x3c   : > { %1618 = vmatprep.subr.bf16.mxu1 %v1771_v57 }
  0x3d   : > { %982 = vmatmul.mubr.bf16.gmra.mxu0 %v1778_v62 }
  0x3e   : > { %1585 = vmatpush3.bf16.msra.mxu0 %v1772_v58  ;;  %1039 = vmatmul.mubr.bf16.gmra.mxu1 %v1779_v63 }
  0x3f   : > { %1619 = vmatpush3.bf16.msra.mxu1 %v1773_v59  ;;  %1586 = vmatprep.subr.bf16.mxu0 %v1780_v0 }
  0x40   : > { %1620 = vmatprep.subr.bf16.mxu1 %v1781_v1  ;;  %1079 = vmatprep.mubr.bf16.mxu0 %v1794_v13 }
  0x41   : > { %1136 = vmatprep.mubr.bf16.mxu1 %v1797_v16 }
  0x42   : > { %1587 = vmatpush3.bf16.msra.mxu0 %v1782_v2 }
  0x43   : > { %1621 = vmatpush3.bf16.msra.mxu1 %v1783_v3  ;;  %1588 = vmatprep.subr.bf16.mxu0 %v1784_v4 }
  0x44   : > { %1622 = vmatprep.subr.bf16.mxu1 %v1785_v5 }
  0x46   : > { %1589 = vmatpush3.bf16.msra.mxu0 %v1786_v6 }
  0x47   : > { %1623 = vmatpush3.bf16.msra.mxu1 %v1787_v7  ;;  %1590 = vmatprep.subr.bf16.mxu0 %v1788_v8 }
  0x48   : > { %1624 = vmatprep.subr.bf16.mxu1 %v1789_v9 }
  0x4a   : > { %1591 = vmatpush3.bf16.msra.mxu0 %v1790_v10 }
  0x4b   : > { %1625 = vmatpush3.bf16.msra.mxu1 %v1791_v11  ;;  %1655 = vmatprep.subr.bf16.mxu0 %v1829_v14 }
  0x4c   : > { %1683 = vmatprep.subr.bf16.mxu1 %v1829_v14 }
  0x4d   : > { %1080 = vmatmul.mubr.bf16.vlgmr.msra.gmra.mxu0 %v1792_v12 }
  0x4e   : > { %1137 = vmatmul.mubr.bf16.vlgmr.msra.gmra.mxu1 %v1795_v15  ;;  %1656 = vmatpush3.bf16.msra.mxu0 %v1798_v17 }
  0x4f   : > { %1691 = vmatpush3.bf16.msra.mxu1 %v1798_v17  ;;  %1657 = vmatprep.subr.bf16.mxu0 %v1829_v14 }
  0x50   : > { %1684 = vmatprep.subr.bf16.mxu1 %v1829_v14  ;;  %1087 = vmatprep.mubr.bf16.mxu0 %v1800_v19 }
  0x51   : > { %1144 = vmatprep.mubr.bf16.mxu1 %v1803_v20 }
  0x52   : > { %1658 = vmatpush3.bf16.msra.mxu0 %v1799_v18 }
  0x53   : > { %1692 = vmatpush3.bf16.msra.mxu1 %v1799_v18  ;;  %1659 = vmatprep.subr.bf16.mxu0 %v1829_v14 }
  0x54   : > { %1685 = vmatprep.subr.bf16.mxu1 %v1829_v14 }
  0x55   : > { %1088 = vmatmul.mubr.bf16.gmra.mxu0 %v1802_v21 }
  0x56   : > { %1660 = vmatpush3.bf16.msra.mxu0 %v1805_v22  ;;  %1145 = vmatmul.mubr.bf16.gmra.mxu1 %v1806_v23 }
  0x57   : > { %1693 = vmatpush3.bf16.msra.mxu1 %v1805_v22  ;;  %1661 = vmatprep.subr.bf16.mxu0 %v1829_v14 }
  0x58   : > { %1686 = vmatprep.subr.bf16.mxu1 %v1829_v14  ;;  %1095 = vmatprep.mubr.bf16.mxu0 %v1808_v24 }
  0x59   : > { %1152 = vmatprep.mubr.bf16.mxu1 %v1811_v25 }
  0x5a   : > { %1662 = vmatpush3.bf16.msra.mxu0 %v1807_v26 }
  0x5b   : > { %1694 = vmatpush3.bf16.msra.mxu1 %v1807_v26  ;;  %1663 = vmatprep.subr.bf16.mxu0 %v1829_v14 }
  0x5c   : > { %1687 = vmatprep.subr.bf16.mxu1 %v1829_v14 }
  0x5d   : > { %1096 = vmatmul.mubr.bf16.gmra.mxu0 %v1810_v27 }
  0x5e   : > { %1664 = vmatpush3.bf16.msra.mxu0 %v1813_v28  ;;  %1153 = vmatmul.mubr.bf16.gmra.mxu1 %v1814_v29 }
  0x5f   : > { %1695 = vmatpush3.bf16.msra.mxu1 %v1813_v28  ;;  %1665 = vmatprep.subr.bf16.mxu0 %v1829_v14 }
  0x60   : > { %1688 = vmatprep.subr.bf16.mxu1 %v1829_v14  ;;  %1671 = vmatprep.mubr.msk.bf16.mxu0 %vm1830_vm0, %v1829_v14 }
  0x61   : > { %1675 = vmatprep.mubr.msk.bf16.mxu1 %vm1830_vm0, %v1829_v14 }
  0x62   : > { %1666 = vmatpush3.bf16.msra.mxu0 %v1815_v30 }
  0x63   : > { %1696 = vmatpush3.bf16.msra.mxu1 %v1815_v30  ;;  %1667 = vmatprep.subr.bf16.mxu0 %v1829_v14 }
  0x64   : > { %1689 = vmatprep.subr.bf16.mxu1 %v1829_v14 }
  0x66   : > { %1668 = vmatpush3.bf16.msra.mxu0 %v1816_v31 }
  0x67   : > { %1697 = vmatpush3.bf16.msra.mxu1 %v1816_v31  ;;  %1669 = vmatprep.subr.bf16.mxu0 %v1829_v14 }
  0x68   : > { %1690 = vmatprep.subr.bf16.mxu1 %v1829_v14 }
  0x6a   : > { %1670 = vmatpush3.bf16.msra.mxu0 %v1817_v32 }
  0x6b   : > { %1698 = vmatpush3.bf16.msra.mxu1 %v1817_v32 }
  0x6d   : > { %1672 = vmatmul.mubr.bf16.vlgmr.msra.gmra.mxu0 %v1818_v33 }
  0x6e   : > { %1676 = vmatmul.mubr.bf16.vlgmr.msra.gmra.mxu1 %v1819_v34 }
  0x6f   : > { %1679 = vmatprep.mubr.msk.bf16.mxu1 %vm1830_vm0, %v1829_v14 }
  0x76   : > { %1680 = vmatmul.mubr.bf16.gmra.mxu1 %v1820_v35 }
  0xed   : > { %v1524_v36 = vpop.f32.mrf.mxu0 }
  0xee   : > { %v1558_v37 = vpop.f32.mrf.mxu1 }
  0xef   : > { %v1525_v38 = vpop.f32.mrf.mxu0 }
  0xf0   : > { %v1559_v39 = vpop.f32.mrf.mxu1  ;;  %v1526_v15 = vadd.f32 %v1525_v38, %v1524_v36 }
  0xf1   : > { %v1527_v40 = vpop.f32.mrf.mxu0  ;;  %v1560_v16 = vadd.f32 %v1559_v39, %v1558_v37 }
  0xf2   : > { %v1561_v41 = vpop.f32.mrf.mxu1 }
  0xf3   : > { %v1528_v42 = vpop.f32.mrf.mxu0  ;;  %v1025_v26 = vadd.f32 %v1560_v16, %v1526_v15 }
  0xf4   : > { %v1562_v43 = vpop.f32.mrf.mxu1  ;;  %v1529_v18 = vadd.f32 %v1528_v42, %v1527_v40 }
  0xf5   : > { %v1530_v44 = vpop.f32.mrf.mxu0  ;;  %v1563_v19 = vadd.f32 %v1562_v43, %v1561_v41 }
  0xf6   : > { %v1564_v45 = vpop.f32.mrf.mxu1 }
  0xf7   : > { %v1531_v46 = vpop.f32.mrf.mxu0  ;;  %v1028_v31 = vadd.f32 %v1563_v19, %v1529_v18 }
  0xf8   : > { %v1565_v47 = vpop.f32.mrf.mxu1  ;;  %v1532_v20 = vadd.f32 %v1531_v46, %v1530_v44 }
  0xf9   : > { %v1533_v48 = vpop.f32.mrf.mxu0  ;;  %v1566_v21 = vadd.f32 %v1565_v47, %v1564_v45 }
  0xfa   : > { %v1567_v49 = vpop.f32.mrf.mxu1 }
  0xfb   : > { %v1534_v50 = vpop.f32.mrf.mxu0  ;;  %v1033_v32 = vadd.f32 %v1566_v21, %v1532_v20 }
  0xfc   : > { %v1568_v51 = vpop.f32.mrf.mxu1  ;;  %v1535_v23 = vadd.f32 %v1534_v50, %v1533_v48 }
  0xfd   : > { %v1536_v52 = vpop.f32.mrf.mxu0  ;;  %v1569_v24 = vadd.f32 %v1568_v51, %v1567_v49 }
  0xfe   : > { %v1570_v53 = vpop.f32.mrf.mxu1 }
  0xff   : > { %v1537_v54 = vpop.f32.mrf.mxu0  ;;  %v1036_v34 = vadd.f32 %v1569_v24, %v1535_v23 }
 0x100   : > { %v1571_v55 = vpop.f32.mrf.mxu1  ;;  %v1538_v35 = vadd.f32 %v1537_v54, %v1536_v52 }
 0x101   : > { %v1539_v56 = vpop.f32.mrf.mxu0  ;;  %v1572_v36 = vadd.f32 %v1571_v55, %v1570_v53 }
 0x102   : > { %v1573_v57 = vpop.f32.mrf.mxu1 }
 0x103   : > { %v1540_v58 = vpop.f32.mrf.mxu0  ;;  %v1041_v50 = vadd.f32 %v1572_v36, %v1538_v35 }
 0x104   : > { %v1574_v59 = vpop.f32.mrf.mxu1  ;;  %v1541_v51 = vadd.f32 %v1540_v58, %v1539_v56 }
 0x10d   : > { %v1592_v60 = vpop.f32.mrf.mxu0 }
 0x10e   : > { %v1626_v61 = vpop.f32.mrf.mxu1 }
 0x10f   : > { %v1593_v62 = vpop.f32.mrf.mxu0 }
 0x110   : > { %v1627_v63 = vpop.f32.mrf.mxu1  ;;  %v1594_v22 = vadd.f32 %v1593_v62, %v1592_v60  ;;  %v1575_v60 = vadd.f32 %v1574_v59, %v1573_v57 }
 0x111   : > { %v1595_v0 = vpop.f32.mrf.mxu0  ;;  %v1628_v38 = vadd.f32 %v1627_v63, %v1626_v61 }
 0x112   : > { %v1629_v1 = vpop.f32.mrf.mxu1  ;;  %v1082_v33 = vadd.f32 %v1594_v22, %v1025_v26 }
 0x113   : > { %v1596_v2 = vpop.f32.mrf.mxu0 }
 0x114   : > { %v1630_v3 = vpop.f32.mrf.mxu1  ;;  %v1597_v27 = vadd.f32 %v1596_v2, %v1595_v0  ;;  %v1139_v48 = vadd.f32 %v1628_v38, %v1082_v33  ;;  %v1276_v38 = vlaneseq }
 0x115   : > { %v1598_v4 = vpop.f32.mrf.mxu0  ;;  %v1631_v47 = vadd.f32 %v1630_v3, %v1629_v1  ;;  %v1044_v1 = vadd.f32 %v1575_v60, %v1541_v51 }
 0x116   : > { %v1632_v5 = vpop.f32.mrf.mxu1  ;;  %v1085_v39 = vadd.f32 %v1597_v27, %v1028_v31 }
 0x117   : > { %v1599_v6 = vpop.f32.mrf.mxu0 }
 0x118   : > { %v1633_v7 = vpop.f32.mrf.mxu1  ;;  %v1600_v28 = vadd.f32 %v1599_v6, %v1598_v4  ;;  %v1142_v55 = vadd.f32 %v1631_v47, %v1085_v39 }
 0x119   : > { %v1601_v8 = vpop.f32.mrf.mxu0  ;;  %v1634_v41 = vadd.f32 %v1633_v7, %v1632_v5 }
 0x11a   : > { %v1635_v9 = vpop.f32.mrf.mxu1  ;;  %v1090_v40 = vadd.f32 %v1600_v28, %v1033_v32 }
 0x11b   : > { %v1602_v10 = vpop.f32.mrf.mxu0 }
 0x11c   : > { %v1636_v11 = vpop.f32.mrf.mxu1  ;;  %v1603_v30 = vadd.f32 %v1602_v10, %v1601_v8  ;;  %v1147_v53 = vadd.f32 %v1634_v41, %v1090_v40 }
 0x11d   : > { %v1604_v12 = vpop.f32.mrf.mxu0  ;;  %v1637_v44 = vadd.f32 %v1636_v11, %v1635_v9 }
 0x11e   : > { %v1638_v13 = vpop.f32.mrf.mxu1  ;;  %v1093_v43 = vadd.f32 %v1603_v30, %v1036_v34 }
 0x11f   : > { %v1605_v14 = vpop.f32.mrf.mxu0 }
 0x120   : > { %v1639_v17 = vpop.f32.mrf.mxu1  ;;  %v1606_v45 = vadd.f32 %v1605_v14, %v1604_v12  ;;  %v1150_v4 = vadd.f32 %v1637_v44, %v1093_v43  ;;  %v1277_v43 = vshrl.u32 %v1276_v38, 7 }
 0x121   : > { %v1607_v25 = vpop.f32.mrf.mxu0  ;;  %v1640_v63 = vadd.f32 %v1639_v17, %v1638_v13 }
 0x122   : > { %v1641_v29 = vpop.f32.mrf.mxu1  ;;  %v1098_v61 = vadd.f32 %v1606_v45, %v1041_v50  ;;  %vm1279_vm1 = vcmp.eq.s32.totalorder %v1277_v43, 1  ;;  %vm1278_vm2 = vcmp.eq.s32.totalorder %v1277_v43, 0 }
 0x123   : > { %v1608_v37 = vpop.f32.mrf.mxu0 }
 0x124   : > { %v1642_v42 = vpop.f32.mrf.mxu1  ;;  %v1609_v0 = vadd.f32 %v1608_v37, %v1607_v25  ;;  %v1155_v13 = vadd.f32 %v1640_v63, %v1098_v61 }
 0x125   : > { %v1643_v11 = vadd.f32 %v1642_v42, %v1641_v29 }
 0x126   : > { %v1101_v10 = vadd.f32 %v1609_v0, %v1044_v1 }
 0x128   : > { %v1158_v23 = vadd.f32 %v1643_v11, %v1101_v10 }
 0x12d   : > { %v1195_v46 = vpop.f32.mrf.mxu0 }
 0x12e   : > { %v1203_v49 = vpop.f32.mrf.mxu1  ;;  %v1196_v52 = vadd.f32 %v1195_v46, %v1139_v48 }
 0x12f   : > { %v1673_v62 = vpop.f32.mrf.mxu0  ;;  %v1204_v5 = vadd.f32 %v1203_v49, %v1147_v53 }
 0x130   : > { %v1677_v54 = vpop.f32.mrf.mxu1  ;;  %v1259_v58 = vmul.f32 %v1196_v52, %v1196_v52 }
 0x131   : > { %v1198_v2 = vpop.f32.mrf.mxu0  ;;  %v1261_v14 = vmul.f32 %v1204_v5, %v1204_v5 }
 0x132   : > { %v1199_v6 = vadd.f32 %v1198_v2, %v1142_v55  ;;  %v1206_v7 = vpop.f32.mrf.mxu1 }
 0x133   : > { %v1207_v56 = vadd.f32 %v1206_v7, %v1150_v4  ;;  %v1674_v57 = vpop.f32.mrf.mxu0 }
 0x134   : > { %v1494_v59 = vpack.c.bf16 %v1199_v6, %v1196_v52  ;;  %v1248_v3 = vadd.f32 %v1199_v6, %v1196_v52  ;;  %v1260_v8 = vmul.f32 %v1199_v6, %v1199_v6  ;;  %v1678_v9 = vpop.f32.mrf.mxu1 }
 0x135   : > { %v1499_v12 = vpack.c.bf16 %v1207_v56, %v1204_v5  ;;  %v1262_v20 = vmul.f32 %v1207_v56, %v1207_v56 }
 0x136   : > { %1495 = vst [vmem:[%s2139_s23] sm:$0xff] %v1494_v59   ;;  %v1265_v15 = vadd.f32 %v1260_v8, %v1259_v58  ;;  %v1249_v16 = vadd.f32 %v1248_v3, %v1204_v5  ;;  %v1211_v17 = vpop.f32.mrf.mxu1 }
 0x137   : > { %1506 = vst [vmem:[%s2139_s23 + $0x8] sm:$0xff] %v1499_v12   ;;  %v1212_v18 = vadd.f32 %v1211_v17, %v1155_v13 }
 0x138   : > { %v1250_v19 = vadd.f32 %v1249_v16, %v1207_v56  ;;  %v1266_v21 = vadd.f32 %v1265_v15, %v1261_v14  ;;  %v1681_v22 = vpop.f32.mrf.mxu1 }
 0x139   : > { %v1263_v26 = vmul.f32 %v1212_v18, %v1212_v18 }
 0x13a   : > { %v1267_v24 = vadd.f32 %v1266_v21, %v1262_v20  ;;  %v1251_v25 = vadd.f32 %v1250_v19, %v1212_v18  ;;  %v1214_v27 = vpop.f32.mrf.mxu1 }
 0x13b   : > { %v1215_v28 = vadd.f32 %v1214_v27, %v1158_v23 }
 0x13c   : > { %v1268_v29 = vadd.f32 %v1267_v24, %v1263_v26  ;;  %v1682_v30 = vpop.f32.mrf.mxu1 }
 0x13d   : > { %v1504_v31 = vpack.c.bf16 %v1215_v28, %v1212_v18  ;;  %v1252_v32 = vadd.f32 %v1251_v25, %v1215_v28  ;;  %v1264_v33 = vmul.f32 %v1215_v28, %v1215_v28 }
 0x13f   : > { %1507 = vst [vmem:[%s2139_s23 + $0x10] sm:$0xff] %v1504_v31   ;;  %v1253_v34 = vrot.slane %v1252_v32, 4  ;;  %v1269_v35 = vadd.f32 %v1268_v29, %v1264_v33 }
 0x141   : > { %v1254_v36 = vadd.f32 %v1253_v34, %v1252_v32  ;;  %v1270_v37 = vrot.slane %v1269_v35, 4 }
 0x143   : > { %v1255_v39 = vrot.slane %v1254_v36, 2  ;;  %v1271_v40 = vadd.f32 %v1270_v37, %v1269_v35 }
 0x145   : > { %v1256_v41 = vadd.f32 %v1255_v39, %v1254_v36  ;;  %v1272_v42 = vrot.slane %v1271_v40, 2 }
 0x147   : > { %v1273_v44 = vadd.f32 %v1272_v42, %v1271_v40  ;;  %v1257_v45 = vrot.slane %v1256_v41, 1 }
 0x149   : > { %v1274_v46 = vrot.slane %v1273_v44, 1  ;;  %v1258_v48 = vadd.f32 %v1257_v45, %v1256_v41 }
 0x14b   : > { %v1275_v47 = vadd.f32 %v1274_v46, %v1273_v44 }
 0x14d   : > { %v1280_v49 = vsel %vm1279_vm1, %v1275_v47, 0.0 }
 0x14e   : > { %v1281_v50 = vsel %vm1278_vm2, %v1258_v48, %v1280_v49 }
 0x14f   : > { %1282 = vst [vmem:[%s187_s26] sm:$0xff] %v1281_v50 }
 0x150 PF: > { %s14_s12 = sadd.s32 1, %s1827_s12  }
 0x151   : > { %p11_p5 = scmp.ge.s32.totalorder %s14_s12, 4  }
 0x153   :  { %13 = sbr.rel (!%p11_p5) target bundleno = 1 (0x1), region = 70 }

// kernel: resnet18_forward.19
= control target key start
LH: loop header
LB: loop body
LE: loop exit
PB: predicated region body
PF: predicated region fallthrough
CT: control target
= control target key end

     0   :  { %s639_s12 = smov 0   ;;  %s703_s0 = inlined_call_operand.vmem [shape: bf16[96,128], index: 0, kind: input, shape index: {}]   ;;  %s704_s1 = inlined_call_operand.vmem [shape: bf16[128,128], index: 1, kind: input, shape index: {}]   ;;  %s705_s2 = inlined_call_operand.vmem [shape: bf16[96,128], index: 2, kind: output, shape index: {0}]   ;;  %s706_s3 = inlined_call_operand.vmem [shape: f32[2,8,128], index: 3, kind: output, shape index: {1}]  }
   0x1 LB: > { %s645_s13 = sadd.s32 4294967295, %s615_s12   ;;  %p487_p0 = scmp.ge.s32.totalorder %s615_s12, 1  ;;  %s615_s12 = sphi %s639_s12, %s14_s12  }
   0x2   : > { %p141_p1 = scmp.lt.s32.totalorder %s615_s12, 3 }
   0x4   : > { %p142_p2 = pnand %p487_p0, %p141_p1 }
   0x5   : > { %s169_s18 = smul.u32 (!%p142_p2), 6, %s645_s13  ;;  %p181_p4 = scmp.lt.s32.totalorder (!%p142_p2), %s645_s13, 1 }
   0x6   : > { %145 = sbr.rel (%p142_p2) target bundleno = 268 (0x10c), region = 28 }
   0x7   : > { %p170_p3 = scmp.lt.s32.totalorder (!%p142_p2), %s169_s18, 11 }
   0xb   : > { %v598_v0 = vld [vmem:[%s704_s1 + $0x38] sm:$0xff]   ;;  %v617_v1 = vmov 0.0   ;;  %v599_v2 = vld [vmem:[%s704_s1 + $0x30] sm:$0xff]   ;;  %vm618_vm0 = vmmov 0   ;;  %v600_v3 = vld [vmem:[%s704_s1 + $0x28] sm:$0xff]   ;;  %s708_s18 = smov (!%p170_p3, %s169_s18), 11  ;;  %v389_v46 = vlaneseq }
   0xc   : > { %544 = vmatprep.subr.bf16.mxu0 %v617_v1  ;;  %572 = vmatprep.subr.bf16.mxu1 %v617_v1  ;;  %s488_s21 = sshll.u32 %s708_s18, 2  ;;  %v601_v4 = vld [vmem:[%s704_s1 + $0x20] sm:$0xff]   ;;  %v602_v5 = vld [vmem:[%s704_s1 + $0x18] sm:$0xff]   ;;  %v603_v6 = vld [vmem:[%s704_s1 + $0x10] sm:$0xff]   ;;  %s710_s13 = smov (!%p181_p4, %s645_s13), 1 }
   0xd   : > { %545 = vmatpush3.bf16.msra.mxu0 %v598_v0  ;;  %580 = vmatpush3.bf16.msra.mxu1 %v598_v0  ;;  %s669_s24 = scalar_lea.vmem %s703_s0, %s488_s21  ;;  %v604_v7 = vld [vmem:[%s704_s1 + $0x8] sm:$0xff]   ;;  %v605_v8 = vld [vmem:[%s704_s1] sm:$0xff]   ;;  %s179_s10 = scalar_lea.vmem %s705_s2, %s488_s21  ;;  %v390_v51 = vshrl.u32 %v389_v46, 7 }
   0xe   : > { %546 = vmatprep.subr.bf16.mxu0 %v617_v1  ;;  %573 = vmatprep.subr.bf16.mxu1 %v617_v1  ;;  %v606_v9 = vld [vmem:[%s669_s24] sm:$0xff]   ;;  %v607_v10 = vld [vmem:[%s669_s24 + $0x8] sm:$0xff]   ;;  %v608_v11 = vld [vmem:[%s669_s24 + $0x10] sm:$0xff]   ;;  %s490_s11 = sshll.u32 %s710_s13, 3 }
   0xf   : > { %560 = vmatprep.mubr.msk.bf16.mxu0 %vm618_vm0, %v617_v1  ;;  %564 = vmatprep.mubr.msk.bf16.mxu1 %vm618_vm0, %v617_v1  ;;  %vm392_vm1 = vcmp.eq.s32.totalorder %v390_v51, 1  ;;  %vm391_vm2 = vcmp.eq.s32.totalorder %v390_v51, 0  ;;  %s184_s16 = scalar_lea.vmem %s706_s3, %s490_s11 }
  0x11   : > { %547 = vmatpush3.bf16.msra.mxu0 %v599_v2  ;;  %581 = vmatpush3.bf16.msra.mxu1 %v599_v2 }
  0x12   : > { %548 = vmatprep.subr.bf16.mxu0 %v617_v1  ;;  %574 = vmatprep.subr.bf16.mxu1 %v617_v1 }
  0x15   : > { %549 = vmatpush3.bf16.msra.mxu0 %v600_v3  ;;  %582 = vmatpush3.bf16.msra.mxu1 %v600_v3 }
  0x16   : > { %550 = vmatprep.subr.bf16.mxu0 %v617_v1  ;;  %575 = vmatprep.subr.bf16.mxu1 %v617_v1 }
  0x19   : > { %551 = vmatpush3.bf16.msra.mxu0 %v601_v4  ;;  %583 = vmatpush3.bf16.msra.mxu1 %v601_v4 }
  0x1a   : > { %552 = vmatprep.subr.bf16.mxu0 %v617_v1  ;;  %576 = vmatprep.subr.bf16.mxu1 %v617_v1 }
  0x1d   : > { %553 = vmatpush3.bf16.msra.mxu0 %v602_v5  ;;  %584 = vmatpush3.bf16.msra.mxu1 %v602_v5 }
  0x1e   : > { %554 = vmatprep.subr.bf16.mxu0 %v617_v1  ;;  %577 = vmatprep.subr.bf16.mxu1 %v617_v1 }
  0x21   : > { %555 = vmatpush3.bf16.msra.mxu0 %v603_v6  ;;  %585 = vmatpush3.bf16.msra.mxu1 %v603_v6 }
  0x22   : > { %556 = vmatprep.subr.bf16.mxu0 %v617_v1  ;;  %578 = vmatprep.subr.bf16.mxu1 %v617_v1 }
  0x25   : > { %557 = vmatpush3.bf16.msra.mxu0 %v604_v7  ;;  %586 = vmatpush3.bf16.msra.mxu1 %v604_v7 }
  0x26   : > { %558 = vmatprep.subr.bf16.mxu0 %v617_v1  ;;  %579 = vmatprep.subr.bf16.mxu1 %v617_v1 }
  0x29   : > { %559 = vmatpush3.bf16.msra.mxu0 %v605_v8  ;;  %587 = vmatpush3.bf16.msra.mxu1 %v605_v8 }
  0x2c   : > { %561 = vmatmul.mubr.bf16.vlgmr.msra.gmra.mxu0 %v606_v9  ;;  %565 = vmatmul.mubr.bf16.vlgmr.msra.gmra.mxu1 %v607_v10 }
  0x2d   : > { %568 = vmatprep.mubr.msk.bf16.mxu1 %vm618_vm0, %v617_v1 }
  0x34   : > { %569 = vmatmul.mubr.bf16.gmra.mxu1 %v608_v11 }
  0xec   : > { %v308_v12 = vpop.f32.mrf.mxu0  ;;  %v316_v13 = vpop.f32.mrf.mxu1 }
  0xed   : > { %v372_v16 = vmul.f32 %v308_v12, %v308_v12  ;;  %v374_v25 = vmul.f32 %v316_v13, %v316_v13 }
  0xee   : > { %v562_v14 = vpop.f32.mrf.mxu0  ;;  %v566_v15 = vpop.f32.mrf.mxu1 }
  0xf0   : > { %v311_v17 = vpop.f32.mrf.mxu0  ;;  %v319_v18 = vpop.f32.mrf.mxu1 }
  0xf1   : > { %v519_v19 = vpack.c.bf16 %v311_v17, %v308_v12  ;;  %v361_v20 = vadd.f32 %v311_v17, %v308_v12  ;;  %v373_v21 = vmul.f32 %v311_v17, %v311_v17  ;;  %v524_v22 = vpack.c.bf16 %v319_v18, %v316_v13 }
  0xf2   : > { %v563_v23 = vpop.f32.mrf.mxu0  ;;  %v567_v24 = vpop.f32.mrf.mxu1  ;;  %v375_v30 = vmul.f32 %v319_v18, %v319_v18 }
  0xf3   : > { %520 = vst [vmem:[%s179_s10] sm:$0xff] %v519_v19   ;;  %v378_v26 = vadd.f32 %v373_v21, %v372_v16  ;;  %531 = vst [vmem:[%s179_s10 + $0x8] sm:$0xff] %v524_v22   ;;  %v362_v27 = vadd.f32 %v361_v20, %v316_v13 }
  0xf4   : > { %v324_v28 = vpop.f32.mrf.mxu1 }
  0xf5   : > { %v363_v29 = vadd.f32 %v362_v27, %v319_v18  ;;  %v379_v31 = vadd.f32 %v378_v26, %v374_v25  ;;  %v376_v35 = vmul.f32 %v324_v28, %v324_v28 }
  0xf6   : > { %v570_v32 = vpop.f32.mrf.mxu1 }
  0xf7   : > { %v380_v33 = vadd.f32 %v379_v31, %v375_v30  ;;  %v364_v34 = vadd.f32 %v363_v29, %v324_v28 }
  0xf8   : > { %v327_v36 = vpop.f32.mrf.mxu1 }
  0xf9   : > { %v381_v37 = vadd.f32 %v380_v33, %v376_v35  ;;  %v529_v38 = vpack.c.bf16 %v327_v36, %v324_v28  ;;  %v365_v39 = vadd.f32 %v364_v34, %v327_v36  ;;  %v377_v40 = vmul.f32 %v327_v36, %v327_v36 }
  0xfa   : > { %v571_v41 = vpop.f32.mrf.mxu1 }
  0xfb   : > { %532 = vst [vmem:[%s179_s10 + $0x10] sm:$0xff] %v529_v38   ;;  %v366_v42 = vrot.slane %v365_v39, 4  ;;  %v382_v43 = vadd.f32 %v381_v37, %v377_v40 }
  0xfd   : > { %v367_v44 = vadd.f32 %v366_v42, %v365_v39  ;;  %v383_v45 = vrot.slane %v382_v43, 4 }
  0xff   : > { %v368_v47 = vrot.slane %v367_v44, 2  ;;  %v384_v48 = vadd.f32 %v383_v45, %v382_v43 }
 0x101   : > { %v369_v49 = vadd.f32 %v368_v47, %v367_v44  ;;  %v385_v50 = vrot.slane %v384_v48, 2 }
 0x103   : > { %v386_v52 = vadd.f32 %v385_v50, %v384_v48  ;;  %v370_v53 = vrot.slane %v369_v49, 1 }
 0x105   : > { %v387_v54 = vrot.slane %v386_v52, 1  ;;  %v371_v56 = vadd.f32 %v370_v53, %v369_v49 }
 0x107   : > { %v388_v55 = vadd.f32 %v387_v54, %v386_v52 }
 0x109   : > { %v393_v57 = vsel %vm392_vm1, %v388_v55, 0.0 }
 0x10a   : > { %v394_v58 = vsel %vm391_vm2, %v371_v56, %v393_v57 }
 0x10b   : > { %395 = vst [vmem:[%s184_s16] sm:$0xff] %v394_v58 }
 0x10c PF: > { %s14_s12 = sadd.s32 1, %s615_s12  }
 0x10d   : > { %p11_p5 = scmp.ge.s32.totalorder %s14_s12, 4  }
 0x10f   :  { %13 = sbr.rel (!%p11_p5) target bundleno = 1 (0x1), region = 70 }

// kernel: resnet18_forward.23
= control target key start
LH: loop header
LB: loop body
LE: loop exit
PB: predicated region body
PF: predicated region fallthrough
CT: control target
= control target key end

     0   :  { %vm23_vm0 = vcmask 1043456   ;;  %s200_s0 = inlined_call_operand.vmem [shape: f32[2,4,256], index: 0, kind: input, shape index: {}]   ;;  %s201_s1 = inlined_call_operand.vmem [shape: f32[2,256], index: 1, kind: input, shape index: {}]   ;;  %s202_s2 = inlined_call_operand.vmem [shape: f32[1,2], index: 2, kind: input, shape index: {}]   ;;  %s203_s3 = inlined_call_operand.hbm [shape: f32[2,2], index: 3, kind: output, shape index: {}]  }
   0x1   :  { %v15_v0 = vld [vmem:[%s200_s0] sm:$0xff]  ;;  %v16_v3 = vld [vmem:[%s200_s0 + $0x8] sm:$0xff] }
   0x2   :  { %v19_v1 = vcombine.high %v15_v0, %v15_v0  ;;  %v24_v2 = vsel %vm23_vm0, %v15_v0, 0.0  ;;  %v134_v4 = vld [vmem:[%s202_s2] ss:$0 sm:$0xff]  ;;  %v20_v6 = vcombine.high %v16_v3, %v16_v3  ;;  %v38_v7 = vsel %vm23_vm0, %v16_v3, 0.0 }
   0x3   :  { %v25_v5 = vrot.slane %v24_v2, 4  ;;  %91 = vbcast.lane.b32.xlu1 %v134_v4, 256 }
   0x4   :  { %8 = vsyncpa [#allocation3], 0  ;;  %v31_v8 = vsel %vm23_vm0, %v19_v1, 0.0  ;;  %v39_v9 = vrot.slane %v38_v7, 4  ;;  %v45_v12 = vsel %vm23_vm0, %v20_v6, 0.0  ;;  %vm73_vm1 = vcmask 1041408  }
   0x5   :  { %v26_v10 = vadd.f32 %v25_v5, %v24_v2  ;;  %v32_v11 = vrot.slane %v31_v8, 4  ;;  %v46_v14 = vrot.slane %v45_v12, 4  ;;  %v133_v25 = vld.sshfl [vmem:[%s201_s1] sm:$0x33 pattern:$0x76325410]  ;;  %v104_v55 = vlaneseq }
   0x6   :  { %v40_v13 = vadd.f32 %v39_v9, %v38_v7  ;;  %v66_v34 = vcombine.high %v133_v25, %v133_v25  ;;  %v163_v49 = vmov 0   ;;  %s164_s1 = smov [#allocation2]   ;;  %vm114_vm2 = vcmask 1041409  }
   0x7   :  { %v27_v15 = vrot.slane %v26_v10, 2  ;;  %v33_v16 = vadd.f32 %v32_v11, %v31_v8  ;;  %v47_v18 = vadd.f32 %v46_v14, %v45_v12  ;;  %137 = vset.pattern.permute.xlu1 %v163_v49  ;;  %138 = vset.pattern.permute.xlu0 %v163_v49  ;;  %v105_v56 = vand.u32 127, %v104_v55  ;;  %s125_s18 = sshll.u32 %s164_s1, 4  ;;  %s126_s18 = int_to_ptr.vmem [resolvable:$true] %s125_s18 }
   0x8   :  { %v41_v17 = vrot.slane %v40_v13, 2  ;;  %v107_v57 = vshrl.u32 %v104_v55, 7  ;;  %vm117_vm3 = vcmask 9216   ;;  %s141_s19 = scalar_lea.vmem %s126_s18, 32  ;;  %p146_p1 = scmp.lt.s32.totalorder %s126_s18, %s126_s18 }
   0x9   :  { %v28_v19 = vadd.f32 %v27_v15, %v26_v10  ;;  %v34_v20 = vrot.slane %v33_v16, 2  ;;  %v48_v22 = vrot.slane %v47_v18, 2  ;;  %p142_p0 = scmp.ne.s32.totalorder %s126_s18, %s141_s19  ;;  %p147_p2 = scmp.lt.s32.totalorder %s141_s19, %s141_s19 }
   0xa   :  { %v42_v21 = vadd.f32 %v41_v17, %v40_v13  ;;  %v108_v58 = vsub.s32 %v105_v56, %v107_v57 }
   0xb   :  { %v29_v23 = vrot.slane %v28_v19, 1  ;;  %v35_v24 = vadd.f32 %v34_v20, %v33_v16  ;;  %v49_v27 = vadd.f32 %v48_v22, %v47_v18  ;;  %p148_p3 = por %p147_p2, %p146_p1 }
   0xc   :  { %v43_v26 = vrot.slane %v42_v21, 1 }
   0xd   :  { %v30_v28 = vadd.f32 %v29_v23, %v28_v19  ;;  %v36_v29 = vrot.slane %v35_v24, 1  ;;  %v50_v31 = vrot.slane %v49_v27, 1  ;;  %p149_p4 = pnand %p148_p3, %p142_p0 }
   0xe   :  { %v44_v30 = vadd.f32 %v43_v26, %v42_v21 }
   0xf   :  { %v37_v32 = vadd.f32 %v36_v29, %v35_v24  ;;  %v53_v33 = vmul.f32 0.25, %v30_v28  ;;  %v51_v35 = vadd.f32 %v50_v31, %v49_v27 }
  0x10   :  { %v55_v36 = vmul.f32 0.25, %v44_v30 }
  0x11   :  { %v54_v37 = vmul.f32 0.25, %v37_v32  ;;  %v69_v38 = vmul.f32 %v133_v25, %v53_v33  ;;  %v56_v39 = vmul.f32 0.25, %v51_v35 }
  0x12   :  { %v71_v40 = vmul.f32 %v133_v25, %v55_v36 }
  0x13   :  { %v70_v41 = vmul.f32 %v66_v34, %v54_v37  ;;  %v74_v42 = vsel %vm73_vm1, %v69_v38, 0.0  ;;  %v72_v43 = vmul.f32 %v66_v34, %v56_v39 }
  0x14   :  { %v79_v45 = vsel %vm73_vm1, %v71_v40, 0.0 }
  0x15   :  { %v75_v44 = vsel %vm73_vm1, %v70_v41, 0.0  ;;  %v80_v47 = vsel %vm73_vm1, %v72_v43, 0.0 }
  0x16   :  { %v76_v46 = vadd.f32 %v75_v44, %v74_v42  ;;  %v81_v48 = vadd.f32 %v80_v47, %v79_v45 }
  0x18   :  { %77 = vadd.xlane.f32.xlu0 %v76_v46 }
  0x1c   :  { %82 = vadd.xlane.f32.xlu0 %v81_v48 }
  0x75   :  { %v92_v50 = vpop.permute.xlu1 %91 }
  0xa1   :  { %v78_v51 = vpop.xlane.xlu0 %77 }
  0xa2   :  { %v94_v52 = vadd.f32 %v92_v50, %v78_v51 }
  0xa4   :  { %99 = vperm.xlu1 %137, %v94_v52  }
  0xa5   :  { %v83_v53 = vpop.xlane.xlu0 %82 }
  0xa6   :  { %v95_v54 = vadd.f32 %v92_v50, %v83_v53 }
  0xa8   :  { %102 = vperm.xlu0 %138, %v95_v54  }
 0x11f   :  { %v100_v59 = vpop.permute.xlu1 %99 }
 0x120   :  { %v109_v61 = vrot.slane %v100_v59, %v108_v58 }
 0x123   :  { %v103_v60 = vpop.permute.xlu0 %102 }
 0x124   :  { %v113_v62 = vrot.slane %v103_v60, %v108_v58 }
 0x126   :  { %v115_v63 = vsel %vm114_vm2, %v113_v62, %v109_v61 }
 0x127   :  { %118 = vst.msk [vmem:[#allocation2] sm:$0x3] %vm117_vm3, %v115_v63 }
 0x128   :  { %152 = shalt.err (!%p149_p4)
}
 0x129   :  { %128 = dma.vmem_to_hbm [thread:$0]  %s126_s18, 32, %s203_s3, [#allocation3]  }
 0x12a   :  { %161 = dma.done.wait [#allocation3], 32  }
 0x12b   :  { %162 = vsyncadd [#allocation3], 4294967264 }
 0x12c   :  { %132 = vsyncpa [#allocation3], 1 }

// kernel: resnet18_forward.22
= control target key start
LH: loop header
LB: loop body
LE: loop exit
PB: predicated region body
PF: predicated region fallthrough
CT: control target
= control target key end

     0   :  { %s5034_s9 = smov 0   ;;  %s5036_s10 = smov 0   ;;  %s6153_s0 = inlined_call_operand.vmem [shape: bf16[8,6400], index: 0, kind: input, shape index: {}]   ;;  %s6154_s1 = inlined_call_operand.vmem [shape: bf16[6400,256], index: 1, kind: input, shape index: {}]   ;;  %s6155_s2 = inlined_call_operand.vmem [shape: f32[8,256], index: 2, kind: output, shape index: {}]  }
   0x1   :  { %s5038_s11 = smov 0   ;;  %s5040_s12 = smov 0  }
   0x2   :  { %s5042_s13 = smov 0   ;;  %s5044_s14 = smov 0  }
   0x3   :  { %s5046_s15 = smov 0  }
   0x4 LB: > { %s21_s16 = sadd.s32 1, %s5006_s13  ;;  %s24_s17 = sadd.s32 1, %s5010_s14  ;;  %s5014_s15 = sphi %s5046_s15, %s12_s15   ;;  %s5010_s14 = sphi %s5044_s14, %s6161_s14   ;;  %s5006_s13 = sphi %s5042_s13, %s6160_s13   ;;  %s5002_s12 = sphi %s5040_s12, %s6159_s12   ;;  %s4998_s11 = sphi %s5038_s11, %s6158_s11   ;;  %s4994_s10 = sphi %s5036_s10, %s6157_s10   ;;  %s4990_s9 = sphi %s5034_s9, %s6156_s9  }
   0x5   : > { %p22_p0 = scmp.ge.s32.totalorder %s21_s16, 2  ;;  %p66_p1 = scmp.ne.s32.totalorder %s4994_s10, %s4990_s9 }
   0x6   : > { %p67_p2 = scmp.eq.s32.totalorder %s5014_s15, 0  ;;  %s59_s21 = sadd.s32 1, %s4994_s10 }
   0x7   : > { %s6163_s16 = smov (%p22_p0, %s21_s16), 0  ;;  %s6165_s17 = smov (!%p22_p0, %s24_s17), %s5010_s14 }
   0x8   : > { %p68_p3 = por %p67_p2, %p66_p1  ;;  %p26_p4 = scmp.ge.s32.totalorder %s6165_s17, 2 }
   0x9   : > { %s54_s18 = ssub.s32 %s5006_s13, %s6163_s16  ;;  %p4145_p6 = scmp.ge.s32.totalorder %s5014_s15, 4 }
   0xa   : > { %s6167_s17 = smov (%p26_p4, %s6165_s17), 0 }
   0xb   : > { %s55_s19 = ssub.s32 %s5010_s14, %s6167_s17  ;;  %118 = sbr.rel (%p4145_p6) target bundleno = 289 (0x121), region = 16 }
   0xc   : > { %s56_s20 = sor.u32 %s55_s19, %s54_s18 }
   0xd   : > { %p57_p5 = scmp.eq.s32.totalorder %s56_s20, 0 }
   0xf   : > { %s5085_s22 = scalar_select %p57_p5, %s4994_s10, %s59_s21  }
  0x10   : > { %130 = sbr.rel (!%p68_p3) target bundleno = 289 (0x121), region = 24  ;;  %s132_s23 = sand.u32 (%p68_p3), 1, %s4994_s10  }
  0x11   : > { %s4380_s24 = smul.u32 (%p68_p3), 800, %s5006_s13 }
  0x12   : > { %s4674_s25 = smul.u32 (%p68_p3), 1600, %s132_s23 }
  0x13   : > { %s137_s26 = sadd.s32 (%p68_p3), %s5010_s14, %s4380_s24 }
  0x14   : > { %s4147_s27 = sshll.u32 (%p68_p3), %s137_s26, 2  ;;  %s5099_s3 = scalar_lea.vmem (%p68_p3), [#allocation3], %s4674_s25 }
  0x15   : > { %s5094_s30 = scalar_lea.vmem %s6154_s1, %s4147_s27 }
  0x16   : > { %v156_v0 = vld [vmem:[%s5094_s30] sm:$0xf]  ;;  %v158_v1 = vld [vmem:[%s5094_s30 + $0x8] sm:$0xf]  ;;  %v160_v2 = vld [vmem:[%s5094_s30 + $0x10] sm:$0xf] }
  0x17   : > { %157 = vst [vmem:[%s5099_s3] sm:$0xf] %v156_v0  ;;  %159 = vst [vmem:[%s5099_s3 + $0x4] sm:$0xf] %v158_v1  ;;  %v162_v3 = vld [vmem:[%s5094_s30 + $0x18] sm:$0xf] }
  0x18   : > { %161 = vst [vmem:[%s5099_s3 + $0x8] sm:$0xf] %v160_v2  ;;  %v164_v4 = vld [vmem:[%s5094_s30 + $0x20] sm:$0xf]  ;;  %v166_v5 = vld [vmem:[%s5094_s30 + $0x28] sm:$0xf] }
  0x19   : > { %163 = vst [vmem:[%s5099_s3 + $0xc] sm:$0xf] %v162_v3  ;;  %165 = vst [vmem:[%s5099_s3 + $0x10] sm:$0xf] %v164_v4  ;;  %v168_v6 = vld [vmem:[%s5094_s30 + $0x30] sm:$0xf] }
  0x1a   : > { %167 = vst [vmem:[%s5099_s3 + $0x14] sm:$0xf] %v166_v5  ;;  %v170_v7 = vld [vmem:[%s5094_s30 + $0x38] sm:$0xf]  ;;  %v172_v8 = vld [vmem:[%s5094_s30 + $0x40] sm:$0xf] }
  0x1b   : > { %169 = vst [vmem:[%s5099_s3 + $0x18] sm:$0xf] %v168_v6  ;;  %171 = vst [vmem:[%s5099_s3 + $0x1c] sm:$0xf] %v170_v7  ;;  %v174_v9 = vld [vmem:[%s5094_s30 + $0x48] sm:$0xf] }
  0x1c   : > { %173 = vst [vmem:[%s5099_s3 + $0x20] sm:$0xf] %v172_v8  ;;  %v176_v10 = vld [vmem:[%s5094_s30 + $0x50] sm:$0xf]  ;;  %v178_v11 = vld [vmem:[%s5094_s30 + $0x58] sm:$0xf] }
  0x1d   : > { %175 = vst [vmem:[%s5099_s3 + $0x24] sm:$0xf] %v174_v9  ;;  %177 = vst [vmem:[%s5099_s3 + $0x28] sm:$0xf] %v176_v10  ;;  %v180_v12 = vld [vmem:[%s5094_s30 + $0x60] sm:$0xf] }
  0x1e   : > { %179 = vst [vmem:[%s5099_s3 + $0x2c] sm:$0xf] %v178_v11  ;;  %v182_v13 = vld [vmem:[%s5094_s30 + $0x68] sm:$0xf]  ;;  %v184_v14 = vld [vmem:[%s5094_s30 + $0x70] sm:$0xf] }
  0x1f   : > { %181 = vst [vmem:[%s5099_s3 + $0x30] sm:$0xf] %v180_v12  ;;  %183 = vst [vmem:[%s5099_s3 + $0x34] sm:$0xf] %v182_v13  ;;  %v186_v15 = vld [vmem:[%s5094_s30 + $0x78] sm:$0xf] }
  0x20   : > { %185 = vst [vmem:[%s5099_s3 + $0x38] sm:$0xf] %v184_v14  ;;  %v188_v16 = vld [vmem:[%s5094_s30 + $0x80] sm:$0xf]  ;;  %v190_v17 = vld [vmem:[%s5094_s30 + $0x88] sm:$0xf] }
  0x21   : > { %187 = vst [vmem:[%s5099_s3 + $0x3c] sm:$0xf] %v186_v15  ;;  %189 = vst [vmem:[%s5099_s3 + $0x40] sm:$0xf] %v188_v16  ;;  %v192_v18 = vld [vmem:[%s5094_s30 + $0x90] sm:$0xf] }
  0x22   : > { %191 = vst [vmem:[%s5099_s3 + $0x44] sm:$0xf] %v190_v17  ;;  %v194_v19 = vld [vmem:[%s5094_s30 + $0x98] sm:$0xf]  ;;  %v196_v20 = vld [vmem:[%s5094_s30 + $0xa0] sm:$0xf] }
  0x23   : > { %193 = vst [vmem:[%s5099_s3 + $0x48] sm:$0xf] %v192_v18  ;;  %195 = vst [vmem:[%s5099_s3 + $0x4c] sm:$0xf] %v194_v19  ;;  %v198_v21 = vld [vmem:[%s5094_s30 + $0xa8] sm:$0xf] }
  0x24   : > { %197 = vst [vmem:[%s5099_s3 + $0x50] sm:$0xf] %v196_v20  ;;  %v200_v22 = vld [vmem:[%s5094_s30 + $0xb0] sm:$0xf]  ;;  %v202_v23 = vld [vmem:[%s5094_s30 + $0xb8] sm:$0xf] }
  0x25   : > { %199 = vst [vmem:[%s5099_s3 + $0x54] sm:$0xf] %v198_v21  ;;  %201 = vst [vmem:[%s5099_s3 + $0x58] sm:$0xf] %v200_v22  ;;  %v204_v24 = vld [vmem:[%s5094_s30 + $0xc0] sm:$0xf] }
  0x26   : > { %203 = vst [vmem:[%s5099_s3 + $0x5c] sm:$0xf] %v202_v23  ;;  %v206_v25 = vld [vmem:[%s5094_s30 + $0xc8] sm:$0xf]  ;;  %v208_v26 = vld [vmem:[%s5094_s30 + $0xd0] sm:$0xf] }
  0x27   : > { %205 = vst [vmem:[%s5099_s3 + $0x60] sm:$0xf] %v204_v24  ;;  %207 = vst [vmem:[%s5099_s3 + $0x64] sm:$0xf] %v206_v25  ;;  %v210_v27 = vld [vmem:[%s5094_s30 + $0xd8] sm:$0xf] }
  0x28   : > { %209 = vst [vmem:[%s5099_s3 + $0x68] sm:$0xf] %v208_v26  ;;  %v212_v28 = vld [vmem:[%s5094_s30 + $0xe0] sm:$0xf]  ;;  %v214_v29 = vld [vmem:[%s5094_s30 + $0xe8] sm:$0xf] }
  0x29   : > { %211 = vst [vmem:[%s5099_s3 + $0x6c] sm:$0xf] %v210_v27  ;;  %213 = vst [vmem:[%s5099_s3 + $0x70] sm:$0xf] %v212_v28  ;;  %v216_v30 = vld [vmem:[%s5094_s30 + $0xf0] sm:$0xf] }
  0x2a   : > { %215 = vst [vmem:[%s5099_s3 + $0x74] sm:$0xf] %v214_v29  ;;  %v218_v31 = vld [vmem:[%s5094_s30 + $0xf8] sm:$0xf]  ;;  %v220_v32 = vld [vmem:[%s5094_s30 + $0x100] sm:$0xf] }
  0x2b   : > { %217 = vst [vmem:[%s5099_s3 + $0x78] sm:$0xf] %v216_v30  ;;  %219 = vst [vmem:[%s5099_s3 + $0x7c] sm:$0xf] %v218_v31  ;;  %v222_v33 = vld [vmem:[%s5094_s30 + $0x108] sm:$0xf] }
  0x2c   : > { %221 = vst [vmem:[%s5099_s3 + $0x80] sm:$0xf] %v220_v32  ;;  %v224_v34 = vld [vmem:[%s5094_s30 + $0x110] sm:$0xf]  ;;  %v226_v35 = vld [vmem:[%s5094_s30 + $0x118] sm:$0xf] }
  0x2d   : > { %223 = vst [vmem:[%s5099_s3 + $0x84] sm:$0xf] %v222_v33  ;;  %225 = vst [vmem:[%s5099_s3 + $0x88] sm:$0xf] %v224_v34  ;;  %v228_v36 = vld [vmem:[%s5094_s30 + $0x120] sm:$0xf] }
  0x2e   : > { %227 = vst [vmem:[%s5099_s3 + $0x8c] sm:$0xf] %v226_v35  ;;  %v230_v37 = vld [vmem:[%s5094_s30 + $0x128] sm:$0xf]  ;;  %v232_v38 = vld [vmem:[%s5094_s30 + $0x130] sm:$0xf] }
  0x2f   : > { %229 = vst [vmem:[%s5099_s3 + $0x90] sm:$0xf] %v228_v36  ;;  %231 = vst [vmem:[%s5099_s3 + $0x94] sm:$0xf] %v230_v37  ;;  %v234_v39 = vld [vmem:[%s5094_s30 + $0x138] sm:$0xf] }
  0x30   : > { %233 = vst [vmem:[%s5099_s3 + $0x98] sm:$0xf] %v232_v38  ;;  %v236_v40 = vld [vmem:[%s5094_s30 + $0x140] sm:$0xf]  ;;  %v238_v41 = vld [vmem:[%s5094_s30 + $0x148] sm:$0xf] }
  0x31   : > { %235 = vst [vmem:[%s5099_s3 + $0x9c] sm:$0xf] %v234_v39  ;;  %237 = vst [vmem:[%s5099_s3 + $0xa0] sm:$0xf] %v236_v40  ;;  %v240_v42 = vld [vmem:[%s5094_s30 + $0x150] sm:$0xf] }
  0x32   : > { %239 = vst [vmem:[%s5099_s3 + $0xa4] sm:$0xf] %v238_v41  ;;  %v242_v43 = vld [vmem:[%s5094_s30 + $0x158] sm:$0xf]  ;;  %v244_v44 = vld [vmem:[%s5094_s30 + $0x160] sm:$0xf] }
  0x33   : > { %241 = vst [vmem:[%s5099_s3 + $0xa8] sm:$0xf] %v240_v42  ;;  %243 = vst [vmem:[%s5099_s3 + $0xac] sm:$0xf] %v242_v43  ;;  %v246_v45 = vld [vmem:[%s5094_s30 + $0x168] sm:$0xf] }
  0x34   : > { %245 = vst [vmem:[%s5099_s3 + $0xb0] sm:$0xf] %v244_v44  ;;  %v248_v46 = vld [vmem:[%s5094_s30 + $0x170] sm:$0xf]  ;;  %v250_v47 = vld [vmem:[%s5094_s30 + $0x178] sm:$0xf] }
  0x35   : > { %247 = vst [vmem:[%s5099_s3 + $0xb4] sm:$0xf] %v246_v45  ;;  %249 = vst [vmem:[%s5099_s3 + $0xb8] sm:$0xf] %v248_v46  ;;  %v252_v48 = vld [vmem:[%s5094_s30 + $0x180] sm:$0xf] }
  0x36   : > { %251 = vst [vmem:[%s5099_s3 + $0xbc] sm:$0xf] %v250_v47  ;;  %v254_v49 = vld [vmem:[%s5094_s30 + $0x188] sm:$0xf]  ;;  %v256_v50 = vld [vmem:[%s5094_s30 + $0x190] sm:$0xf] }
  0x37   : > { %253 = vst [vmem:[%s5099_s3 + $0xc0] sm:$0xf] %v252_v48  ;;  %255 = vst [vmem:[%s5099_s3 + $0xc4] sm:$0xf] %v254_v49  ;;  %v258_v51 = vld [vmem:[%s5094_s30 + $0x198] sm:$0xf] }
  0x38   : > { %257 = vst [vmem:[%s5099_s3 + $0xc8] sm:$0xf] %v256_v50  ;;  %v260_v52 = vld [vmem:[%s5094_s30 + $0x1a0] sm:$0xf]  ;;  %v262_v53 = vld [vmem:[%s5094_s30 + $0x1a8] sm:$0xf] }
  0x39   : > { %259 = vst [vmem:[%s5099_s3 + $0xcc] sm:$0xf] %v258_v51  ;;  %261 = vst [vmem:[%s5099_s3 + $0xd0] sm:$0xf] %v260_v52  ;;  %v264_v54 = vld [vmem:[%s5094_s30 + $0x1b0] sm:$0xf] }
  0x3a   : > { %263 = vst [vmem:[%s5099_s3 + $0xd4] sm:$0xf] %v262_v53  ;;  %v266_v55 = vld [vmem:[%s5094_s30 + $0x1b8] sm:$0xf]  ;;  %v268_v56 = vld [vmem:[%s5094_s30 + $0x1c0] sm:$0xf] }
  0x3b   : > { %265 = vst [vmem:[%s5099_s3 + $0xd8] sm:$0xf] %v264_v54  ;;  %267 = vst [vmem:[%s5099_s3 + $0xdc] sm:$0xf] %v266_v55  ;;  %v270_v57 = vld [vmem:[%s5094_s30 + $0x1c8] sm:$0xf] }
  0x3c   : > { %269 = vst [vmem:[%s5099_s3 + $0xe0] sm:$0xf] %v268_v56  ;;  %v272_v58 = vld [vmem:[%s5094_s30 + $0x1d0] sm:$0xf]  ;;  %v274_v59 = vld [vmem:[%s5094_s30 + $0x1d8] sm:$0xf] }
  0x3d   : > { %271 = vst [vmem:[%s5099_s3 + $0xe4] sm:$0xf] %v270_v57  ;;  %273 = vst [vmem:[%s5099_s3 + $0xe8] sm:$0xf] %v272_v58  ;;  %v276_v60 = vld [vmem:[%s5094_s30 + $0x1e0] sm:$0xf] }
  0x3e   : > { %275 = vst [vmem:[%s5099_s3 + $0xec] sm:$0xf] %v274_v59  ;;  %v278_v61 = vld [vmem:[%s5094_s30 + $0x1e8] sm:$0xf]  ;;  %v280_v62 = vld [vmem:[%s5094_s30 + $0x1f0] sm:$0xf] }
  0x3f   : > { %277 = vst [vmem:[%s5099_s3 + $0xf0] sm:$0xf] %v276_v60  ;;  %279 = vst [vmem:[%s5099_s3 + $0xf4] sm:$0xf] %v278_v61  ;;  %v282_v63 = vld [vmem:[%s5094_s30 + $0x1f8] sm:$0xf] }
  0x40   : > { %281 = vst [vmem:[%s5099_s3 + $0xf8] sm:$0xf] %v280_v62  ;;  %v284_v0 = vld [vmem:[%s5094_s30 + $0x200] sm:$0xf]  ;;  %v286_v1 = vld [vmem:[%s5094_s30 + $0x208] sm:$0xf] }
  0x41   : > { %283 = vst [vmem:[%s5099_s3 + $0xfc] sm:$0xf] %v282_v63  ;;  %285 = vst [vmem:[%s5099_s3 + $0x100] sm:$0xf] %v284_v0  ;;  %v288_v2 = vld [vmem:[%s5094_s30 + $0x210] sm:$0xf] }
  0x42   : > { %287 = vst [vmem:[%s5099_s3 + $0x104] sm:$0xf] %v286_v1  ;;  %v290_v3 = vld [vmem:[%s5094_s30 + $0x218] sm:$0xf]  ;;  %v292_v4 = vld [vmem:[%s5094_s30 + $0x220] sm:$0xf] }
  0x43   : > { %289 = vst [vmem:[%s5099_s3 + $0x108] sm:$0xf] %v288_v2  ;;  %291 = vst [vmem:[%s5099_s3 + $0x10c] sm:$0xf] %v290_v3  ;;  %v294_v5 = vld [vmem:[%s5094_s30 + $0x228] sm:$0xf] }
  0x44   : > { %293 = vst [vmem:[%s5099_s3 + $0x110] sm:$0xf] %v292_v4  ;;  %v296_v6 = vld [vmem:[%s5094_s30 + $0x230] sm:$0xf]  ;;  %v298_v7 = vld [vmem:[%s5094_s30 + $0x238] sm:$0xf] }
  0x45   : > { %295 = vst [vmem:[%s5099_s3 + $0x114] sm:$0xf] %v294_v5  ;;  %297 = vst [vmem:[%s5099_s3 + $0x118] sm:$0xf] %v296_v6  ;;  %v300_v8 = vld [vmem:[%s5094_s30 + $0x240] sm:$0xf] }
  0x46   : > { %299 = vst [vmem:[%s5099_s3 + $0x11c] sm:$0xf] %v298_v7  ;;  %v302_v9 = vld [vmem:[%s5094_s30 + $0x248] sm:$0xf]  ;;  %v304_v10 = vld [vmem:[%s5094_s30 + $0x250] sm:$0xf] }
  0x47   : > { %301 = vst [vmem:[%s5099_s3 + $0x120] sm:$0xf] %v300_v8  ;;  %303 = vst [vmem:[%s5099_s3 + $0x124] sm:$0xf] %v302_v9  ;;  %v306_v11 = vld [vmem:[%s5094_s30 + $0x258] sm:$0xf] }
  0x48   : > { %305 = vst [vmem:[%s5099_s3 + $0x128] sm:$0xf] %v304_v10  ;;  %v308_v12 = vld [vmem:[%s5094_s30 + $0x260] sm:$0xf]  ;;  %v310_v13 = vld [vmem:[%s5094_s30 + $0x268] sm:$0xf] }
  0x49   : > { %307 = vst [vmem:[%s5099_s3 + $0x12c] sm:$0xf] %v306_v11  ;;  %309 = vst [vmem:[%s5099_s3 + $0x130] sm:$0xf] %v308_v12  ;;  %v312_v14 = vld [vmem:[%s5094_s30 + $0x270] sm:$0xf] }
  0x4a   : > { %311 = vst [vmem:[%s5099_s3 + $0x134] sm:$0xf] %v310_v13  ;;  %v314_v15 = vld [vmem:[%s5094_s30 + $0x278] sm:$0xf]  ;;  %v316_v16 = vld [vmem:[%s5094_s30 + $0x280] sm:$0xf] }
  0x4b   : > { %313 = vst [vmem:[%s5099_s3 + $0x138] sm:$0xf] %v312_v14  ;;  %315 = vst [vmem:[%s5099_s3 + $0x13c] sm:$0xf] %v314_v15  ;;  %v318_v17 = vld [vmem:[%s5094_s30 + $0x288] sm:$0xf] }
  0x4c   : > { %317 = vst [vmem:[%s5099_s3 + $0x140] sm:$0xf] %v316_v16  ;;  %v320_v18 = vld [vmem:[%s5094_s30 + $0x290] sm:$0xf]  ;;  %v322_v19 = vld [vmem:[%s5094_s30 + $0x298] sm:$0xf] }
  0x4d   : > { %319 = vst [vmem:[%s5099_s3 + $0x144] sm:$0xf] %v318_v17  ;;  %321 = vst [vmem:[%s5099_s3 + $0x148] sm:$0xf] %v320_v18  ;;  %v324_v20 = vld [vmem:[%s5094_s30 + $0x2a0] sm:$0xf] }
  0x4e   : > { %323 = vst [vmem:[%s5099_s3 + $0x14c] sm:$0xf] %v322_v19  ;;  %v326_v21 = vld [vmem:[%s5094_s30 + $0x2a8] sm:$0xf]  ;;  %v328_v22 = vld [vmem:[%s5094_s30 + $0x2b0] sm:$0xf] }
  0x4f   : > { %325 = vst [vmem:[%s5099_s3 + $0x150] sm:$0xf] %v324_v20  ;;  %327 = vst [vmem:[%s5099_s3 + $0x154] sm:$0xf] %v326_v21  ;;  %v330_v23 = vld [vmem:[%s5094_s30 + $0x2b8] sm:$0xf] }
  0x50   : > { %329 = vst [vmem:[%s5099_s3 + $0x158] sm:$0xf] %v328_v22  ;;  %v332_v24 = vld [vmem:[%s5094_s30 + $0x2c0] sm:$0xf]  ;;  %v334_v25 = vld [vmem:[%s5094_s30 + $0x2c8] sm:$0xf] }
  0x51   : > { %331 = vst [vmem:[%s5099_s3 + $0x15c] sm:$0xf] %v330_v23  ;;  %333 = vst [vmem:[%s5099_s3 + $0x160] sm:$0xf] %v332_v24  ;;  %v336_v26 = vld [vmem:[%s5094_s30 + $0x2d0] sm:$0xf] }
  0x52   : > { %335 = vst [vmem:[%s5099_s3 + $0x164] sm:$0xf] %v334_v25  ;;  %v338_v27 = vld [vmem:[%s5094_s30 + $0x2d8] sm:$0xf]  ;;  %v340_v28 = vld [vmem:[%s5094_s30 + $0x2e0] sm:$0xf] }
  0x53   : > { %337 = vst [vmem:[%s5099_s3 + $0x168] sm:$0xf] %v336_v26  ;;  %339 = vst [vmem:[%s5099_s3 + $0x16c] sm:$0xf] %v338_v27  ;;  %v342_v29 = vld [vmem:[%s5094_s30 + $0x2e8] sm:$0xf] }
  0x54   : > { %341 = vst [vmem:[%s5099_s3 + $0x170] sm:$0xf] %v340_v28  ;;  %v344_v30 = vld [vmem:[%s5094_s30 + $0x2f0] sm:$0xf]  ;;  %v346_v31 = vld [vmem:[%s5094_s30 + $0x2f8] sm:$0xf] }
  0x55   : > { %343 = vst [vmem:[%s5099_s3 + $0x174] sm:$0xf] %v342_v29  ;;  %345 = vst [vmem:[%s5099_s3 + $0x178] sm:$0xf] %v344_v30  ;;  %v348_v32 = vld [vmem:[%s5094_s30 + $0x300] sm:$0xf] }
  0x56   : > { %347 = vst [vmem:[%s5099_s3 + $0x17c] sm:$0xf] %v346_v31  ;;  %v350_v33 = vld [vmem:[%s5094_s30 + $0x308] sm:$0xf]  ;;  %v352_v34 = vld [vmem:[%s5094_s30 + $0x310] sm:$0xf] }
  0x57   : > { %349 = vst [vmem:[%s5099_s3 + $0x180] sm:$0xf] %v348_v32  ;;  %351 = vst [vmem:[%s5099_s3 + $0x184] sm:$0xf] %v350_v33  ;;  %v354_v35 = vld [vmem:[%s5094_s30 + $0x318] sm:$0xf] }
  0x58   : > { %353 = vst [vmem:[%s5099_s3 + $0x188] sm:$0xf] %v352_v34  ;;  %v356_v36 = vld [vmem:[%s5094_s30 + $0x320] sm:$0xf]  ;;  %v358_v37 = vld [vmem:[%s5094_s30 + $0x328] sm:$0xf] }
  0x59   : > { %355 = vst [vmem:[%s5099_s3 + $0x18c] sm:$0xf] %v354_v35  ;;  %357 = vst [vmem:[%s5099_s3 + $0x190] sm:$0xf] %v356_v36  ;;  %v360_v38 = vld [vmem:[%s5094_s30 + $0x330] sm:$0xf] }
  0x5a   : > { %359 = vst [vmem:[%s5099_s3 + $0x194] sm:$0xf] %v358_v37  ;;  %v362_v39 = vld [vmem:[%s5094_s30 + $0x338] sm:$0xf]  ;;  %v364_v40 = vld [vmem:[%s5094_s30 + $0x340] sm:$0xf] }
  0x5b   : > { %361 = vst [vmem:[%s5099_s3 + $0x198] sm:$0xf] %v360_v38  ;;  %363 = vst [vmem:[%s5099_s3 + $0x19c] sm:$0xf] %v362_v39  ;;  %v366_v41 = vld [vmem:[%s5094_s30 + $0x348] sm:$0xf] }
  0x5c   : > { %365 = vst [vmem:[%s5099_s3 + $0x1a0] sm:$0xf] %v364_v40  ;;  %v368_v42 = vld [vmem:[%s5094_s30 + $0x350] sm:$0xf]  ;;  %v370_v43 = vld [vmem:[%s5094_s30 + $0x358] sm:$0xf] }
  0x5d   : > { %367 = vst [vmem:[%s5099_s3 + $0x1a4] sm:$0xf] %v366_v41  ;;  %369 = vst [vmem:[%s5099_s3 + $0x1a8] sm:$0xf] %v368_v42  ;;  %v372_v44 = vld [vmem:[%s5094_s30 + $0x360] sm:$0xf] }
  0x5e   : > { %371 = vst [vmem:[%s5099_s3 + $0x1ac] sm:$0xf] %v370_v43  ;;  %v374_v45 = vld [vmem:[%s5094_s30 + $0x368] sm:$0xf]  ;;  %v376_v46 = vld [vmem:[%s5094_s30 + $0x370] sm:$0xf] }
  0x5f   : > { %373 = vst [vmem:[%s5099_s3 + $0x1b0] sm:$0xf] %v372_v44  ;;  %375 = vst [vmem:[%s5099_s3 + $0x1b4] sm:$0xf] %v374_v45  ;;  %v378_v47 = vld [vmem:[%s5094_s30 + $0x378] sm:$0xf] }
  0x60   : > { %377 = vst [vmem:[%s5099_s3 + $0x1b8] sm:$0xf] %v376_v46  ;;  %v380_v48 = vld [vmem:[%s5094_s30 + $0x380] sm:$0xf]  ;;  %v382_v49 = vld [vmem:[%s5094_s30 + $0x388] sm:$0xf] }
  0x61   : > { %379 = vst [vmem:[%s5099_s3 + $0x1bc] sm:$0xf] %v378_v47  ;;  %381 = vst [vmem:[%s5099_s3 + $0x1c0] sm:$0xf] %v380_v48  ;;  %v384_v50 = vld [vmem:[%s5094_s30 + $0x390] sm:$0xf] }
  0x62   : > { %383 = vst [vmem:[%s5099_s3 + $0x1c4] sm:$0xf] %v382_v49  ;;  %v386_v51 = vld [vmem:[%s5094_s30 + $0x398] sm:$0xf]  ;;  %v388_v52 = vld [vmem:[%s5094_s30 + $0x3a0] sm:$0xf] }
  0x63   : > { %385 = vst [vmem:[%s5099_s3 + $0x1c8] sm:$0xf] %v384_v50  ;;  %387 = vst [vmem:[%s5099_s3 + $0x1cc] sm:$0xf] %v386_v51  ;;  %v390_v53 = vld [vmem:[%s5094_s30 + $0x3a8] sm:$0xf] }
  0x64   : > { %389 = vst [vmem:[%s5099_s3 + $0x1d0] sm:$0xf] %v388_v52  ;;  %v392_v54 = vld [vmem:[%s5094_s30 + $0x3b0] sm:$0xf]  ;;  %v394_v55 = vld [vmem:[%s5094_s30 + $0x3b8] sm:$0xf] }
  0x65   : > { %391 = vst [vmem:[%s5099_s3 + $0x1d4] sm:$0xf] %v390_v53  ;;  %393 = vst [vmem:[%s5099_s3 + $0x1d8] sm:$0xf] %v392_v54  ;;  %v396_v56 = vld [vmem:[%s5094_s30 + $0x3c0] sm:$0xf] }
  0x66   : > { %395 = vst [vmem:[%s5099_s3 + $0x1dc] sm:$0xf] %v394_v55  ;;  %v398_v57 = vld [vmem:[%s5094_s30 + $0x3c8] sm:$0xf]  ;;  %v400_v58 = vld [vmem:[%s5094_s30 + $0x3d0] sm:$0xf] }
  0x67   : > { %397 = vst [vmem:[%s5099_s3 + $0x1e0] sm:$0xf] %v396_v56  ;;  %399 = vst [vmem:[%s5099_s3 + $0x1e4] sm:$0xf] %v398_v57  ;;  %v402_v59 = vld [vmem:[%s5094_s30 + $0x3d8] sm:$0xf] }
  0x68   : > { %401 = vst [vmem:[%s5099_s3 + $0x1e8] sm:$0xf] %v400_v58  ;;  %v404_v60 = vld [vmem:[%s5094_s30 + $0x3e0] sm:$0xf]  ;;  %v406_v61 = vld [vmem:[%s5094_s30 + $0x3e8] sm:$0xf] }
  0x69   : > { %403 = vst [vmem:[%s5099_s3 + $0x1ec] sm:$0xf] %v402_v59  ;;  %405 = vst [vmem:[%s5099_s3 + $0x1f0] sm:$0xf] %v404_v60  ;;  %v408_v62 = vld [vmem:[%s5094_s30 + $0x3f0] sm:$0xf] }
  0x6a   : > { %407 = vst [vmem:[%s5099_s3 + $0x1f4] sm:$0xf] %v406_v61  ;;  %v410_v63 = vld [vmem:[%s5094_s30 + $0x3f8] sm:$0xf]  ;;  %v412_v0 = vld [vmem:[%s5094_s30 + $0x400] sm:$0xf] }
  0x6b   : > { %409 = vst [vmem:[%s5099_s3 + $0x1f8] sm:$0xf] %v408_v62  ;;  %411 = vst [vmem:[%s5099_s3 + $0x1fc] sm:$0xf] %v410_v63  ;;  %v414_v1 = vld [vmem:[%s5094_s30 + $0x408] sm:$0xf] }
  0x6c   : > { %413 = vst [vmem:[%s5099_s3 + $0x200] sm:$0xf] %v412_v0  ;;  %v416_v2 = vld [vmem:[%s5094_s30 + $0x410] sm:$0xf]  ;;  %v418_v3 = vld [vmem:[%s5094_s30 + $0x418] sm:$0xf] }
  0x6d   : > { %415 = vst [vmem:[%s5099_s3 + $0x204] sm:$0xf] %v414_v1  ;;  %417 = vst [vmem:[%s5099_s3 + $0x208] sm:$0xf] %v416_v2  ;;  %v420_v4 = vld [vmem:[%s5094_s30 + $0x420] sm:$0xf] }
  0x6e   : > { %419 = vst [vmem:[%s5099_s3 + $0x20c] sm:$0xf] %v418_v3  ;;  %v422_v5 = vld [vmem:[%s5094_s30 + $0x428] sm:$0xf]  ;;  %v424_v6 = vld [vmem:[%s5094_s30 + $0x430] sm:$0xf] }
  0x6f   : > { %421 = vst [vmem:[%s5099_s3 + $0x210] sm:$0xf] %v420_v4  ;;  %423 = vst [vmem:[%s5099_s3 + $0x214] sm:$0xf] %v422_v5  ;;  %v426_v7 = vld [vmem:[%s5094_s30 + $0x438] sm:$0xf] }
  0x70   : > { %425 = vst [vmem:[%s5099_s3 + $0x218] sm:$0xf] %v424_v6  ;;  %v428_v8 = vld [vmem:[%s5094_s30 + $0x440] sm:$0xf]  ;;  %v430_v9 = vld [vmem:[%s5094_s30 + $0x448] sm:$0xf] }
  0x71   : > { %427 = vst [vmem:[%s5099_s3 + $0x21c] sm:$0xf] %v426_v7  ;;  %429 = vst [vmem:[%s5099_s3 + $0x220] sm:$0xf] %v428_v8  ;;  %v432_v10 = vld [vmem:[%s5094_s30 + $0x450] sm:$0xf] }
  0x72   : > { %431 = vst [vmem:[%s5099_s3 + $0x224] sm:$0xf] %v430_v9  ;;  %v434_v11 = vld [vmem:[%s5094_s30 + $0x458] sm:$0xf]  ;;  %v436_v12 = vld [vmem:[%s5094_s30 + $0x460] sm:$0xf] }
  0x73   : > { %433 = vst [vmem:[%s5099_s3 + $0x228] sm:$0xf] %v432_v10  ;;  %435 = vst [vmem:[%s5099_s3 + $0x22c] sm:$0xf] %v434_v11  ;;  %v438_v13 = vld [vmem:[%s5094_s30 + $0x468] sm:$0xf] }
  0x74   : > { %437 = vst [vmem:[%s5099_s3 + $0x230] sm:$0xf] %v436_v12  ;;  %v440_v14 = vld [vmem:[%s5094_s30 + $0x470] sm:$0xf]  ;;  %v442_v15 = vld [vmem:[%s5094_s30 + $0x478] sm:$0xf] }
  0x75   : > { %439 = vst [vmem:[%s5099_s3 + $0x234] sm:$0xf] %v438_v13  ;;  %441 = vst [vmem:[%s5099_s3 + $0x238] sm:$0xf] %v440_v14  ;;  %v444_v16 = vld [vmem:[%s5094_s30 + $0x480] sm:$0xf] }
  0x76   : > { %443 = vst [vmem:[%s5099_s3 + $0x23c] sm:$0xf] %v442_v15  ;;  %v446_v17 = vld [vmem:[%s5094_s30 + $0x488] sm:$0xf]  ;;  %v448_v18 = vld [vmem:[%s5094_s30 + $0x490] sm:$0xf] }
  0x77   : > { %445 = vst [vmem:[%s5099_s3 + $0x240] sm:$0xf] %v444_v16  ;;  %447 = vst [vmem:[%s5099_s3 + $0x244] sm:$0xf] %v446_v17  ;;  %v450_v19 = vld [vmem:[%s5094_s30 + $0x498] sm:$0xf] }
  0x78   : > { %449 = vst [vmem:[%s5099_s3 + $0x248] sm:$0xf] %v448_v18  ;;  %v452_v20 = vld [vmem:[%s5094_s30 + $0x4a0] sm:$0xf]  ;;  %v454_v21 = vld [vmem:[%s5094_s30 + $0x4a8] sm:$0xf] }
  0x79   : > { %451 = vst [vmem:[%s5099_s3 + $0x24c] sm:$0xf] %v450_v19  ;;  %453 = vst [vmem:[%s5099_s3 + $0x250] sm:$0xf] %v452_v20  ;;  %v456_v22 = vld [vmem:[%s5094_s30 + $0x4b0] sm:$0xf] }
  0x7a   : > { %455 = vst [vmem:[%s5099_s3 + $0x254] sm:$0xf] %v454_v21  ;;  %v458_v23 = vld [vmem:[%s5094_s30 + $0x4b8] sm:$0xf]  ;;  %v460_v24 = vld [vmem:[%s5094_s30 + $0x4c0] sm:$0xf] }
  0x7b   : > { %457 = vst [vmem:[%s5099_s3 + $0x258] sm:$0xf] %v456_v22  ;;  %459 = vst [vmem:[%s5099_s3 + $0x25c] sm:$0xf] %v458_v23  ;;  %v462_v25 = vld [vmem:[%s5094_s30 + $0x4c8] sm:$0xf] }
  0x7c   : > { %461 = vst [vmem:[%s5099_s3 + $0x260] sm:$0xf] %v460_v24  ;;  %v464_v26 = vld [vmem:[%s5094_s30 + $0x4d0] sm:$0xf]  ;;  %v466_v27 = vld [vmem:[%s5094_s30 + $0x4d8] sm:$0xf] }
  0x7d   : > { %463 = vst [vmem:[%s5099_s3 + $0x264] sm:$0xf] %v462_v25  ;;  %465 = vst [vmem:[%s5099_s3 + $0x268] sm:$0xf] %v464_v26  ;;  %v468_v28 = vld [vmem:[%s5094_s30 + $0x4e0] sm:$0xf] }
  0x7e   : > { %467 = vst [vmem:[%s5099_s3 + $0x26c] sm:$0xf] %v466_v27  ;;  %v470_v29 = vld [vmem:[%s5094_s30 + $0x4e8] sm:$0xf]  ;;  %v472_v30 = vld [vmem:[%s5094_s30 + $0x4f0] sm:$0xf] }
  0x7f   : > { %469 = vst [vmem:[%s5099_s3 + $0x270] sm:$0xf] %v468_v28  ;;  %471 = vst [vmem:[%s5099_s3 + $0x274] sm:$0xf] %v470_v29  ;;  %v474_v31 = vld [vmem:[%s5094_s30 + $0x4f8] sm:$0xf] }
  0x80   : > { %473 = vst [vmem:[%s5099_s3 + $0x278] sm:$0xf] %v472_v30  ;;  %v476_v32 = vld [vmem:[%s5094_s30 + $0x500] sm:$0xf]  ;;  %v478_v33 = vld [vmem:[%s5094_s30 + $0x508] sm:$0xf] }
  0x81   : > { %475 = vst [vmem:[%s5099_s3 + $0x27c] sm:$0xf] %v474_v31  ;;  %477 = vst [vmem:[%s5099_s3 + $0x280] sm:$0xf] %v476_v32  ;;  %v480_v34 = vld [vmem:[%s5094_s30 + $0x510] sm:$0xf] }
  0x82   : > { %479 = vst [vmem:[%s5099_s3 + $0x284] sm:$0xf] %v478_v33  ;;  %v482_v35 = vld [vmem:[%s5094_s30 + $0x518] sm:$0xf]  ;;  %v484_v36 = vld [vmem:[%s5094_s30 + $0x520] sm:$0xf] }
  0x83   : > { %481 = vst [vmem:[%s5099_s3 + $0x288] sm:$0xf] %v480_v34  ;;  %483 = vst [vmem:[%s5099_s3 + $0x28c] sm:$0xf] %v482_v35  ;;  %v486_v37 = vld [vmem:[%s5094_s30 + $0x528] sm:$0xf] }
  0x84   : > { %485 = vst [vmem:[%s5099_s3 + $0x290] sm:$0xf] %v484_v36  ;;  %v488_v38 = vld [vmem:[%s5094_s30 + $0x530] sm:$0xf]  ;;  %v490_v39 = vld [vmem:[%s5094_s30 + $0x538] sm:$0xf] }
  0x85   : > { %487 = vst [vmem:[%s5099_s3 + $0x294] sm:$0xf] %v486_v37  ;;  %489 = vst [vmem:[%s5099_s3 + $0x298] sm:$0xf] %v488_v38  ;;  %v492_v40 = vld [vmem:[%s5094_s30 + $0x540] sm:$0xf] }
  0x86   : > { %491 = vst [vmem:[%s5099_s3 + $0x29c] sm:$0xf] %v490_v39  ;;  %v494_v41 = vld [vmem:[%s5094_s30 + $0x548] sm:$0xf]  ;;  %v496_v42 = vld [vmem:[%s5094_s30 + $0x550] sm:$0xf] }
  0x87   : > { %493 = vst [vmem:[%s5099_s3 + $0x2a0] sm:$0xf] %v492_v40  ;;  %495 = vst [vmem:[%s5099_s3 + $0x2a4] sm:$0xf] %v494_v41  ;;  %v498_v43 = vld [vmem:[%s5094_s30 + $0x558] sm:$0xf] }
  0x88   : > { %497 = vst [vmem:[%s5099_s3 + $0x2a8] sm:$0xf] %v496_v42  ;;  %v500_v44 = vld [vmem:[%s5094_s30 + $0x560] sm:$0xf]  ;;  %v502_v45 = vld [vmem:[%s5094_s30 + $0x568] sm:$0xf] }
  0x89   : > { %499 = vst [vmem:[%s5099_s3 + $0x2ac] sm:$0xf] %v498_v43  ;;  %501 = vst [vmem:[%s5099_s3 + $0x2b0] sm:$0xf] %v500_v44  ;;  %v504_v46 = vld [vmem:[%s5094_s30 + $0x570] sm:$0xf] }
  0x8a   : > { %503 = vst [vmem:[%s5099_s3 + $0x2b4] sm:$0xf] %v502_v45  ;;  %v506_v47 = vld [vmem:[%s5094_s30 + $0x578] sm:$0xf]  ;;  %v508_v48 = vld [vmem:[%s5094_s30 + $0x580] sm:$0xf] }
  0x8b   : > { %505 = vst [vmem:[%s5099_s3 + $0x2b8] sm:$0xf] %v504_v46  ;;  %507 = vst [vmem:[%s5099_s3 + $0x2bc] sm:$0xf] %v506_v47  ;;  %v510_v49 = vld [vmem:[%s5094_s30 + $0x588] sm:$0xf] }
  0x8c   : > { %509 = vst [vmem:[%s5099_s3 + $0x2c0] sm:$0xf] %v508_v48  ;;  %v512_v50 = vld [vmem:[%s5094_s30 + $0x590] sm:$0xf]  ;;  %v514_v51 = vld [vmem:[%s5094_s30 + $0x598] sm:$0xf] }
  0x8d   : > { %511 = vst [vmem:[%s5099_s3 + $0x2c4] sm:$0xf] %v510_v49  ;;  %513 = vst [vmem:[%s5099_s3 + $0x2c8] sm:$0xf] %v512_v50  ;;  %v516_v52 = vld [vmem:[%s5094_s30 + $0x5a0] sm:$0xf] }
  0x8e   : > { %515 = vst [vmem:[%s5099_s3 + $0x2cc] sm:$0xf] %v514_v51  ;;  %v518_v53 = vld [vmem:[%s5094_s30 + $0x5a8] sm:$0xf]  ;;  %v520_v54 = vld [vmem:[%s5094_s30 + $0x5b0] sm:$0xf] }
  0x8f   : > { %517 = vst [vmem:[%s5099_s3 + $0x2d0] sm:$0xf] %v516_v52  ;;  %519 = vst [vmem:[%s5099_s3 + $0x2d4] sm:$0xf] %v518_v53  ;;  %v522_v55 = vld [vmem:[%s5094_s30 + $0x5b8] sm:$0xf] }
  0x90   : > { %521 = vst [vmem:[%s5099_s3 + $0x2d8] sm:$0xf] %v520_v54  ;;  %v524_v56 = vld [vmem:[%s5094_s30 + $0x5c0] sm:$0xf]  ;;  %v526_v57 = vld [vmem:[%s5094_s30 + $0x5c8] sm:$0xf] }
  0x91   : > { %523 = vst [vmem:[%s5099_s3 + $0x2dc] sm:$0xf] %v522_v55  ;;  %525 = vst [vmem:[%s5099_s3 + $0x2e0] sm:$0xf] %v524_v56  ;;  %v528_v58 = vld [vmem:[%s5094_s30 + $0x5d0] sm:$0xf] }
  0x92   : > { %527 = vst [vmem:[%s5099_s3 + $0x2e4] sm:$0xf] %v526_v57  ;;  %v530_v59 = vld [vmem:[%s5094_s30 + $0x5d8] sm:$0xf]  ;;  %v532_v60 = vld [vmem:[%s5094_s30 + $0x5e0] sm:$0xf] }
  0x93   : > { %529 = vst [vmem:[%s5099_s3 + $0x2e8] sm:$0xf] %v528_v58  ;;  %531 = vst [vmem:[%s5099_s3 + $0x2ec] sm:$0xf] %v530_v59  ;;  %v534_v61 = vld [vmem:[%s5094_s30 + $0x5e8] sm:$0xf] }
  0x94   : > { %533 = vst [vmem:[%s5099_s3 + $0x2f0] sm:$0xf] %v532_v60  ;;  %v536_v62 = vld [vmem:[%s5094_s30 + $0x5f0] sm:$0xf]  ;;  %v538_v63 = vld [vmem:[%s5094_s30 + $0x5f8] sm:$0xf] }
  0x95   : > { %535 = vst [vmem:[%s5099_s3 + $0x2f4] sm:$0xf] %v534_v61  ;;  %537 = vst [vmem:[%s5099_s3 + $0x2f8] sm:$0xf] %v536_v62  ;;  %v540_v0 = vld [vmem:[%s5094_s30 + $0x600] sm:$0xf] }
  0x96   : > { %539 = vst [vmem:[%s5099_s3 + $0x2fc] sm:$0xf] %v538_v63  ;;  %v542_v1 = vld [vmem:[%s5094_s30 + $0x608] sm:$0xf]  ;;  %v544_v2 = vld [vmem:[%s5094_s30 + $0x610] sm:$0xf] }
  0x97   : > { %541 = vst [vmem:[%s5099_s3 + $0x300] sm:$0xf] %v540_v0  ;;  %543 = vst [vmem:[%s5099_s3 + $0x304] sm:$0xf] %v542_v1  ;;  %v546_v3 = vld [vmem:[%s5094_s30 + $0x618] sm:$0xf] }
  0x98   : > { %545 = vst [vmem:[%s5099_s3 + $0x308] sm:$0xf] %v544_v2  ;;  %v548_v4 = vld [vmem:[%s5094_s30 + $0x620] sm:$0xf]  ;;  %v550_v5 = vld [vmem:[%s5094_s30 + $0x628] sm:$0xf] }
  0x99   : > { %547 = vst [vmem:[%s5099_s3 + $0x30c] sm:$0xf] %v546_v3  ;;  %549 = vst [vmem:[%s5099_s3 + $0x310] sm:$0xf] %v548_v4  ;;  %v552_v6 = vld [vmem:[%s5094_s30 + $0x630] sm:$0xf] }
  0x9a   : > { %551 = vst [vmem:[%s5099_s3 + $0x314] sm:$0xf] %v550_v5  ;;  %v554_v7 = vld [vmem:[%s5094_s30 + $0x638] sm:$0xf]  ;;  %v556_v8 = vld [vmem:[%s5094_s30 + $0x640] sm:$0xf] }
  0x9b   : > { %553 = vst [vmem:[%s5099_s3 + $0x318] sm:$0xf] %v552_v6  ;;  %555 = vst [vmem:[%s5099_s3 + $0x31c] sm:$0xf] %v554_v7  ;;  %v558_v9 = vld [vmem:[%s5094_s30 + $0x648] sm:$0xf] }
  0x9c   : > { %557 = vst [vmem:[%s5099_s3 + $0x320] sm:$0xf] %v556_v8  ;;  %v560_v10 = vld [vmem:[%s5094_s30 + $0x650] sm:$0xf]  ;;  %v562_v11 = vld [vmem:[%s5094_s30 + $0x658] sm:$0xf] }
  0x9d   : > { %559 = vst [vmem:[%s5099_s3 + $0x324] sm:$0xf] %v558_v9  ;;  %561 = vst [vmem:[%s5099_s3 + $0x328] sm:$0xf] %v560_v10  ;;  %v564_v12 = vld [vmem:[%s5094_s30 + $0x660] sm:$0xf] }
  0x9e   : > { %563 = vst [vmem:[%s5099_s3 + $0x32c] sm:$0xf] %v562_v11  ;;  %v566_v13 = vld [vmem:[%s5094_s30 + $0x668] sm:$0xf]  ;;  %v568_v14 = vld [vmem:[%s5094_s30 + $0x670] sm:$0xf] }
  0x9f   : > { %565 = vst [vmem:[%s5099_s3 + $0x330] sm:$0xf] %v564_v12  ;;  %567 = vst [vmem:[%s5099_s3 + $0x334] sm:$0xf] %v566_v13  ;;  %v570_v15 = vld [vmem:[%s5094_s30 + $0x678] sm:$0xf] }
  0xa0   : > { %569 = vst [vmem:[%s5099_s3 + $0x338] sm:$0xf] %v568_v14  ;;  %v572_v16 = vld [vmem:[%s5094_s30 + $0x680] sm:$0xf]  ;;  %v574_v17 = vld [vmem:[%s5094_s30 + $0x688] sm:$0xf] }
  0xa1   : > { %571 = vst [vmem:[%s5099_s3 + $0x33c] sm:$0xf] %v570_v15  ;;  %573 = vst [vmem:[%s5099_s3 + $0x340] sm:$0xf] %v572_v16  ;;  %v576_v18 = vld [vmem:[%s5094_s30 + $0x690] sm:$0xf] }
  0xa2   : > { %575 = vst [vmem:[%s5099_s3 + $0x344] sm:$0xf] %v574_v17  ;;  %v578_v19 = vld [vmem:[%s5094_s30 + $0x698] sm:$0xf]  ;;  %v580_v20 = vld [vmem:[%s5094_s30 + $0x6a0] sm:$0xf] }
  0xa3   : > { %577 = vst [vmem:[%s5099_s3 + $0x348] sm:$0xf] %v576_v18  ;;  %579 = vst [vmem:[%s5099_s3 + $0x34c] sm:$0xf] %v578_v19  ;;  %v582_v21 = vld [vmem:[%s5094_s30 + $0x6a8] sm:$0xf] }
  0xa4   : > { %581 = vst [vmem:[%s5099_s3 + $0x350] sm:$0xf] %v580_v20  ;;  %v584_v22 = vld [vmem:[%s5094_s30 + $0x6b0] sm:$0xf]  ;;  %v586_v23 = vld [vmem:[%s5094_s30 + $0x6b8] sm:$0xf] }
  0xa5   : > { %583 = vst [vmem:[%s5099_s3 + $0x354] sm:$0xf] %v582_v21  ;;  %585 = vst [vmem:[%s5099_s3 + $0x358] sm:$0xf] %v584_v22  ;;  %v588_v24 = vld [vmem:[%s5094_s30 + $0x6c0] sm:$0xf] }
  0xa6   : > { %587 = vst [vmem:[%s5099_s3 + $0x35c] sm:$0xf] %v586_v23  ;;  %v590_v25 = vld [vmem:[%s5094_s30 + $0x6c8] sm:$0xf]  ;;  %v592_v26 = vld [vmem:[%s5094_s30 + $0x6d0] sm:$0xf] }
  0xa7   : > { %589 = vst [vmem:[%s5099_s3 + $0x360] sm:$0xf] %v588_v24  ;;  %591 = vst [vmem:[%s5099_s3 + $0x364] sm:$0xf] %v590_v25  ;;  %v594_v27 = vld [vmem:[%s5094_s30 + $0x6d8] sm:$0xf] }
  0xa8   : > { %593 = vst [vmem:[%s5099_s3 + $0x368] sm:$0xf] %v592_v26  ;;  %v596_v28 = vld [vmem:[%s5094_s30 + $0x6e0] sm:$0xf]  ;;  %v598_v29 = vld [vmem:[%s5094_s30 + $0x6e8] sm:$0xf] }
  0xa9   : > { %595 = vst [vmem:[%s5099_s3 + $0x36c] sm:$0xf] %v594_v27  ;;  %597 = vst [vmem:[%s5099_s3 + $0x370] sm:$0xf] %v596_v28  ;;  %v600_v30 = vld [vmem:[%s5094_s30 + $0x6f0] sm:$0xf] }
  0xaa   : > { %599 = vst [vmem:[%s5099_s3 + $0x374] sm:$0xf] %v598_v29  ;;  %v602_v31 = vld [vmem:[%s5094_s30 + $0x6f8] sm:$0xf]  ;;  %v604_v32 = vld [vmem:[%s5094_s30 + $0x700] sm:$0xf] }
  0xab   : > { %601 = vst [vmem:[%s5099_s3 + $0x378] sm:$0xf] %v600_v30  ;;  %603 = vst [vmem:[%s5099_s3 + $0x37c] sm:$0xf] %v602_v31  ;;  %v606_v33 = vld [vmem:[%s5094_s30 + $0x708] sm:$0xf] }
  0xac   : > { %605 = vst [vmem:[%s5099_s3 + $0x380] sm:$0xf] %v604_v32  ;;  %v608_v34 = vld [vmem:[%s5094_s30 + $0x710] sm:$0xf]  ;;  %v610_v35 = vld [vmem:[%s5094_s30 + $0x718] sm:$0xf] }
  0xad   : > { %607 = vst [vmem:[%s5099_s3 + $0x384] sm:$0xf] %v606_v33  ;;  %609 = vst [vmem:[%s5099_s3 + $0x388] sm:$0xf] %v608_v34  ;;  %v612_v36 = vld [vmem:[%s5094_s30 + $0x720] sm:$0xf] }
  0xae   : > { %611 = vst [vmem:[%s5099_s3 + $0x38c] sm:$0xf] %v610_v35  ;;  %v614_v37 = vld [vmem:[%s5094_s30 + $0x728] sm:$0xf]  ;;  %v616_v38 = vld [vmem:[%s5094_s30 + $0x730] sm:$0xf] }
  0xaf   : > { %613 = vst [vmem:[%s5099_s3 + $0x390] sm:$0xf] %v612_v36  ;;  %615 = vst [vmem:[%s5099_s3 + $0x394] sm:$0xf] %v614_v37  ;;  %v618_v39 = vld [vmem:[%s5094_s30 + $0x738] sm:$0xf] }
  0xb0   : > { %617 = vst [vmem:[%s5099_s3 + $0x398] sm:$0xf] %v616_v38  ;;  %v620_v40 = vld [vmem:[%s5094_s30 + $0x740] sm:$0xf]  ;;  %v622_v41 = vld [vmem:[%s5094_s30 + $0x748] sm:$0xf] }
  0xb1   : > { %619 = vst [vmem:[%s5099_s3 + $0x39c] sm:$0xf] %v618_v39  ;;  %621 = vst [vmem:[%s5099_s3 + $0x3a0] sm:$0xf] %v620_v40  ;;  %v624_v42 = vld [vmem:[%s5094_s30 + $0x750] sm:$0xf] }
  0xb2   : > { %623 = vst [vmem:[%s5099_s3 + $0x3a4] sm:$0xf] %v622_v41  ;;  %v626_v43 = vld [vmem:[%s5094_s30 + $0x758] sm:$0xf]  ;;  %v628_v44 = vld [vmem:[%s5094_s30 + $0x760] sm:$0xf] }
  0xb3   : > { %625 = vst [vmem:[%s5099_s3 + $0x3a8] sm:$0xf] %v624_v42  ;;  %627 = vst [vmem:[%s5099_s3 + $0x3ac] sm:$0xf] %v626_v43  ;;  %v630_v45 = vld [vmem:[%s5094_s30 + $0x768] sm:$0xf] }
  0xb4   : > { %629 = vst [vmem:[%s5099_s3 + $0x3b0] sm:$0xf] %v628_v44  ;;  %v632_v46 = vld [vmem:[%s5094_s30 + $0x770] sm:$0xf]  ;;  %v634_v47 = vld [vmem:[%s5094_s30 + $0x778] sm:$0xf] }
  0xb5   : > { %631 = vst [vmem:[%s5099_s3 + $0x3b4] sm:$0xf] %v630_v45  ;;  %633 = vst [vmem:[%s5099_s3 + $0x3b8] sm:$0xf] %v632_v46  ;;  %v636_v48 = vld [vmem:[%s5094_s30 + $0x780] sm:$0xf] }
  0xb6   : > { %635 = vst [vmem:[%s5099_s3 + $0x3bc] sm:$0xf] %v634_v47  ;;  %v638_v49 = vld [vmem:[%s5094_s30 + $0x788] sm:$0xf]  ;;  %v640_v50 = vld [vmem:[%s5094_s30 + $0x790] sm:$0xf] }
  0xb7   : > { %637 = vst [vmem:[%s5099_s3 + $0x3c0] sm:$0xf] %v636_v48  ;;  %639 = vst [vmem:[%s5099_s3 + $0x3c4] sm:$0xf] %v638_v49  ;;  %v642_v51 = vld [vmem:[%s5094_s30 + $0x798] sm:$0xf] }
  0xb8   : > { %641 = vst [vmem:[%s5099_s3 + $0x3c8] sm:$0xf] %v640_v50  ;;  %v644_v52 = vld [vmem:[%s5094_s30 + $0x7a0] sm:$0xf]  ;;  %v646_v53 = vld [vmem:[%s5094_s30 + $0x7a8] sm:$0xf] }
  0xb9   : > { %643 = vst [vmem:[%s5099_s3 + $0x3cc] sm:$0xf] %v642_v51  ;;  %645 = vst [vmem:[%s5099_s3 + $0x3d0] sm:$0xf] %v644_v52  ;;  %v648_v54 = vld [vmem:[%s5094_s30 + $0x7b0] sm:$0xf] }
  0xba   : > { %647 = vst [vmem:[%s5099_s3 + $0x3d4] sm:$0xf] %v646_v53  ;;  %v650_v55 = vld [vmem:[%s5094_s30 + $0x7b8] sm:$0xf]  ;;  %v652_v56 = vld [vmem:[%s5094_s30 + $0x7c0] sm:$0xf] }
  0xbb   : > { %649 = vst [vmem:[%s5099_s3 + $0x3d8] sm:$0xf] %v648_v54  ;;  %651 = vst [vmem:[%s5099_s3 + $0x3dc] sm:$0xf] %v650_v55  ;;  %v654_v57 = vld [vmem:[%s5094_s30 + $0x7c8] sm:$0xf] }
  0xbc   : > { %653 = vst [vmem:[%s5099_s3 + $0x3e0] sm:$0xf] %v652_v56  ;;  %v656_v58 = vld [vmem:[%s5094_s30 + $0x7d0] sm:$0xf]  ;;  %v658_v59 = vld [vmem:[%s5094_s30 + $0x7d8] sm:$0xf] }
  0xbd   : > { %655 = vst [vmem:[%s5099_s3 + $0x3e4] sm:$0xf] %v654_v57  ;;  %657 = vst [vmem:[%s5099_s3 + $0x3e8] sm:$0xf] %v656_v58  ;;  %v660_v60 = vld [vmem:[%s5094_s30 + $0x7e0] sm:$0xf] }
  0xbe   : > { %659 = vst [vmem:[%s5099_s3 + $0x3ec] sm:$0xf] %v658_v59  ;;  %v662_v61 = vld [vmem:[%s5094_s30 + $0x7e8] sm:$0xf]  ;;  %v664_v62 = vld [vmem:[%s5094_s30 + $0x7f0] sm:$0xf] }
  0xbf   : > { %661 = vst [vmem:[%s5099_s3 + $0x3f0] sm:$0xf] %v660_v60  ;;  %663 = vst [vmem:[%s5099_s3 + $0x3f4] sm:$0xf] %v662_v61  ;;  %v666_v63 = vld [vmem:[%s5094_s30 + $0x7f8] sm:$0xf] }
  0xc0   : > { %665 = vst [vmem:[%s5099_s3 + $0x3f8] sm:$0xf] %v664_v62  ;;  %v668_v0 = vld [vmem:[%s5094_s30 + $0x800] sm:$0xf]  ;;  %v670_v1 = vld [vmem:[%s5094_s30 + $0x808] sm:$0xf] }
  0xc1   : > { %667 = vst [vmem:[%s5099_s3 + $0x3fc] sm:$0xf] %v666_v63  ;;  %669 = vst [vmem:[%s5099_s3 + $0x400] sm:$0xf] %v668_v0  ;;  %v672_v2 = vld [vmem:[%s5094_s30 + $0x810] sm:$0xf] }
  0xc2   : > { %671 = vst [vmem:[%s5099_s3 + $0x404] sm:$0xf] %v670_v1  ;;  %v674_v3 = vld [vmem:[%s5094_s30 + $0x818] sm:$0xf]  ;;  %v676_v4 = vld [vmem:[%s5094_s30 + $0x820] sm:$0xf] }
  0xc3   : > { %673 = vst [vmem:[%s5099_s3 + $0x408] sm:$0xf] %v672_v2  ;;  %675 = vst [vmem:[%s5099_s3 + $0x40c] sm:$0xf] %v674_v3  ;;  %v678_v5 = vld [vmem:[%s5094_s30 + $0x828] sm:$0xf] }
  0xc4   : > { %677 = vst [vmem:[%s5099_s3 + $0x410] sm:$0xf] %v676_v4  ;;  %v680_v6 = vld [vmem:[%s5094_s30 + $0x830] sm:$0xf]  ;;  %v682_v7 = vld [vmem:[%s5094_s30 + $0x838] sm:$0xf] }
  0xc5   : > { %679 = vst [vmem:[%s5099_s3 + $0x414] sm:$0xf] %v678_v5  ;;  %681 = vst [vmem:[%s5099_s3 + $0x418] sm:$0xf] %v680_v6  ;;  %v684_v8 = vld [vmem:[%s5094_s30 + $0x840] sm:$0xf] }
  0xc6   : > { %683 = vst [vmem:[%s5099_s3 + $0x41c] sm:$0xf] %v682_v7  ;;  %v686_v9 = vld [vmem:[%s5094_s30 + $0x848] sm:$0xf]  ;;  %v688_v10 = vld [vmem:[%s5094_s30 + $0x850] sm:$0xf] }
  0xc7   : > { %685 = vst [vmem:[%s5099_s3 + $0x420] sm:$0xf] %v684_v8  ;;  %687 = vst [vmem:[%s5099_s3 + $0x424] sm:$0xf] %v686_v9  ;;  %v690_v11 = vld [vmem:[%s5094_s30 + $0x858] sm:$0xf] }
  0xc8   : > { %689 = vst [vmem:[%s5099_s3 + $0x428] sm:$0xf] %v688_v10  ;;  %v692_v12 = vld [vmem:[%s5094_s30 + $0x860] sm:$0xf]  ;;  %v694_v13 = vld [vmem:[%s5094_s30 + $0x868] sm:$0xf] }
  0xc9   : > { %691 = vst [vmem:[%s5099_s3 + $0x42c] sm:$0xf] %v690_v11  ;;  %693 = vst [vmem:[%s5099_s3 + $0x430] sm:$0xf] %v692_v12  ;;  %v696_v14 = vld [vmem:[%s5094_s30 + $0x870] sm:$0xf] }
  0xca   : > { %695 = vst [vmem:[%s5099_s3 + $0x434] sm:$0xf] %v694_v13  ;;  %v698_v15 = vld [vmem:[%s5094_s30 + $0x878] sm:$0xf]  ;;  %v700_v16 = vld [vmem:[%s5094_s30 + $0x880] sm:$0xf] }
  0xcb   : > { %697 = vst [vmem:[%s5099_s3 + $0x438] sm:$0xf] %v696_v14  ;;  %699 = vst [vmem:[%s5099_s3 + $0x43c] sm:$0xf] %v698_v15  ;;  %v702_v17 = vld [vmem:[%s5094_s30 + $0x888] sm:$0xf] }
  0xcc   : > { %701 = vst [vmem:[%s5099_s3 + $0x440] sm:$0xf] %v700_v16  ;;  %v704_v18 = vld [vmem:[%s5094_s30 + $0x890] sm:$0xf]  ;;  %v706_v19 = vld [vmem:[%s5094_s30 + $0x898] sm:$0xf] }
  0xcd   : > { %703 = vst [vmem:[%s5099_s3 + $0x444] sm:$0xf] %v702_v17  ;;  %705 = vst [vmem:[%s5099_s3 + $0x448] sm:$0xf] %v704_v18  ;;  %v708_v20 = vld [vmem:[%s5094_s30 + $0x8a0] sm:$0xf] }
  0xce   : > { %707 = vst [vmem:[%s5099_s3 + $0x44c] sm:$0xf] %v706_v19  ;;  %v710_v21 = vld [vmem:[%s5094_s30 + $0x8a8] sm:$0xf]  ;;  %v712_v22 = vld [vmem:[%s5094_s30 + $0x8b0] sm:$0xf] }
  0xcf   : > { %709 = vst [vmem:[%s5099_s3 + $0x450] sm:$0xf] %v708_v20  ;;  %711 = vst [vmem:[%s5099_s3 + $0x454] sm:$0xf] %v710_v21  ;;  %v714_v23 = vld [vmem:[%s5094_s30 + $0x8b8] sm:$0xf] }
  0xd0   : > { %713 = vst [vmem:[%s5099_s3 + $0x458] sm:$0xf] %v712_v22  ;;  %v716_v24 = vld [vmem:[%s5094_s30 + $0x8c0] sm:$0xf]  ;;  %v718_v25 = vld [vmem:[%s5094_s30 + $0x8c8] sm:$0xf] }
  0xd1   : > { %715 = vst [vmem:[%s5099_s3 + $0x45c] sm:$0xf] %v714_v23  ;;  %717 = vst [vmem:[%s5099_s3 + $0x460] sm:$0xf] %v716_v24  ;;  %v720_v26 = vld [vmem:[%s5094_s30 + $0x8d0] sm:$0xf] }
  0xd2   : > { %719 = vst [vmem:[%s5099_s3 + $0x464] sm:$0xf] %v718_v25  ;;  %v722_v27 = vld [vmem:[%s5094_s30 + $0x8d8] sm:$0xf]  ;;  %v724_v28 = vld [vmem:[%s5094_s30 + $0x8e0] sm:$0xf] }
  0xd3   : > { %721 = vst [vmem:[%s5099_s3 + $0x468] sm:$0xf] %v720_v26  ;;  %723 = vst [vmem:[%s5099_s3 + $0x46c] sm:$0xf] %v722_v27  ;;  %v726_v29 = vld [vmem:[%s5094_s30 + $0x8e8] sm:$0xf] }
  0xd4   : > { %725 = vst [vmem:[%s5099_s3 + $0x470] sm:$0xf] %v724_v28  ;;  %v728_v30 = vld [vmem:[%s5094_s30 + $0x8f0] sm:$0xf]  ;;  %v730_v31 = vld [vmem:[%s5094_s30 + $0x8f8] sm:$0xf] }
  0xd5   : > { %727 = vst [vmem:[%s5099_s3 + $0x474] sm:$0xf] %v726_v29  ;;  %729 = vst [vmem:[%s5099_s3 + $0x478] sm:$0xf] %v728_v30  ;;  %v732_v32 = vld [vmem:[%s5094_s30 + $0x900] sm:$0xf] }
  0xd6   : > { %731 = vst [vmem:[%s5099_s3 + $0x47c] sm:$0xf] %v730_v31  ;;  %v734_v33 = vld [vmem:[%s5094_s30 + $0x908] sm:$0xf]  ;;  %v736_v34 = vld [vmem:[%s5094_s30 + $0x910] sm:$0xf] }
  0xd7   : > { %733 = vst [vmem:[%s5099_s3 + $0x480] sm:$0xf] %v732_v32  ;;  %735 = vst [vmem:[%s5099_s3 + $0x484] sm:$0xf] %v734_v33  ;;  %v738_v35 = vld [vmem:[%s5094_s30 + $0x918] sm:$0xf] }
  0xd8   : > { %737 = vst [vmem:[%s5099_s3 + $0x488] sm:$0xf] %v736_v34  ;;  %v740_v36 = vld [vmem:[%s5094_s30 + $0x920] sm:$0xf]  ;;  %v742_v37 = vld [vmem:[%s5094_s30 + $0x928] sm:$0xf] }
  0xd9   : > { %739 = vst [vmem:[%s5099_s3 + $0x48c] sm:$0xf] %v738_v35  ;;  %741 = vst [vmem:[%s5099_s3 + $0x490] sm:$0xf] %v740_v36  ;;  %v744_v38 = vld [vmem:[%s5094_s30 + $0x930] sm:$0xf] }
  0xda   : > { %743 = vst [vmem:[%s5099_s3 + $0x494] sm:$0xf] %v742_v37  ;;  %v746_v39 = vld [vmem:[%s5094_s30 + $0x938] sm:$0xf]  ;;  %v748_v40 = vld [vmem:[%s5094_s30 + $0x940] sm:$0xf] }
  0xdb   : > { %745 = vst [vmem:[%s5099_s3 + $0x498] sm:$0xf] %v744_v38  ;;  %747 = vst [vmem:[%s5099_s3 + $0x49c] sm:$0xf] %v746_v39  ;;  %v750_v41 = vld [vmem:[%s5094_s30 + $0x948] sm:$0xf] }
  0xdc   : > { %749 = vst [vmem:[%s5099_s3 + $0x4a0] sm:$0xf] %v748_v40  ;;  %v752_v42 = vld [vmem:[%s5094_s30 + $0x950] sm:$0xf]  ;;  %v754_v43 = vld [vmem:[%s5094_s30 + $0x958] sm:$0xf] }
  0xdd   : > { %751 = vst [vmem:[%s5099_s3 + $0x4a4] sm:$0xf] %v750_v41  ;;  %753 = vst [vmem:[%s5099_s3 + $0x4a8] sm:$0xf] %v752_v42  ;;  %v756_v44 = vld [vmem:[%s5094_s30 + $0x960] sm:$0xf] }
  0xde   : > { %755 = vst [vmem:[%s5099_s3 + $0x4ac] sm:$0xf] %v754_v43  ;;  %v758_v45 = vld [vmem:[%s5094_s30 + $0x968] sm:$0xf]  ;;  %v760_v46 = vld [vmem:[%s5094_s30 + $0x970] sm:$0xf] }
  0xdf   : > { %757 = vst [vmem:[%s5099_s3 + $0x4b0] sm:$0xf] %v756_v44  ;;  %759 = vst [vmem:[%s5099_s3 + $0x4b4] sm:$0xf] %v758_v45  ;;  %v762_v47 = vld [vmem:[%s5094_s30 + $0x978] sm:$0xf] }
  0xe0   : > { %761 = vst [vmem:[%s5099_s3 + $0x4b8] sm:$0xf] %v760_v46  ;;  %v764_v48 = vld [vmem:[%s5094_s30 + $0x980] sm:$0xf]  ;;  %v766_v49 = vld [vmem:[%s5094_s30 + $0x988] sm:$0xf] }
  0xe1   : > { %763 = vst [vmem:[%s5099_s3 + $0x4bc] sm:$0xf] %v762_v47  ;;  %765 = vst [vmem:[%s5099_s3 + $0x4c0] sm:$0xf] %v764_v48  ;;  %v768_v50 = vld [vmem:[%s5094_s30 + $0x990] sm:$0xf] }
  0xe2   : > { %767 = vst [vmem:[%s5099_s3 + $0x4c4] sm:$0xf] %v766_v49  ;;  %v770_v51 = vld [vmem:[%s5094_s30 + $0x998] sm:$0xf]  ;;  %v772_v52 = vld [vmem:[%s5094_s30 + $0x9a0] sm:$0xf] }
  0xe3   : > { %769 = vst [vmem:[%s5099_s3 + $0x4c8] sm:$0xf] %v768_v50  ;;  %771 = vst [vmem:[%s5099_s3 + $0x4cc] sm:$0xf] %v770_v51  ;;  %v774_v53 = vld [vmem:[%s5094_s30 + $0x9a8] sm:$0xf] }
  0xe4   : > { %773 = vst [vmem:[%s5099_s3 + $0x4d0] sm:$0xf] %v772_v52  ;;  %v776_v54 = vld [vmem:[%s5094_s30 + $0x9b0] sm:$0xf]  ;;  %v778_v55 = vld [vmem:[%s5094_s30 + $0x9b8] sm:$0xf] }
  0xe5   : > { %775 = vst [vmem:[%s5099_s3 + $0x4d4] sm:$0xf] %v774_v53  ;;  %777 = vst [vmem:[%s5099_s3 + $0x4d8] sm:$0xf] %v776_v54  ;;  %v780_v56 = vld [vmem:[%s5094_s30 + $0x9c0] sm:$0xf] }
  0xe6   : > { %779 = vst [vmem:[%s5099_s3 + $0x4dc] sm:$0xf] %v778_v55  ;;  %v782_v57 = vld [vmem:[%s5094_s30 + $0x9c8] sm:$0xf]  ;;  %v784_v58 = vld [vmem:[%s5094_s30 + $0x9d0] sm:$0xf] }
  0xe7   : > { %781 = vst [vmem:[%s5099_s3 + $0x4e0] sm:$0xf] %v780_v56  ;;  %783 = vst [vmem:[%s5099_s3 + $0x4e4] sm:$0xf] %v782_v57  ;;  %v786_v59 = vld [vmem:[%s5094_s30 + $0x9d8] sm:$0xf] }
  0xe8   : > { %785 = vst [vmem:[%s5099_s3 + $0x4e8] sm:$0xf] %v784_v58  ;;  %v788_v60 = vld [vmem:[%s5094_s30 + $0x9e0] sm:$0xf]  ;;  %v790_v61 = vld [vmem:[%s5094_s30 + $0x9e8] sm:$0xf] }
  0xe9   : > { %787 = vst [vmem:[%s5099_s3 + $0x4ec] sm:$0xf] %v786_v59  ;;  %789 = vst [vmem:[%s5099_s3 + $0x4f0] sm:$0xf] %v788_v60  ;;  %v792_v62 = vld [vmem:[%s5094_s30 + $0x9f0] sm:$0xf] }
  0xea   : > { %791 = vst [vmem:[%s5099_s3 + $0x4f4] sm:$0xf] %v790_v61  ;;  %v794_v63 = vld [vmem:[%s5094_s30 + $0x9f8] sm:$0xf]  ;;  %v796_v0 = vld [vmem:[%s5094_s30 + $0xa00] sm:$0xf] }
  0xeb   : > { %793 = vst [vmem:[%s5099_s3 + $0x4f8] sm:$0xf] %v792_v62  ;;  %795 = vst [vmem:[%s5099_s3 + $0x4fc] sm:$0xf] %v794_v63  ;;  %v798_v1 = vld [vmem:[%s5094_s30 + $0xa08] sm:$0xf] }
  0xec   : > { %797 = vst [vmem:[%s5099_s3 + $0x500] sm:$0xf] %v796_v0  ;;  %v800_v2 = vld [vmem:[%s5094_s30 + $0xa10] sm:$0xf]  ;;  %v802_v3 = vld [vmem:[%s5094_s30 + $0xa18] sm:$0xf] }
  0xed   : > { %799 = vst [vmem:[%s5099_s3 + $0x504] sm:$0xf] %v798_v1  ;;  %801 = vst [vmem:[%s5099_s3 + $0x508] sm:$0xf] %v800_v2  ;;  %v804_v4 = vld [vmem:[%s5094_s30 + $0xa20] sm:$0xf] }
  0xee   : > { %803 = vst [vmem:[%s5099_s3 + $0x50c] sm:$0xf] %v802_v3  ;;  %v806_v5 = vld [vmem:[%s5094_s30 + $0xa28] sm:$0xf]  ;;  %v808_v6 = vld [vmem:[%s5094_s30 + $0xa30] sm:$0xf] }
  0xef   : > { %805 = vst [vmem:[%s5099_s3 + $0x510] sm:$0xf] %v804_v4  ;;  %807 = vst [vmem:[%s5099_s3 + $0x514] sm:$0xf] %v806_v5  ;;  %v810_v7 = vld [vmem:[%s5094_s30 + $0xa38] sm:$0xf] }
  0xf0   : > { %809 = vst [vmem:[%s5099_s3 + $0x518] sm:$0xf] %v808_v6  ;;  %v812_v8 = vld [vmem:[%s5094_s30 + $0xa40] sm:$0xf]  ;;  %v814_v9 = vld [vmem:[%s5094_s30 + $0xa48] sm:$0xf] }
  0xf1   : > { %811 = vst [vmem:[%s5099_s3 + $0x51c] sm:$0xf] %v810_v7  ;;  %813 = vst [vmem:[%s5099_s3 + $0x520] sm:$0xf] %v812_v8  ;;  %v816_v10 = vld [vmem:[%s5094_s30 + $0xa50] sm:$0xf] }
  0xf2   : > { %815 = vst [vmem:[%s5099_s3 + $0x524] sm:$0xf] %v814_v9  ;;  %v818_v11 = vld [vmem:[%s5094_s30 + $0xa58] sm:$0xf]  ;;  %v820_v12 = vld [vmem:[%s5094_s30 + $0xa60] sm:$0xf] }
  0xf3   : > { %817 = vst [vmem:[%s5099_s3 + $0x528] sm:$0xf] %v816_v10  ;;  %819 = vst [vmem:[%s5099_s3 + $0x52c] sm:$0xf] %v818_v11  ;;  %v822_v13 = vld [vmem:[%s5094_s30 + $0xa68] sm:$0xf] }
  0xf4   : > { %821 = vst [vmem:[%s5099_s3 + $0x530] sm:$0xf] %v820_v12  ;;  %v824_v14 = vld [vmem:[%s5094_s30 + $0xa70] sm:$0xf]  ;;  %v826_v15 = vld [vmem:[%s5094_s30 + $0xa78] sm:$0xf] }
  0xf5   : > { %823 = vst [vmem:[%s5099_s3 + $0x534] sm:$0xf] %v822_v13  ;;  %825 = vst [vmem:[%s5099_s3 + $0x538] sm:$0xf] %v824_v14  ;;  %v828_v16 = vld [vmem:[%s5094_s30 + $0xa80] sm:$0xf] }
  0xf6   : > { %827 = vst [vmem:[%s5099_s3 + $0x53c] sm:$0xf] %v826_v15  ;;  %v830_v17 = vld [vmem:[%s5094_s30 + $0xa88] sm:$0xf]  ;;  %v832_v18 = vld [vmem:[%s5094_s30 + $0xa90] sm:$0xf] }
  0xf7   : > { %829 = vst [vmem:[%s5099_s3 + $0x540] sm:$0xf] %v828_v16  ;;  %831 = vst [vmem:[%s5099_s3 + $0x544] sm:$0xf] %v830_v17  ;;  %v834_v19 = vld [vmem:[%s5094_s30 + $0xa98] sm:$0xf] }
  0xf8   : > { %833 = vst [vmem:[%s5099_s3 + $0x548] sm:$0xf] %v832_v18  ;;  %v836_v20 = vld [vmem:[%s5094_s30 + $0xaa0] sm:$0xf]  ;;  %v838_v21 = vld [vmem:[%s5094_s30 + $0xaa8] sm:$0xf] }
  0xf9   : > { %835 = vst [vmem:[%s5099_s3 + $0x54c] sm:$0xf] %v834_v19  ;;  %837 = vst [vmem:[%s5099_s3 + $0x550] sm:$0xf] %v836_v20  ;;  %v840_v22 = vld [vmem:[%s5094_s30 + $0xab0] sm:$0xf] }
  0xfa   : > { %839 = vst [vmem:[%s5099_s3 + $0x554] sm:$0xf] %v838_v21  ;;  %v842_v23 = vld [vmem:[%s5094_s30 + $0xab8] sm:$0xf]  ;;  %v844_v24 = vld [vmem:[%s5094_s30 + $0xac0] sm:$0xf] }
  0xfb   : > { %841 = vst [vmem:[%s5099_s3 + $0x558] sm:$0xf] %v840_v22  ;;  %843 = vst [vmem:[%s5099_s3 + $0x55c] sm:$0xf] %v842_v23  ;;  %v846_v25 = vld [vmem:[%s5094_s30 + $0xac8] sm:$0xf] }
  0xfc   : > { %845 = vst [vmem:[%s5099_s3 + $0x560] sm:$0xf] %v844_v24  ;;  %v848_v26 = vld [vmem:[%s5094_s30 + $0xad0] sm:$0xf]  ;;  %v850_v27 = vld [vmem:[%s5094_s30 + $0xad8] sm:$0xf] }
  0xfd   : > { %847 = vst [vmem:[%s5099_s3 + $0x564] sm:$0xf] %v846_v25  ;;  %849 = vst [vmem:[%s5099_s3 + $0x568] sm:$0xf] %v848_v26  ;;  %v852_v28 = vld [vmem:[%s5094_s30 + $0xae0] sm:$0xf] }
  0xfe   : > { %851 = vst [vmem:[%s5099_s3 + $0x56c] sm:$0xf] %v850_v27  ;;  %v854_v29 = vld [vmem:[%s5094_s30 + $0xae8] sm:$0xf]  ;;  %v856_v30 = vld [vmem:[%s5094_s30 + $0xaf0] sm:$0xf] }
  0xff   : > { %853 = vst [vmem:[%s5099_s3 + $0x570] sm:$0xf] %v852_v28  ;;  %855 = vst [vmem:[%s5099_s3 + $0x574] sm:$0xf] %v854_v29  ;;  %v858_v31 = vld [vmem:[%s5094_s30 + $0xaf8] sm:$0xf] }
 0x100   : > { %857 = vst [vmem:[%s5099_s3 + $0x578] sm:$0xf] %v856_v30  ;;  %v860_v32 = vld [vmem:[%s5094_s30 + $0xb00] sm:$0xf]  ;;  %v862_v33 = vld [vmem:[%s5094_s30 + $0xb08] sm:$0xf] }
 0x101   : > { %859 = vst [vmem:[%s5099_s3 + $0x57c] sm:$0xf] %v858_v31  ;;  %861 = vst [vmem:[%s5099_s3 + $0x580] sm:$0xf] %v860_v32  ;;  %v864_v34 = vld [vmem:[%s5094_s30 + $0xb10] sm:$0xf] }
 0x102   : > { %863 = vst [vmem:[%s5099_s3 + $0x584] sm:$0xf] %v862_v33  ;;  %v866_v35 = vld [vmem:[%s5094_s30 + $0xb18] sm:$0xf]  ;;  %v868_v36 = vld [vmem:[%s5094_s30 + $0xb20] sm:$0xf] }
 0x103   : > { %865 = vst [vmem:[%s5099_s3 + $0x588] sm:$0xf] %v864_v34  ;;  %867 = vst [vmem:[%s5099_s3 + $0x58c] sm:$0xf] %v866_v35  ;;  %v870_v37 = vld [vmem:[%s5094_s30 + $0xb28] sm:$0xf] }
 0x104   : > { %869 = vst [vmem:[%s5099_s3 + $0x590] sm:$0xf] %v868_v36  ;;  %v872_v38 = vld [vmem:[%s5094_s30 + $0xb30] sm:$0xf]  ;;  %v874_v39 = vld [vmem:[%s5094_s30 + $0xb38] sm:$0xf] }
 0x105   : > { %871 = vst [vmem:[%s5099_s3 + $0x594] sm:$0xf] %v870_v37  ;;  %873 = vst [vmem:[%s5099_s3 + $0x598] sm:$0xf] %v872_v38  ;;  %v876_v40 = vld [vmem:[%s5094_s30 + $0xb40] sm:$0xf] }
 0x106   : > { %875 = vst [vmem:[%s5099_s3 + $0x59c] sm:$0xf] %v874_v39  ;;  %v878_v41 = vld [vmem:[%s5094_s30 + $0xb48] sm:$0xf]  ;;  %v880_v42 = vld [vmem:[%s5094_s30 + $0xb50] sm:$0xf] }
 0x107   : > { %877 = vst [vmem:[%s5099_s3 + $0x5a0] sm:$0xf] %v876_v40  ;;  %879 = vst [vmem:[%s5099_s3 + $0x5a4] sm:$0xf] %v878_v41  ;;  %v882_v43 = vld [vmem:[%s5094_s30 + $0xb58] sm:$0xf] }
 0x108   : > { %881 = vst [vmem:[%s5099_s3 + $0x5a8] sm:$0xf] %v880_v42  ;;  %v884_v44 = vld [vmem:[%s5094_s30 + $0xb60] sm:$0xf]  ;;  %v886_v45 = vld [vmem:[%s5094_s30 + $0xb68] sm:$0xf] }
 0x109   : > { %883 = vst [vmem:[%s5099_s3 + $0x5ac] sm:$0xf] %v882_v43  ;;  %885 = vst [vmem:[%s5099_s3 + $0x5b0] sm:$0xf] %v884_v44  ;;  %v888_v46 = vld [vmem:[%s5094_s30 + $0xb70] sm:$0xf] }
 0x10a   : > { %887 = vst [vmem:[%s5099_s3 + $0x5b4] sm:$0xf] %v886_v45  ;;  %v890_v47 = vld [vmem:[%s5094_s30 + $0xb78] sm:$0xf]  ;;  %v892_v48 = vld [vmem:[%s5094_s30 + $0xb80] sm:$0xf] }
 0x10b   : > { %889 = vst [vmem:[%s5099_s3 + $0x5b8] sm:$0xf] %v888_v46  ;;  %891 = vst [vmem:[%s5099_s3 + $0x5bc] sm:$0xf] %v890_v47  ;;  %v894_v49 = vld [vmem:[%s5094_s30 + $0xb88] sm:$0xf] }
 0x10c   : > { %893 = vst [vmem:[%s5099_s3 + $0x5c0] sm:$0xf] %v892_v48  ;;  %v896_v50 = vld [vmem:[%s5094_s30 + $0xb90] sm:$0xf]  ;;  %v898_v51 = vld [vmem:[%s5094_s30 + $0xb98] sm:$0xf] }
 0x10d   : > { %895 = vst [vmem:[%s5099_s3 + $0x5c4] sm:$0xf] %v894_v49  ;;  %897 = vst [vmem:[%s5099_s3 + $0x5c8] sm:$0xf] %v896_v50  ;;  %v900_v52 = vld [vmem:[%s5094_s30 + $0xba0] sm:$0xf] }
 0x10e   : > { %899 = vst [vmem:[%s5099_s3 + $0x5cc] sm:$0xf] %v898_v51  ;;  %v902_v53 = vld [vmem:[%s5094_s30 + $0xba8] sm:$0xf]  ;;  %v904_v54 = vld [vmem:[%s5094_s30 + $0xbb0] sm:$0xf] }
 0x10f   : > { %901 = vst [vmem:[%s5099_s3 + $0x5d0] sm:$0xf] %v900_v52  ;;  %903 = vst [vmem:[%s5099_s3 + $0x5d4] sm:$0xf] %v902_v53  ;;  %v906_v55 = vld [vmem:[%s5094_s30 + $0xbb8] sm:$0xf] }
 0x110   : > { %905 = vst [vmem:[%s5099_s3 + $0x5d8] sm:$0xf] %v904_v54  ;;  %v908_v56 = vld [vmem:[%s5094_s30 + $0xbc0] sm:$0xf]  ;;  %v910_v57 = vld [vmem:[%s5094_s30 + $0xbc8] sm:$0xf] }
 0x111   : > { %907 = vst [vmem:[%s5099_s3 + $0x5dc] sm:$0xf] %v906_v55  ;;  %909 = vst [vmem:[%s5099_s3 + $0x5e0] sm:$0xf] %v908_v56  ;;  %v912_v58 = vld [vmem:[%s5094_s30 + $0xbd0] sm:$0xf] }
 0x112   : > { %911 = vst [vmem:[%s5099_s3 + $0x5e4] sm:$0xf] %v910_v57  ;;  %v914_v59 = vld [vmem:[%s5094_s30 + $0xbd8] sm:$0xf]  ;;  %v916_v60 = vld [vmem:[%s5094_s30 + $0xbe0] sm:$0xf] }
 0x113   : > { %913 = vst [vmem:[%s5099_s3 + $0x5e8] sm:$0xf] %v912_v58  ;;  %915 = vst [vmem:[%s5099_s3 + $0x5ec] sm:$0xf] %v914_v59  ;;  %v918_v61 = vld [vmem:[%s5094_s30 + $0xbe8] sm:$0xf] }
 0x114   : > { %917 = vst [vmem:[%s5099_s3 + $0x5f0] sm:$0xf] %v916_v60  ;;  %v920_v62 = vld [vmem:[%s5094_s30 + $0xbf0] sm:$0xf]  ;;  %v922_v63 = vld [vmem:[%s5094_s30 + $0xbf8] sm:$0xf] }
 0x115   : > { %919 = vst [vmem:[%s5099_s3 + $0x5f4] sm:$0xf] %v918_v61  ;;  %921 = vst [vmem:[%s5099_s3 + $0x5f8] sm:$0xf] %v920_v62  ;;  %v924_v0 = vld [vmem:[%s5094_s30 + $0xc00] sm:$0xf] }
 0x116   : > { %923 = vst [vmem:[%s5099_s3 + $0x5fc] sm:$0xf] %v922_v63  ;;  %v926_v1 = vld [vmem:[%s5094_s30 + $0xc08] sm:$0xf]  ;;  %v928_v2 = vld [vmem:[%s5094_s30 + $0xc10] sm:$0xf] }
 0x117   : > { %925 = vst [vmem:[%s5099_s3 + $0x600] sm:$0xf] %v924_v0  ;;  %927 = vst [vmem:[%s5099_s3 + $0x604] sm:$0xf] %v926_v1  ;;  %v930_v3 = vld [vmem:[%s5094_s30 + $0xc18] sm:$0xf] }
 0x118   : > { %929 = vst [vmem:[%s5099_s3 + $0x608] sm:$0xf] %v928_v2  ;;  %v932_v4 = vld [vmem:[%s5094_s30 + $0xc20] sm:$0xf]  ;;  %v934_v5 = vld [vmem:[%s5094_s30 + $0xc28] sm:$0xf] }
 0x119   : > { %931 = vst [vmem:[%s5099_s3 + $0x60c] sm:$0xf] %v930_v3  ;;  %933 = vst [vmem:[%s5099_s3 + $0x610] sm:$0xf] %v932_v4  ;;  %v936_v6 = vld [vmem:[%s5094_s30 + $0xc30] sm:$0xf] }
 0x11a   : > { %935 = vst [vmem:[%s5099_s3 + $0x614] sm:$0xf] %v934_v5  ;;  %v938_v7 = vld [vmem:[%s5094_s30 + $0xc38] sm:$0xf]  ;;  %v940_v8 = vld [vmem:[%s5094_s30 + $0xc40] sm:$0xf] }
 0x11b   : > { %937 = vst [vmem:[%s5099_s3 + $0x618] sm:$0xf] %v936_v6  ;;  %939 = vst [vmem:[%s5099_s3 + $0x61c] sm:$0xf] %v938_v7  ;;  %v942_v9 = vld [vmem:[%s5094_s30 + $0xc48] sm:$0xf] }
 0x11c   : > { %941 = vst [vmem:[%s5099_s3 + $0x620] sm:$0xf] %v940_v8  ;;  %v944_v10 = vld [vmem:[%s5094_s30 + $0xc50] sm:$0xf]  ;;  %v946_v11 = vld [vmem:[%s5094_s30 + $0xc58] sm:$0xf] }
 0x11d   : > { %943 = vst [vmem:[%s5099_s3 + $0x624] sm:$0xf] %v942_v9  ;;  %945 = vst [vmem:[%s5099_s3 + $0x628] sm:$0xf] %v944_v10  ;;  %v948_v12 = vld [vmem:[%s5094_s30 + $0xc60] sm:$0xf] }
 0x11e   : > { %947 = vst [vmem:[%s5099_s3 + $0x62c] sm:$0xf] %v946_v11  ;;  %v950_v13 = vld [vmem:[%s5094_s30 + $0xc68] sm:$0xf]  ;;  %v952_v14 = vld [vmem:[%s5094_s30 + $0xc70] sm:$0xf] }
 0x11f   : > { %949 = vst [vmem:[%s5099_s3 + $0x630] sm:$0xf] %v948_v12  ;;  %951 = vst [vmem:[%s5099_s3 + $0x634] sm:$0xf] %v950_v13  ;;  %v954_v15 = vld [vmem:[%s5094_s30 + $0xc78] sm:$0xf] }
 0x120   : > { %953 = vst [vmem:[%s5099_s3 + $0x638] sm:$0xf] %v952_v14  ;;  %955 = vst [vmem:[%s5099_s3 + $0x63c] sm:$0xf] %v954_v15 }
 0x121 PF: > { %p4148_p7 = scmp.ge.s32.totalorder %s5014_s15, 1  ;;  %p1778_p8 = scmp.lt.s32.totalorder %s5014_s15, 5 }
 0x123   : > { %p1779_p9 = pnand %p4148_p7, %p1778_p8 }
 0x124   : > { %s1785_s4 = sand.u32 (!%p1779_p9), 1, %s4990_s9   ;;  %s1810_s5 = smul.u32 (!%p1779_p9), 25, %s4998_s11 }
 0x125   : > { %1782 = sbr.rel (%p1779_p9) target bundleno = 742 (0x2e6), region = 65  ;;  %p1817_p10 = scmp.lt.s32.totalorder (!%p1779_p9), %s5002_s12, 1 }
 0x126   : > { %s4675_s6 = smul.u32 (!%p1779_p9), 1600, %s1785_s4  ;;  %p1811_p11 = scmp.lt.s32.totalorder (!%p1779_p9), %s1810_s5, 49 }
 0x127   : > { %p4151_p12 = scmp.ne.s32.totalorder (!%p1779_p9), %s4998_s11, 0 }
 0x128   : > { %s5914_s25 = scalar_lea.vmem (!%p1779_p9), [#allocation3], %s4675_s6 }
 0x12a   : > { %s6169_s5 = smov (!%p1811_p11, %s1810_s5), 49  ;;  %s6171_s12 = smov (!%p1817_p10, %s5002_s12), 1 }
 0x12b   : > { %s4149_s7 = sshll.u32 %s6169_s5, 2  ;;  %s4150_s20 = sshll.u32 %s6171_s12, 3 }
 0x12c   : > { %s5907_s19 = scalar_lea.vmem %s6153_s0, %s4149_s7  ;;  %s5912_s24 = scalar_lea.vmem %s6155_s2, %s4150_s20 }
 0x12d   : > { %1825 = sbr.rel (%p4151_p12) target bundleno = 308 (0x134), region = 73 }
 0x132   : > { %v5016_v16 = vmov 0.0  }
 0x133   : > { %1826 = vst [vmem:[#allocation2] sm:$0xff] %v5016_v16 }
 0x134 PF: > { %v4735_v17 = vld [vmem:[%s5914_s25 + $0x78] sm:$0xff]   ;;  %v4739_v21 = vld [vmem:[%s5914_s25 + $0x70] sm:$0xff]   ;;  %v4743_v25 = vld [vmem:[%s5914_s25 + $0x68] sm:$0xff]   ;;  %vm5018_vm0 = vmmov 0   ;;  %p4377_p13 = scmp.ne.s32.totalorder %s4998_s11, 1 }
 0x135   : > { %v4736_v18 = vld [vmem:[%s5914_s25 + $0xf8] sm:$0xff]   ;;  %4381 = vmatprep.subr.bf16.mxu0 %v4735_v17  ;;  %v4740_v22 = vld [vmem:[%s5914_s25 + $0xf0] sm:$0xff]   ;;  %v4744_v26 = vld [vmem:[%s5914_s25 + $0xe8] sm:$0xff]  }
 0x136   : > { %v4737_v19 = vld [vmem:[%s5914_s25 + $0x38] sm:$0xff]   ;;  %4403 = vmatprep.subr.bf16.mxu1 %v4736_v18  ;;  %v4741_v23 = vld [vmem:[%s5914_s25 + $0x30] sm:$0xff]   ;;  %v4745_v27 = vld [vmem:[%s5914_s25 + $0x28] sm:$0xff]  }
 0x137   : > { %v4738_v20 = vld [vmem:[%s5914_s25 + $0xb8] sm:$0xff]   ;;  %4382 = vmatpush3.bf16.msra.mxu0 %v4737_v19  ;;  %v4742_v24 = vld [vmem:[%s5914_s25 + $0xb0] sm:$0xff]   ;;  %v4746_v28 = vld [vmem:[%s5914_s25 + $0xa8] sm:$0xff]  }
 0x138   : > { %4404 = vmatpush3.bf16.msra.mxu1 %v4738_v20  ;;  %4383 = vmatprep.subr.bf16.mxu0 %v4739_v21  ;;  %v4747_v29 = vld [vmem:[%s5914_s25 + $0x60] sm:$0xff]   ;;  %v4751_v33 = vld [vmem:[%s5914_s25 + $0x58] sm:$0xff]   ;;  %v4755_v37 = vld [vmem:[%s5914_s25 + $0x50] sm:$0xff]  }
 0x139   : > { %4405 = vmatprep.subr.bf16.mxu1 %v4740_v22  ;;  %v4748_v30 = vld [vmem:[%s5914_s25 + $0xe0] sm:$0xff]   ;;  %v4752_v34 = vld [vmem:[%s5914_s25 + $0xd8] sm:$0xff]   ;;  %v4756_v38 = vld [vmem:[%s5914_s25 + $0xd0] sm:$0xff]  }
 0x13a   : > { %v4749_v31 = vld [vmem:[%s5914_s25 + $0x20] sm:$0xff]   ;;  %v4753_v35 = vld [vmem:[%s5914_s25 + $0x18] sm:$0xff]   ;;  %v4757_v39 = vld [vmem:[%s5914_s25 + $0x10] sm:$0xff]  }
 0x13b   : > { %4384 = vmatpush3.bf16.msra.mxu0 %v4741_v23  ;;  %v4750_v32 = vld [vmem:[%s5914_s25 + $0xa0] sm:$0xff]   ;;  %v4754_v36 = vld [vmem:[%s5914_s25 + $0x98] sm:$0xff]   ;;  %v4758_v40 = vld [vmem:[%s5914_s25 + $0x90] sm:$0xff]  }
 0x13c   : > { %4406 = vmatpush3.bf16.msra.mxu1 %v4742_v24  ;;  %4385 = vmatprep.subr.bf16.mxu0 %v4743_v25  ;;  %v4759_v41 = vld [vmem:[%s5914_s25 + $0x48] sm:$0xff]   ;;  %v4763_v45 = vld [vmem:[%s5914_s25 + $0x40] sm:$0xff]   ;;  %v1828_v49 = vld [vmem:[%s5907_s19] sm:$0xff] }
 0x13d   : > { %4407 = vmatprep.subr.bf16.mxu1 %v4744_v26  ;;  %v4760_v42 = vld [vmem:[%s5914_s25 + $0xc8] sm:$0xff]   ;;  %v4764_v46 = vld [vmem:[%s5914_s25 + $0xc0] sm:$0xff]   ;;  %v4152_v51 = vcombine.low %v1828_v49, %v1828_v49  ;;  %v4153_v52 = vcombine.high %v1828_v49, %v1828_v49  ;;  %v4771_v55 = vld [vmem:[%s5914_s25 + $0x178] sm:$0xff]  }
 0x13e   : > { %v4761_v43 = vld [vmem:[%s5914_s25 + $0x8] sm:$0xff]   ;;  %v4765_v47 = vld [vmem:[%s5914_s25] sm:$0xff]   ;;  %v4772_v56 = vld [vmem:[%s5914_s25 + $0x138] sm:$0xff]  }
 0x13f   : > { %4386 = vmatpush3.bf16.msra.mxu0 %v4745_v27  ;;  %v4762_v44 = vld [vmem:[%s5914_s25 + $0x88] sm:$0xff]   ;;  %v4766_v48 = vld [vmem:[%s5914_s25 + $0x80] sm:$0xff]   ;;  %3561 = vmatprep.mubr.bf16.mxu0 %v4153_v52  ;;  %v4773_v57 = vld [vmem:[%s5914_s25 + $0x1f8] sm:$0xff]  }
 0x140   : > { %4408 = vmatpush3.bf16.msra.mxu1 %v4746_v28  ;;  %4387 = vmatprep.subr.bf16.mxu0 %v4747_v29  ;;  %v1829_v50 = vld [vmem:[%s5907_s19 + $0x8] sm:$0xff]  ;;  %v4774_v58 = vld [vmem:[%s5914_s25 + $0x1b8] sm:$0xff]   ;;  %v4775_v59 = vld [vmem:[%s5914_s25 + $0x170] sm:$0xff]  }
 0x141   : > { %4409 = vmatprep.subr.bf16.mxu1 %v4748_v30  ;;  %v4154_v53 = vcombine.low %v1829_v50, %v1829_v50  ;;  %v4155_v54 = vcombine.high %v1829_v50, %v1829_v50  ;;  %v4776_v60 = vld [vmem:[%s5914_s25 + $0x130] sm:$0xff]   ;;  %v4779_v63 = vld [vmem:[%s5914_s25 + $0x168] sm:$0xff]   ;;  %v4783_v3 = vld [vmem:[%s5914_s25 + $0x160] sm:$0xff]  }
 0x142   : > { %v4777_v61 = vld [vmem:[%s5914_s25 + $0x1f0] sm:$0xff]   ;;  %v4780_v0 = vld [vmem:[%s5914_s25 + $0x128] sm:$0xff]   ;;  %v4784_v4 = vld [vmem:[%s5914_s25 + $0x120] sm:$0xff]  }
 0x143   : > { %4388 = vmatpush3.bf16.msra.mxu0 %v4749_v31  ;;  %3601 = vmatprep.mubr.bf16.mxu1 %v4155_v54  ;;  %v4778_v62 = vld [vmem:[%s5914_s25 + $0x1b0] sm:$0xff]   ;;  %v4781_v1 = vld [vmem:[%s5914_s25 + $0x1e8] sm:$0xff]   ;;  %v4785_v5 = vld [vmem:[%s5914_s25 + $0x1e0] sm:$0xff]  }
 0x144   : > { %4410 = vmatpush3.bf16.msra.mxu1 %v4750_v32  ;;  %4389 = vmatprep.subr.bf16.mxu0 %v4751_v33  ;;  %v4782_v2 = vld [vmem:[%s5914_s25 + $0x1a8] sm:$0xff]   ;;  %v4786_v6 = vld [vmem:[%s5914_s25 + $0x1a0] sm:$0xff]   ;;  %v4787_v7 = vld [vmem:[%s5914_s25 + $0x158] sm:$0xff]  }
 0x145   : > { %4411 = vmatprep.subr.bf16.mxu1 %v4752_v34  ;;  %v4788_v8 = vld [vmem:[%s5914_s25 + $0x118] sm:$0xff]   ;;  %v4791_v11 = vld [vmem:[%s5914_s25 + $0x150] sm:$0xff]   ;;  %v4795_v15 = vld [vmem:[%s5914_s25 + $0x148] sm:$0xff]  }
 0x146   : > { %v4789_v9 = vld [vmem:[%s5914_s25 + $0x1d8] sm:$0xff]   ;;  %v4792_v12 = vld [vmem:[%s5914_s25 + $0x110] sm:$0xff]   ;;  %v4796_v16 = vld [vmem:[%s5914_s25 + $0x108] sm:$0xff]  }
 0x147   : > { %4390 = vmatpush3.bf16.msra.mxu0 %v4753_v35  ;;  %v4790_v10 = vld [vmem:[%s5914_s25 + $0x198] sm:$0xff]   ;;  %v4793_v13 = vld [vmem:[%s5914_s25 + $0x1d0] sm:$0xff]   ;;  %v4797_v17 = vld [vmem:[%s5914_s25 + $0x1c8] sm:$0xff]  }
 0x148   : > { %4412 = vmatpush3.bf16.msra.mxu1 %v4754_v36  ;;  %4391 = vmatprep.subr.bf16.mxu0 %v4755_v37  ;;  %v4794_v14 = vld [vmem:[%s5914_s25 + $0x190] sm:$0xff]   ;;  %v4798_v18 = vld [vmem:[%s5914_s25 + $0x188] sm:$0xff]   ;;  %v4799_v19 = vld [vmem:[%s5914_s25 + $0x140] sm:$0xff]  }
 0x149   : > { %4413 = vmatprep.subr.bf16.mxu1 %v4756_v38  ;;  %v4800_v20 = vld [vmem:[%s5914_s25 + $0x100] sm:$0xff]   ;;  %v1830_v22 = vld [vmem:[%s5907_s19 + $0x10] sm:$0xff]  ;;  %v4805_v26 = vld [vmem:[%s5914_s25 + $0x278] sm:$0xff]  }
 0x14a   : > { %v4801_v21 = vld [vmem:[%s5914_s25 + $0x1c0] sm:$0xff]   ;;  %v4157_v23 = vcombine.high %v1830_v22, %v1830_v22  ;;  %v4156_v25 = vcombine.low %v1830_v22, %v1830_v22  ;;  %v1831_v27 = vld [vmem:[%s5907_s19 + $0x18] sm:$0xff]  ;;  %v4808_v30 = vld [vmem:[%s5914_s25 + $0x238] sm:$0xff]  }
 0x14b   : > { %4392 = vmatpush3.bf16.msra.mxu0 %v4757_v39  ;;  %v4804_v24 = vld [vmem:[%s5914_s25 + $0x180] sm:$0xff]   ;;  %v4158_v28 = vcombine.low %v1831_v27, %v1831_v27  ;;  %v4159_v29 = vcombine.high %v1831_v27, %v1831_v27  ;;  %v4809_v31 = vld [vmem:[%s5914_s25 + $0x2f8] sm:$0xff]   ;;  %v4811_v33 = vld [vmem:[%s5914_s25 + $0x270] sm:$0xff]  }
 0x14c   : > { %4414 = vmatpush3.bf16.msra.mxu1 %v4758_v40  ;;  %4393 = vmatprep.subr.bf16.mxu0 %v4759_v41  ;;  %v4810_v32 = vld [vmem:[%s5914_s25 + $0x2b8] sm:$0xff]   ;;  %v4812_v34 = vld [vmem:[%s5914_s25 + $0x230] sm:$0xff]   ;;  %v4815_v37 = vld [vmem:[%s5914_s25 + $0x268] sm:$0xff]  }
 0x14d   : > { %4415 = vmatprep.subr.bf16.mxu1 %v4760_v42  ;;  %v4813_v35 = vld [vmem:[%s5914_s25 + $0x2f0] sm:$0xff]   ;;  %v4816_v38 = vld [vmem:[%s5914_s25 + $0x228] sm:$0xff]   ;;  %v4819_v41 = vld [vmem:[%s5914_s25 + $0x260] sm:$0xff]  }
 0x14e   : > { %v4814_v36 = vld [vmem:[%s5914_s25 + $0x2b0] sm:$0xff]   ;;  %v4817_v39 = vld [vmem:[%s5914_s25 + $0x2e8] sm:$0xff]   ;;  %v4820_v42 = vld [vmem:[%s5914_s25 + $0x220] sm:$0xff]  }
 0x14f   : > { %4394 = vmatpush3.bf16.msra.mxu0 %v4761_v43  ;;  %v4818_v40 = vld [vmem:[%s5914_s25 + $0x2a8] sm:$0xff]   ;;  %v4821_v43 = vld [vmem:[%s5914_s25 + $0x2e0] sm:$0xff]   ;;  %v4827_v49 = vld [vmem:[%s5914_s25 + $0x250] sm:$0xff]  }
 0x150   : > { %4416 = vmatpush3.bf16.msra.mxu1 %v4762_v44  ;;  %4395 = vmatprep.subr.bf16.mxu0 %v4763_v45  ;;  %v4822_v44 = vld [vmem:[%s5914_s25 + $0x2a0] sm:$0xff]   ;;  %v4823_v45 = vld [vmem:[%s5914_s25 + $0x258] sm:$0xff]   ;;  %v4828_v50 = vld [vmem:[%s5914_s25 + $0x210] sm:$0xff]  }
 0x151   : > { %4417 = vmatprep.subr.bf16.mxu1 %v4764_v46  ;;  %v4824_v46 = vld [vmem:[%s5914_s25 + $0x218] sm:$0xff]   ;;  %v4830_v52 = vld [vmem:[%s5914_s25 + $0x290] sm:$0xff]   ;;  %v4832_v54 = vld [vmem:[%s5914_s25 + $0x208] sm:$0xff]  }
 0x152   : > { %v4862_v22 = vld [vmem:[%s5914_s25 + $0x398] sm:$0xff]   ;;  %v4867_v27 = vld [vmem:[%s5914_s25 + $0x348] sm:$0xff]  }
 0x153   : > { %4396 = vmatpush3.bf16.msra.mxu0 %v4765_v47  ;;  %v4825_v47 = vld [vmem:[%s5914_s25 + $0x2d8] sm:$0xff]  }
 0x154   : > { %4418 = vmatpush3.bf16.msra.mxu1 %v4766_v48  ;;  %4425 = vmatprep.subr.bf16.mxu0 %v4771_v55  ;;  %v4826_v48 = vld [vmem:[%s5914_s25 + $0x298] sm:$0xff]   ;;  %v4833_v55 = vld [vmem:[%s5914_s25 + $0x2c8] sm:$0xff]  }
 0x155   : > { %4447 = vmatprep.subr.bf16.mxu1 %v4773_v57  ;;  %v4835_v57 = vld [vmem:[%s5914_s25 + $0x240] sm:$0xff]  }
 0x156   : > { %3562 = vmatmul.mubr.bf16.vlgmr.msra.gmra.mxu0 %v4152_v51  ;;  %v4829_v51 = vld [vmem:[%s5914_s25 + $0x2d0] sm:$0xff]  }
 0x157   : > { %3602 = vmatmul.mubr.bf16.vlgmr.msra.gmra.mxu1 %v4154_v53  ;;  %4426 = vmatpush3.bf16.msra.mxu0 %v4772_v56  ;;  %v4831_v53 = vld [vmem:[%s5914_s25 + $0x248] sm:$0xff]  }
 0x158   : > { %4448 = vmatpush3.bf16.msra.mxu1 %v4774_v58  ;;  %4427 = vmatprep.subr.bf16.mxu0 %v4775_v59  ;;  %v4834_v56 = vld [vmem:[%s5914_s25 + $0x288] sm:$0xff]   ;;  %v4836_v58 = vld [vmem:[%s5914_s25 + $0x200] sm:$0xff]  }
 0x159   : > { %4449 = vmatprep.subr.bf16.mxu1 %v4777_v61  ;;  %3641 = vmatprep.mubr.bf16.mxu0 %v4157_v23  ;;  %v4837_v59 = vld [vmem:[%s5914_s25 + $0x2c0] sm:$0xff]   ;;  %v4863_v23 = vld [vmem:[%s5914_s25 + $0x350] sm:$0xff]  }
 0x15a   : > { %3681 = vmatprep.mubr.bf16.mxu1 %v4159_v29  ;;  %v4869_v29 = vld [vmem:[%s5914_s25 + $0x3c8] sm:$0xff]  }
 0x15b   : > { %4428 = vmatpush3.bf16.msra.mxu0 %v4776_v60  ;;  %v1832_v60 = vld [vmem:[%s5907_s19 + $0x20] sm:$0xff] }
 0x15c   : > { %4450 = vmatpush3.bf16.msra.mxu1 %v4778_v62  ;;  %4429 = vmatprep.subr.bf16.mxu0 %v4779_v63  ;;  %v4160_v61 = vcombine.low %v1832_v60, %v1832_v60  ;;  %v4161_v62 = vcombine.high %v1832_v60, %v1832_v60  ;;  %v4840_v63 = vld [vmem:[%s5914_s25 + $0x280] sm:$0xff]   ;;  %v4898_v60 = vld [vmem:[%s5914_s25 + $0x498] sm:$0xff]  }
 0x15d   : > { %4451 = vmatprep.subr.bf16.mxu1 %v4781_v1  ;;  %v1833_v1 = vld [vmem:[%s5907_s19 + $0x28] sm:$0xff] }
 0x15f   : > { %4430 = vmatpush3.bf16.msra.mxu0 %v4780_v0  ;;  %v4841_v0 = vld [vmem:[%s5914_s25 + $0x378] sm:$0xff]  }
 0x160   : > { %4452 = vmatpush3.bf16.msra.mxu1 %v4782_v2  ;;  %4431 = vmatprep.subr.bf16.mxu0 %v4783_v3  ;;  %v4162_v2 = vcombine.low %v1833_v1, %v1833_v1  ;;  %v4163_v3 = vcombine.high %v1833_v1, %v1833_v1  ;;  %v4903_v1 = vld [vmem:[%s5914_s25 + $0x448] sm:$0xff]  }
 0x161   : > { %4453 = vmatprep.subr.bf16.mxu1 %v4785_v5  ;;  %v4845_v5 = vld [vmem:[%s5914_s25 + $0x3f8] sm:$0xff]  }
 0x163   : > { %4432 = vmatpush3.bf16.msra.mxu0 %v4784_v4  ;;  %v4844_v4 = vld [vmem:[%s5914_s25 + $0x338] sm:$0xff]  }
 0x164   : > { %4454 = vmatpush3.bf16.msra.mxu1 %v4786_v6  ;;  %4433 = vmatprep.subr.bf16.mxu0 %v4787_v7  ;;  %v4846_v6 = vld [vmem:[%s5914_s25 + $0x3b8] sm:$0xff]   ;;  %v4847_v7 = vld [vmem:[%s5914_s25 + $0x370] sm:$0xff]  }
 0x165   : > { %4455 = vmatprep.subr.bf16.mxu1 %v4789_v9  ;;  %v4849_v9 = vld [vmem:[%s5914_s25 + $0x3f0] sm:$0xff]  }
 0x167   : > { %4434 = vmatpush3.bf16.msra.mxu0 %v4788_v8  ;;  %v4848_v8 = vld [vmem:[%s5914_s25 + $0x330] sm:$0xff]  }
 0x168   : > { %4456 = vmatpush3.bf16.msra.mxu1 %v4790_v10  ;;  %4435 = vmatprep.subr.bf16.mxu0 %v4791_v11  ;;  %v4850_v10 = vld [vmem:[%s5914_s25 + $0x3b0] sm:$0xff]   ;;  %v4851_v11 = vld [vmem:[%s5914_s25 + $0x368] sm:$0xff]  }
 0x169   : > { %4457 = vmatprep.subr.bf16.mxu1 %v4793_v13  ;;  %v4853_v13 = vld [vmem:[%s5914_s25 + $0x3e8] sm:$0xff]  }
 0x16b   : > { %4436 = vmatpush3.bf16.msra.mxu0 %v4792_v12  ;;  %v4852_v12 = vld [vmem:[%s5914_s25 + $0x328] sm:$0xff]  }
 0x16c   : > { %4458 = vmatpush3.bf16.msra.mxu1 %v4794_v14  ;;  %4437 = vmatprep.subr.bf16.mxu0 %v4795_v15  ;;  %v4854_v14 = vld [vmem:[%s5914_s25 + $0x3a8] sm:$0xff]   ;;  %v4855_v15 = vld [vmem:[%s5914_s25 + $0x360] sm:$0xff]  }
 0x16d   : > { %4459 = vmatprep.subr.bf16.mxu1 %v4797_v17  ;;  %v4857_v17 = vld [vmem:[%s5914_s25 + $0x3e0] sm:$0xff]  }
 0x16f   : > { %4438 = vmatpush3.bf16.msra.mxu0 %v4796_v16  ;;  %v4856_v16 = vld [vmem:[%s5914_s25 + $0x320] sm:$0xff]  }
 0x170   : > { %4460 = vmatpush3.bf16.msra.mxu1 %v4798_v18  ;;  %4439 = vmatprep.subr.bf16.mxu0 %v4799_v19  ;;  %v4858_v18 = vld [vmem:[%s5914_s25 + $0x3a0] sm:$0xff]   ;;  %v4859_v19 = vld [vmem:[%s5914_s25 + $0x358] sm:$0xff]  }
 0x171   : > { %4461 = vmatprep.subr.bf16.mxu1 %v4801_v21  ;;  %v4861_v21 = vld [vmem:[%s5914_s25 + $0x3d8] sm:$0xff]  }
 0x173   : > { %4440 = vmatpush3.bf16.msra.mxu0 %v4800_v20  ;;  %v4860_v20 = vld [vmem:[%s5914_s25 + $0x318] sm:$0xff]  }
 0x174   : > { %4462 = vmatpush3.bf16.msra.mxu1 %v4804_v24  ;;  %4469 = vmatprep.subr.bf16.mxu0 %v4805_v26  ;;  %v4864_v24 = vld [vmem:[%s5914_s25 + $0x310] sm:$0xff]  }
 0x175   : > { %4491 = vmatprep.subr.bf16.mxu1 %v4809_v31  ;;  %v4866_v26 = vld [vmem:[%s5914_s25 + $0x390] sm:$0xff]   ;;  %v4871_v31 = vld [vmem:[%s5914_s25 + $0x340] sm:$0xff]  }
 0x176   : > { %3642 = vmatmul.mubr.bf16.vlgmr.msra.gmra.mxu0 %v4156_v25  ;;  %v4865_v25 = vld [vmem:[%s5914_s25 + $0x3d0] sm:$0xff]  }
 0x177   : > { %4470 = vmatpush3.bf16.msra.mxu0 %v4808_v30  ;;  %3682 = vmatmul.mubr.bf16.vlgmr.msra.gmra.mxu1 %v4158_v28  ;;  %v4868_v28 = vld [vmem:[%s5914_s25 + $0x308] sm:$0xff]  }
 0x178   : > { %4492 = vmatpush3.bf16.msra.mxu1 %v4810_v32  ;;  %4471 = vmatprep.subr.bf16.mxu0 %v4811_v33  ;;  %v4870_v30 = vld [vmem:[%s5914_s25 + $0x388] sm:$0xff]   ;;  %v4872_v32 = vld [vmem:[%s5914_s25 + $0x300] sm:$0xff]  }
 0x179   : > { %4493 = vmatprep.subr.bf16.mxu1 %v4813_v35  ;;  %3721 = vmatprep.mubr.bf16.mxu0 %v4161_v62  ;;  %v4873_v33 = vld [vmem:[%s5914_s25 + $0x3c0] sm:$0xff]   ;;  %v4900_v62 = vld [vmem:[%s5914_s25 + $0x410] sm:$0xff]  }
 0x17a   : > { %3761 = vmatprep.mubr.bf16.mxu1 %v4163_v3  ;;  %v4905_v3 = vld [vmem:[%s5914_s25 + $0x4c8] sm:$0xff]  }
 0x17b   : > { %4472 = vmatpush3.bf16.msra.mxu0 %v4812_v34  ;;  %v1834_v34 = vld [vmem:[%s5907_s19 + $0x30] sm:$0xff] }
 0x17c   : > { %4494 = vmatpush3.bf16.msra.mxu1 %v4814_v36  ;;  %4473 = vmatprep.subr.bf16.mxu0 %v4815_v37  ;;  %v4164_v35 = vcombine.low %v1834_v34, %v1834_v34  ;;  %v4165_v36 = vcombine.high %v1834_v34, %v1834_v34  ;;  %v4876_v37 = vld [vmem:[%s5914_s25 + $0x380] sm:$0xff]   ;;  %v4934_v34 = vld [vmem:[%s5914_s25 + $0x598] sm:$0xff]  }
 0x17d   : > { %4495 = vmatprep.subr.bf16.mxu1 %v4817_v39  ;;  %v1835_v39 = vld [vmem:[%s5907_s19 + $0x38] sm:$0xff] }
 0x17f   : > { %4474 = vmatpush3.bf16.msra.mxu0 %v4816_v38  ;;  %v4877_v38 = vld [vmem:[%s5914_s25 + $0x478] sm:$0xff]  }
 0x180   : > { %4496 = vmatpush3.bf16.msra.mxu1 %v4818_v40  ;;  %4475 = vmatprep.subr.bf16.mxu0 %v4819_v41  ;;  %v4166_v40 = vcombine.low %v1835_v39, %v1835_v39  ;;  %v4167_v41 = vcombine.high %v1835_v39, %v1835_v39  ;;  %v4939_v39 = vld [vmem:[%s5914_s25 + $0x548] sm:$0xff]  }
 0x181   : > { %4497 = vmatprep.subr.bf16.mxu1 %v4821_v43  ;;  %v4881_v43 = vld [vmem:[%s5914_s25 + $0x4f8] sm:$0xff]  }
 0x183   : > { %4476 = vmatpush3.bf16.msra.mxu0 %v4820_v42  ;;  %v4880_v42 = vld [vmem:[%s5914_s25 + $0x438] sm:$0xff]  }
 0x184   : > { %4498 = vmatpush3.bf16.msra.mxu1 %v4822_v44  ;;  %4477 = vmatprep.subr.bf16.mxu0 %v4823_v45  ;;  %v4882_v44 = vld [vmem:[%s5914_s25 + $0x4b8] sm:$0xff]   ;;  %v4883_v45 = vld [vmem:[%s5914_s25 + $0x470] sm:$0xff]  }
 0x185   : > { %4499 = vmatprep.subr.bf16.mxu1 %v4825_v47  ;;  %v4885_v47 = vld [vmem:[%s5914_s25 + $0x4f0] sm:$0xff]  }
 0x187   : > { %4478 = vmatpush3.bf16.msra.mxu0 %v4824_v46  ;;  %v4884_v46 = vld [vmem:[%s5914_s25 + $0x430] sm:$0xff]  }
 0x188   : > { %4500 = vmatpush3.bf16.msra.mxu1 %v4826_v48  ;;  %4479 = vmatprep.subr.bf16.mxu0 %v4827_v49  ;;  %v4886_v48 = vld [vmem:[%s5914_s25 + $0x4b0] sm:$0xff]   ;;  %v4887_v49 = vld [vmem:[%s5914_s25 + $0x468] sm:$0xff]  }
 0x189   : > { %4501 = vmatprep.subr.bf16.mxu1 %v4829_v51  ;;  %v4889_v51 = vld [vmem:[%s5914_s25 + $0x4e8] sm:$0xff]  }
 0x18b   : > { %4480 = vmatpush3.bf16.msra.mxu0 %v4828_v50  ;;  %v4888_v50 = vld [vmem:[%s5914_s25 + $0x428] sm:$0xff]  }
 0x18c   : > { %4502 = vmatpush3.bf16.msra.mxu1 %v4830_v52  ;;  %4481 = vmatprep.subr.bf16.mxu0 %v4831_v53  ;;  %v4890_v52 = vld [vmem:[%s5914_s25 + $0x4a8] sm:$0xff]   ;;  %v4891_v53 = vld [vmem:[%s5914_s25 + $0x460] sm:$0xff]  }
 0x18d   : > { %4503 = vmatprep.subr.bf16.mxu1 %v4833_v55  ;;  %v4893_v55 = vld [vmem:[%s5914_s25 + $0x4e0] sm:$0xff]  }
 0x18f   : > { %4482 = vmatpush3.bf16.msra.mxu0 %v4832_v54  ;;  %v4892_v54 = vld [vmem:[%s5914_s25 + $0x420] sm:$0xff]  }
 0x190   : > { %4504 = vmatpush3.bf16.msra.mxu1 %v4834_v56  ;;  %4483 = vmatprep.subr.bf16.mxu0 %v4835_v57  ;;  %v4894_v56 = vld [vmem:[%s5914_s25 + $0x4a0] sm:$0xff]   ;;  %v4895_v57 = vld [vmem:[%s5914_s25 + $0x458] sm:$0xff]  }
 0x191   : > { %4505 = vmatprep.subr.bf16.mxu1 %v4837_v59  ;;  %v4897_v59 = vld [vmem:[%s5914_s25 + $0x4d8] sm:$0xff]  }
 0x193   : > { %4484 = vmatpush3.bf16.msra.mxu0 %v4836_v58  ;;  %v4896_v58 = vld [vmem:[%s5914_s25 + $0x418] sm:$0xff]  }
 0x194   : > { %4506 = vmatpush3.bf16.msra.mxu1 %v4840_v63  ;;  %4513 = vmatprep.subr.bf16.mxu0 %v4841_v0  ;;  %v4901_v63 = vld [vmem:[%s5914_s25 + $0x4d0] sm:$0xff]  }
 0x195   : > { %4535 = vmatprep.subr.bf16.mxu1 %v4845_v5  ;;  %v4902_v0 = vld [vmem:[%s5914_s25 + $0x490] sm:$0xff]   ;;  %v4907_v5 = vld [vmem:[%s5914_s25 + $0x440] sm:$0xff]  }
 0x196   : > { %3722 = vmatmul.mubr.bf16.vlgmr.msra.gmra.mxu0 %v4160_v61  ;;  %v4899_v61 = vld [vmem:[%s5914_s25 + $0x450] sm:$0xff]  }
 0x197   : > { %4514 = vmatpush3.bf16.msra.mxu0 %v4844_v4  ;;  %3762 = vmatmul.mubr.bf16.vlgmr.msra.gmra.mxu1 %v4162_v2  ;;  %v4904_v2 = vld [vmem:[%s5914_s25 + $0x408] sm:$0xff]  }
 0x198   : > { %4536 = vmatpush3.bf16.msra.mxu1 %v4846_v6  ;;  %4515 = vmatprep.subr.bf16.mxu0 %v4847_v7  ;;  %v4906_v4 = vld [vmem:[%s5914_s25 + $0x488] sm:$0xff]   ;;  %v4908_v6 = vld [vmem:[%s5914_s25 + $0x400] sm:$0xff]  }
 0x199   : > { %4537 = vmatprep.subr.bf16.mxu1 %v4849_v9  ;;  %3801 = vmatprep.mubr.bf16.mxu0 %v4165_v36  ;;  %v4909_v7 = vld [vmem:[%s5914_s25 + $0x4c0] sm:$0xff]   ;;  %v4936_v36 = vld [vmem:[%s5914_s25 + $0x510] sm:$0xff]  }
 0x19a   : > { %3841 = vmatprep.mubr.bf16.mxu1 %v4167_v41  ;;  %v4941_v41 = vld [vmem:[%s5914_s25 + $0x5c8] sm:$0xff]  }
 0x19b   : > { %4516 = vmatpush3.bf16.msra.mxu0 %v4848_v8  ;;  %v1836_v8 = vld [vmem:[%s5907_s19 + $0x40] sm:$0xff] }
 0x19c   : > { %4538 = vmatpush3.bf16.msra.mxu1 %v4850_v10  ;;  %4517 = vmatprep.subr.bf16.mxu0 %v4851_v11  ;;  %v4168_v9 = vcombine.low %v1836_v8, %v1836_v8  ;;  %v4169_v10 = vcombine.high %v1836_v8, %v1836_v8  ;;  %v4912_v11 = vld [vmem:[%s5914_s25 + $0x480] sm:$0xff]  }
 0x19d   : > { %4539 = vmatprep.subr.bf16.mxu1 %v4853_v13  ;;  %v1837_v13 = vld [vmem:[%s5907_s19 + $0x48] sm:$0xff] }
 0x19f   : > { %4518 = vmatpush3.bf16.msra.mxu0 %v4852_v12  ;;  %v4913_v12 = vld [vmem:[%s5914_s25 + $0x578] sm:$0xff]  }
 0x1a0   : > { %4540 = vmatpush3.bf16.msra.mxu1 %v4854_v14  ;;  %4519 = vmatprep.subr.bf16.mxu0 %v4855_v15  ;;  %v4170_v14 = vcombine.low %v1837_v13, %v1837_v13  ;;  %v4171_v15 = vcombine.high %v1837_v13, %v1837_v13 }
 0x1a1   : > { %4541 = vmatprep.subr.bf16.mxu1 %v4857_v17  ;;  %v4917_v17 = vld [vmem:[%s5914_s25 + $0x5f8] sm:$0xff]  }
 0x1a3   : > { %4520 = vmatpush3.bf16.msra.mxu0 %v4856_v16  ;;  %v4916_v16 = vld [vmem:[%s5914_s25 + $0x538] sm:$0xff]  }
 0x1a4   : > { %4542 = vmatpush3.bf16.msra.mxu1 %v4858_v18  ;;  %4521 = vmatprep.subr.bf16.mxu0 %v4859_v19  ;;  %v4918_v18 = vld [vmem:[%s5914_s25 + $0x5b8] sm:$0xff]   ;;  %v4919_v19 = vld [vmem:[%s5914_s25 + $0x570] sm:$0xff]  }
 0x1a5   : > { %4543 = vmatprep.subr.bf16.mxu1 %v4861_v21  ;;  %v4921_v21 = vld [vmem:[%s5914_s25 + $0x5f0] sm:$0xff]  }
 0x1a7   : > { %4522 = vmatpush3.bf16.msra.mxu0 %v4860_v20  ;;  %v4920_v20 = vld [vmem:[%s5914_s25 + $0x530] sm:$0xff]  }
 0x1a8   : > { %4544 = vmatpush3.bf16.msra.mxu1 %v4862_v22  ;;  %4523 = vmatprep.subr.bf16.mxu0 %v4863_v23  ;;  %v4922_v22 = vld [vmem:[%s5914_s25 + $0x5b0] sm:$0xff]   ;;  %v4923_v23 = vld [vmem:[%s5914_s25 + $0x568] sm:$0xff]  }
 0x1a9   : > { %4545 = vmatprep.subr.bf16.mxu1 %v4865_v25  ;;  %v4925_v25 = vld [vmem:[%s5914_s25 + $0x5e8] sm:$0xff]  }
 0x1ab   : > { %4524 = vmatpush3.bf16.msra.mxu0 %v4864_v24  ;;  %v4924_v24 = vld [vmem:[%s5914_s25 + $0x528] sm:$0xff]  }
 0x1ac   : > { %4546 = vmatpush3.bf16.msra.mxu1 %v4866_v26  ;;  %4525 = vmatprep.subr.bf16.mxu0 %v4867_v27  ;;  %v4926_v26 = vld [vmem:[%s5914_s25 + $0x5a8] sm:$0xff]   ;;  %v4927_v27 = vld [vmem:[%s5914_s25 + $0x560] sm:$0xff]  }
 0x1ad   : > { %4547 = vmatprep.subr.bf16.mxu1 %v4869_v29  ;;  %v4929_v29 = vld [vmem:[%s5914_s25 + $0x5e0] sm:$0xff]  }
 0x1af   : > { %4526 = vmatpush3.bf16.msra.mxu0 %v4868_v28  ;;  %v4928_v28 = vld [vmem:[%s5914_s25 + $0x520] sm:$0xff]  }
 0x1b0   : > { %4548 = vmatpush3.bf16.msra.mxu1 %v4870_v30  ;;  %4527 = vmatprep.subr.bf16.mxu0 %v4871_v31  ;;  %v4930_v30 = vld [vmem:[%s5914_s25 + $0x5a0] sm:$0xff]   ;;  %v4931_v31 = vld [vmem:[%s5914_s25 + $0x558] sm:$0xff]  }
 0x1b1   : > { %4549 = vmatprep.subr.bf16.mxu1 %v4873_v33  ;;  %v4933_v33 = vld [vmem:[%s5914_s25 + $0x5d8] sm:$0xff]  }
 0x1b3   : > { %4528 = vmatpush3.bf16.msra.mxu0 %v4872_v32  ;;  %v4932_v32 = vld [vmem:[%s5914_s25 + $0x518] sm:$0xff]  }
 0x1b4   : > { %4550 = vmatpush3.bf16.msra.mxu1 %v4876_v37  ;;  %4557 = vmatprep.subr.bf16.mxu0 %v4877_v38  ;;  %v4937_v37 = vld [vmem:[%s5914_s25 + $0x5d0] sm:$0xff]  }
 0x1b5   : > { %4579 = vmatprep.subr.bf16.mxu1 %v4881_v43  ;;  %v4938_v38 = vld [vmem:[%s5914_s25 + $0x590] sm:$0xff]   ;;  %v4943_v43 = vld [vmem:[%s5914_s25 + $0x540] sm:$0xff]  }
 0x1b6   : > { %3802 = vmatmul.mubr.bf16.vlgmr.msra.gmra.mxu0 %v4164_v35  ;;  %v4935_v35 = vld [vmem:[%s5914_s25 + $0x550] sm:$0xff]  }
 0x1b7   : > { %4558 = vmatpush3.bf16.msra.mxu0 %v4880_v42  ;;  %3842 = vmatmul.mubr.bf16.vlgmr.msra.gmra.mxu1 %v4166_v40  ;;  %v4940_v40 = vld [vmem:[%s5914_s25 + $0x508] sm:$0xff]  }
 0x1b8   : > { %4580 = vmatpush3.bf16.msra.mxu1 %v4882_v44  ;;  %4559 = vmatprep.subr.bf16.mxu0 %v4883_v45  ;;  %v4942_v42 = vld [vmem:[%s5914_s25 + $0x588] sm:$0xff]   ;;  %v4944_v44 = vld [vmem:[%s5914_s25 + $0x500] sm:$0xff]  }
 0x1b9   : > { %4581 = vmatprep.subr.bf16.mxu1 %v4885_v47  ;;  %3881 = vmatprep.mubr.bf16.mxu0 %v4169_v10  ;;  %v4945_v45 = vld [vmem:[%s5914_s25 + $0x5c0] sm:$0xff]  }
 0x1ba   : > { %3921 = vmatprep.mubr.bf16.mxu1 %v4171_v15 }
 0x1bb   : > { %4560 = vmatpush3.bf16.msra.mxu0 %v4884_v46  ;;  %v1838_v46 = vld [vmem:[%s5907_s19 + $0x50] sm:$0xff] }
 0x1bc   : > { %4582 = vmatpush3.bf16.msra.mxu1 %v4886_v48  ;;  %4561 = vmatprep.subr.bf16.mxu0 %v4887_v49  ;;  %v4172_v47 = vcombine.low %v1838_v46, %v1838_v46  ;;  %v4173_v48 = vcombine.high %v1838_v46, %v1838_v46  ;;  %v4948_v49 = vld [vmem:[%s5914_s25 + $0x580] sm:$0xff]  }
 0x1bd   : > { %4583 = vmatprep.subr.bf16.mxu1 %v4889_v51  ;;  %v5017_v51 = vmov 0.0  }
 0x1bf   : > { %4562 = vmatpush3.bf16.msra.mxu0 %v4888_v50  ;;  %v1839_v50 = vld [vmem:[%s5907_s19 + $0x58] sm:$0xff] }
 0x1c0   : > { %4584 = vmatpush3.bf16.msra.mxu1 %v4890_v52  ;;  %4563 = vmatprep.subr.bf16.mxu0 %v4891_v53  ;;  %v4174_v52 = vcombine.low %v1839_v50, %v1839_v50  ;;  %v4175_v53 = vcombine.high %v1839_v50, %v1839_v50 }
 0x1c1   : > { %4585 = vmatprep.subr.bf16.mxu1 %v4893_v55  ;;  %v4952_v55 = vld [vmem:[%s5914_s25 + $0x630] sm:$0xff]  }
 0x1c3   : > { %4564 = vmatpush3.bf16.msra.mxu0 %v4892_v54  ;;  %v4951_v54 = vld [vmem:[%s5914_s25 + $0x638] sm:$0xff]  }
 0x1c4   : > { %4586 = vmatpush3.bf16.msra.mxu1 %v4894_v56  ;;  %4565 = vmatprep.subr.bf16.mxu0 %v4895_v57  ;;  %v4953_v56 = vld [vmem:[%s5914_s25 + $0x628] sm:$0xff]   ;;  %v4954_v57 = vld [vmem:[%s5914_s25 + $0x620] sm:$0xff]  }
 0x1c5   : > { %4587 = vmatprep.subr.bf16.mxu1 %v4897_v59  ;;  %v4956_v59 = vld [vmem:[%s5914_s25 + $0x610] sm:$0xff]  }
 0x1c7   : > { %4566 = vmatpush3.bf16.msra.mxu0 %v4896_v58  ;;  %v4955_v58 = vld [vmem:[%s5914_s25 + $0x618] sm:$0xff]  }
 0x1c8   : > { %4588 = vmatpush3.bf16.msra.mxu1 %v4898_v60  ;;  %4567 = vmatprep.subr.bf16.mxu0 %v4899_v61  ;;  %v4957_v60 = vld [vmem:[%s5914_s25 + $0x608] sm:$0xff]   ;;  %v4958_v61 = vld [vmem:[%s5914_s25 + $0x600] sm:$0xff]  }
 0x1c9   : > { %4589 = vmatprep.subr.bf16.mxu1 %v4901_v63 }
 0x1cb   : > { %4568 = vmatpush3.bf16.msra.mxu0 %v4900_v62  ;;  %v4959_v62 = vld [vmem:[%s5907_s19 + $0x60] ss:$0 sps:$4 sm:$0xff]  }
 0x1cc   : > { %4590 = vmatpush3.bf16.msra.mxu1 %v4902_v0  ;;  %4569 = vmatprep.subr.bf16.mxu0 %v4903_v1 }
 0x1cd   : > { %4591 = vmatprep.subr.bf16.mxu1 %v4905_v3 }
 0x1cf   : > { %4570 = vmatpush3.bf16.msra.mxu0 %v4904_v2 }
 0x1d0   : > { %4592 = vmatpush3.bf16.msra.mxu1 %v4906_v4  ;;  %4571 = vmatprep.subr.bf16.mxu0 %v4907_v5 }
 0x1d1   : > { %4593 = vmatprep.subr.bf16.mxu1 %v4909_v7 }
 0x1d3   : > { %4572 = vmatpush3.bf16.msra.mxu0 %v4908_v6 }
 0x1d4   : > { %4594 = vmatpush3.bf16.msra.mxu1 %v4912_v11  ;;  %4601 = vmatprep.subr.bf16.mxu0 %v4913_v12 }
 0x1d5   : > { %4623 = vmatprep.subr.bf16.mxu1 %v4917_v17 }
 0x1d6   : > { %3882 = vmatmul.mubr.bf16.vlgmr.msra.gmra.mxu0 %v4168_v9 }
 0x1d7   : > { %4602 = vmatpush3.bf16.msra.mxu0 %v4916_v16  ;;  %3922 = vmatmul.mubr.bf16.vlgmr.msra.gmra.mxu1 %v4170_v14 }
 0x1d8   : > { %4624 = vmatpush3.bf16.msra.mxu1 %v4918_v18  ;;  %4603 = vmatprep.subr.bf16.mxu0 %v4919_v19 }
 0x1d9   : > { %4625 = vmatprep.subr.bf16.mxu1 %v4921_v21  ;;  %3961 = vmatprep.mubr.bf16.mxu0 %v4173_v48 }
 0x1da   : > { %4001 = vmatprep.mubr.bf16.mxu1 %v4175_v53 }
 0x1db   : > { %4604 = vmatpush3.bf16.msra.mxu0 %v4920_v20 }
 0x1dc   : > { %4626 = vmatpush3.bf16.msra.mxu1 %v4922_v22  ;;  %4605 = vmatprep.subr.bf16.mxu0 %v4923_v23 }
 0x1dd   : > { %4627 = vmatprep.subr.bf16.mxu1 %v4925_v25 }
 0x1df   : > { %4606 = vmatpush3.bf16.msra.mxu0 %v4924_v24 }
 0x1e0   : > { %4628 = vmatpush3.bf16.msra.mxu1 %v4926_v26  ;;  %4607 = vmatprep.subr.bf16.mxu0 %v4927_v27 }
 0x1e1   : > { %4629 = vmatprep.subr.bf16.mxu1 %v4929_v29 }
 0x1e3   : > { %4608 = vmatpush3.bf16.msra.mxu0 %v4928_v28 }
 0x1e4   : > { %4630 = vmatpush3.bf16.msra.mxu1 %v4930_v30  ;;  %4609 = vmatprep.subr.bf16.mxu0 %v4931_v31 }
 0x1e5   : > { %4631 = vmatprep.subr.bf16.mxu1 %v4933_v33 }
 0x1e7   : > { %4610 = vmatpush3.bf16.msra.mxu0 %v4932_v32 }
 0x1e8   : > { %4632 = vmatpush3.bf16.msra.mxu1 %v4934_v34  ;;  %4611 = vmatprep.subr.bf16.mxu0 %v4935_v35 }
 0x1e9   : > { %4633 = vmatprep.subr.bf16.mxu1 %v4937_v37 }
 0x1eb   : > { %4612 = vmatpush3.bf16.msra.mxu0 %v4936_v36 }
 0x1ec   : > { %4634 = vmatpush3.bf16.msra.mxu1 %v4938_v38  ;;  %4613 = vmatprep.subr.bf16.mxu0 %v4939_v39 }
 0x1ed   : > { %4635 = vmatprep.subr.bf16.mxu1 %v4941_v41 }
 0x1ef   : > { %4614 = vmatpush3.bf16.msra.mxu0 %v4940_v40 }
 0x1f0   : > { %4636 = vmatpush3.bf16.msra.mxu1 %v4942_v42  ;;  %4615 = vmatprep.subr.bf16.mxu0 %v4943_v43 }
 0x1f1   : > { %4637 = vmatprep.subr.bf16.mxu1 %v4945_v45 }
 0x1f3   : > { %4616 = vmatpush3.bf16.msra.mxu0 %v4944_v44 }
 0x1f4   : > { %4654 = vmatprep.subr.bf16.mxu0 %v5017_v51  ;;  %4638 = vmatpush3.bf16.msra.mxu1 %v4948_v49 }
 0x1f6   : > { %3962 = vmatmul.mubr.bf16.vlgmr.msra.gmra.mxu0 %v4172_v47 }
 0x1f7   : > { %4655 = vmatpush3.bf16.msra.mxu0 %v4951_v54  ;;  %4670 = vmatprep.mubr.msk.bf16.mxu0 %vm5018_vm0, %v5017_v51 }
 0x1f8   : > { %4002 = vmatmul.mubr.bf16.vlgmr.msra.gmra.mxu1 %v4174_v52  ;;  %4656 = vmatprep.subr.bf16.mxu0 %v5017_v51 }
 0x1fb   : > { %4657 = vmatpush3.bf16.msra.mxu0 %v4952_v55 }
 0x1fc   : > { %4658 = vmatprep.subr.bf16.mxu0 %v5017_v51 }
 0x1ff   : > { %4659 = vmatpush3.bf16.msra.mxu0 %v4953_v56 }
 0x200   : > { %4660 = vmatprep.subr.bf16.mxu0 %v5017_v51 }
 0x203   : > { %4661 = vmatpush3.bf16.msra.mxu0 %v4954_v57 }
 0x204   : > { %4662 = vmatprep.subr.bf16.mxu0 %v5017_v51 }
 0x207   : > { %4663 = vmatpush3.bf16.msra.mxu0 %v4955_v58 }
 0x208   : > { %4664 = vmatprep.subr.bf16.mxu0 %v5017_v51 }
 0x20b   : > { %4665 = vmatpush3.bf16.msra.mxu0 %v4956_v59 }
 0x20c   : > { %4666 = vmatprep.subr.bf16.mxu0 %v5017_v51 }
 0x20f   : > { %4667 = vmatpush3.bf16.msra.mxu0 %v4957_v60 }
 0x210   : > { %4668 = vmatprep.subr.bf16.mxu0 %v5017_v51 }
 0x213   : > { %4669 = vmatpush3.bf16.msra.mxu0 %v4958_v61 }
 0x216   : > { %v4397_v63 = vpop.f32.mrf.mxu0  ;;  %4671 = vmatmul.mubr.bf16.vlgmr.msra.gmra.mxu0 %v4959_v62 }
 0x217   : > { %v4419_v0 = vpop.f32.mrf.mxu1 }
 0x218   : > { %v4398_v1 = vpop.f32.mrf.mxu0 }
 0x219   : > { %v4420_v2 = vpop.f32.mrf.mxu1  ;;  %v4399_v3 = vadd.f32 %v4398_v1, %v4397_v63 }
 0x21a   : > { %v4421_v4 = vadd.f32 %v4420_v2, %v4419_v0  ;;  %v4400_v5 = vpop.f32.mrf.mxu0 }
 0x21b   : > { %v4422_v6 = vpop.f32.mrf.mxu1 }
 0x21c   : > { %v3604_v7 = vadd.f32 %v4421_v4, %v4399_v3  ;;  %v4401_v8 = vpop.f32.mrf.mxu0  ;;  %v1827_v6 = vld [vmem:[#allocation2] sm:$0xff] }
 0x21d   : > { %v4423_v9 = vpop.f32.mrf.mxu1 }
 0x236   : > { %v4441_v10 = vpop.f32.mrf.mxu0 }
 0x237   : > { %v4463_v11 = vpop.f32.mrf.mxu1 }
 0x238   : > { %v4442_v12 = vpop.f32.mrf.mxu0 }
 0x239   : > { %v4443_v13 = vadd.f32 %v4442_v12, %v4441_v10  ;;  %v4464_v14 = vpop.f32.mrf.mxu1 }
 0x23a   : > { %v4444_v15 = vpop.f32.mrf.mxu0  ;;  %v4465_v16 = vadd.f32 %v4464_v14, %v4463_v11 }
 0x23b   : > { %v3644_v17 = vadd.f32 %v4443_v13, %v3604_v7  ;;  %v4466_v18 = vpop.f32.mrf.mxu1 }
 0x23c   : > { %v4445_v19 = vpop.f32.mrf.mxu0 }
 0x23d   : > { %v3684_v20 = vadd.f32 %v4465_v16, %v3644_v17  ;;  %v4467_v21 = vpop.f32.mrf.mxu1 }
 0x256   : > { %v4485_v22 = vpop.f32.mrf.mxu0 }
 0x257   : > { %v4507_v24 = vpop.f32.mrf.mxu1 }
 0x258   : > { %v4486_v23 = vpop.f32.mrf.mxu0 }
 0x259   : > { %v4487_v25 = vadd.f32 %v4486_v23, %v4485_v22  ;;  %v4508_v27 = vpop.f32.mrf.mxu1 }
 0x25a   : > { %v4488_v26 = vpop.f32.mrf.mxu0  ;;  %v4509_v29 = vadd.f32 %v4508_v27, %v4507_v24 }
 0x25b   : > { %v3724_v28 = vadd.f32 %v4487_v25, %v3684_v20  ;;  %v4510_v31 = vpop.f32.mrf.mxu1 }
 0x25c   : > { %v4489_v30 = vpop.f32.mrf.mxu0 }
 0x25d   : > { %v3764_v32 = vadd.f32 %v4509_v29, %v3724_v28  ;;  %v4511_v33 = vpop.f32.mrf.mxu1 }
 0x276   : > { %v4529_v34 = vpop.f32.mrf.mxu0 }
 0x277   : > { %v4551_v36 = vpop.f32.mrf.mxu1 }
 0x278   : > { %v4530_v35 = vpop.f32.mrf.mxu0 }
 0x279   : > { %v4531_v37 = vadd.f32 %v4530_v35, %v4529_v34  ;;  %v4552_v39 = vpop.f32.mrf.mxu1 }
 0x27a   : > { %v4532_v38 = vpop.f32.mrf.mxu0  ;;  %v4553_v41 = vadd.f32 %v4552_v39, %v4551_v36 }
 0x27b   : > { %v3804_v40 = vadd.f32 %v4531_v37, %v3764_v32  ;;  %v4554_v43 = vpop.f32.mrf.mxu1 }
 0x27c   : > { %v4533_v42 = vpop.f32.mrf.mxu0 }
 0x27d   : > { %v3844_v44 = vadd.f32 %v4553_v41, %v3804_v40  ;;  %v4555_v45 = vpop.f32.mrf.mxu1 }
 0x296   : > { %v4573_v46 = vpop.f32.mrf.mxu0 }
 0x297   : > { %v4595_v48 = vpop.f32.mrf.mxu1 }
 0x298   : > { %v4574_v47 = vpop.f32.mrf.mxu0 }
 0x299   : > { %v4596_v50 = vpop.f32.mrf.mxu1  ;;  %v4575_v62 = vadd.f32 %v4574_v47, %v4573_v46 }
 0x29a   : > { %v4576_v49 = vpop.f32.mrf.mxu0  ;;  %v4597_v0 = vadd.f32 %v4596_v50, %v4595_v48 }
 0x29b   : > { %v4598_v52 = vpop.f32.mrf.mxu1  ;;  %v3884_v63 = vadd.f32 %v4575_v62, %v3844_v44 }
 0x29c   : > { %v4577_v51 = vpop.f32.mrf.mxu0 }
 0x29d   : > { %v4599_v53 = vpop.f32.mrf.mxu1  ;;  %v3924_v2 = vadd.f32 %v4597_v0, %v3884_v63 }
 0x2b6   : > { %v4617_v54 = vpop.f32.mrf.mxu0 }
 0x2b8   : > { %v4618_v55 = vpop.f32.mrf.mxu0  ;;  %v4639_v56 = vpop.f32.mrf.mxu1 }
 0x2b9   : > { %v4619_v1 = vadd.f32 %v4618_v55, %v4617_v54 }
 0x2ba   : > { %v4620_v57 = vpop.f32.mrf.mxu0  ;;  %v4640_v58 = vpop.f32.mrf.mxu1 }
 0x2bb   : > { %v3964_v3 = vadd.f32 %v4619_v1, %v3924_v2  ;;  %v4641_v4 = vadd.f32 %v4640_v58, %v4639_v56 }
 0x2bc   : > { %v4621_v59 = vpop.f32.mrf.mxu0  ;;  %v4642_v60 = vpop.f32.mrf.mxu1 }
 0x2bd   : > { %v4004_v5 = vadd.f32 %v4641_v4, %v3964_v3 }
 0x2be   : > { %v4643_v61 = vpop.f32.mrf.mxu1 }
 0x2d6   : > { %v4043_v7 = vpop.f32.mrf.mxu0 }
 0x2d7   : > { %v4044_v8 = vadd.f32 %v4043_v7, %v4004_v5 }
 0x2d8   : > { %v4672_v9 = vpop.f32.mrf.mxu0  ;;  %4054 = sbr.rel (%p4377_p13) target bundleno = 742 (0x2e6), region = 77 }
 0x2d9   : > { %v4049_v10 = vadd.f32 %v4044_v8, %v1827_v6 }
 0x2da   : > { %v4046_v11 = vpop.f32.mrf.mxu0 }
 0x2db   : > { %4050 = vst [vmem:[#allocation2] sm:$0xff] %v4049_v10 }
 0x2dc   : > { %v4673_v12 = vpop.f32.mrf.mxu0 }
 0x2e2   : > { %v4055_v13 = vld [vmem:[#allocation2] sm:$0xff] }
 0x2e3   : > { %v4056_v14 = vmax.f32 %v4055_v13, 0.0 }
 0x2e5   : > { %4057 = vst [vmem:[%s5912_s24] sm:$0xff] %v4056_v14 }
 0x2e6 PF: > { %s12_s15 = sadd.s32 1, %s5014_s15   ;;  %s6156_s9 = smov %s4994_s10 }
 0x2e7   : > { %p9_p0 = scmp.ge.s32.totalorder %s12_s15, 6   ;;  %s6157_s10 = smov %s5085_s22 }
 0x2e8   : > { %s6158_s11 = smov %s5006_s13  ;;  %s6159_s12 = smov %s5010_s14 }
 0x2e9   : > { %s6160_s13 = smov %s6163_s16  ;;  %s6161_s14 = smov %s6167_s17 }
 0x2ea   :  { %11 = sbr.rel (!%p9_p0) target bundleno = 4 (0x4), region = 115 }

</bundles_post_ra>
